<compile_context>
chip_gen: v7x
topology: tpu7x:2x2x1
jax: 0.10.0
libtpu: 0.0.40
codegen_flags: <defaults>
</compile_context>

<pallas_src>
import functools
import numpy as np

import jax
import jax.numpy as jnp
from jax.experimental import pallas as pl
from jax.experimental.pallas import tpu as pltpu


# ----------------------------- kernel -------------------------------------- #

def _layer_norm(x, gamma, beta, eps=1e-5):
    mu = jnp.mean(x, axis=-1, keepdims=True)
    xc = x - mu
    var = jnp.mean(xc * xc, axis=-1, keepdims=True)
    return xc * jax.lax.rsqrt(var + eps) * gamma + beta


def _fused_encoder_kernel(n_module, n_head, d_k, d_v, bb, seq_len, fast_heads, *refs):
    # refs layout: x2, fc_w, fc_b, pe_tiled, pool, [5 packed refs per layer]*n_module, out
    x_ref, fcw_ref, fcb_ref, pe_ref, pool_ref = refs[:5]
    layer_refs = refs[5:5 + 5 * n_module]
    out_ref = refs[-1]

    T = seq_len
    HDK = n_head * d_k
    HDV = n_head * d_v
    WQKV = 2 * HDK + HDV

    # Linear(2 -> D) on the VPU (a K=2 contraction would pay full MXU push/drain latency),
    # then ReLU and the (pre-tiled) sinusoid positional encoding.
    x = x_ref[...]                                                        # (bb*T, 2)
    h = x[:, 0:1] * fcw_ref[0:1, :] + x[:, 1:2] * fcw_ref[1:2, :] + fcb_ref[...]
    h = jnp.maximum(h, 0.0) + pe_ref[...]                                 # (bb*T, D)

    for l in range(n_module):                                             # unrolled layers
        wqkv_ref, wo_ref, w1_ref, w2_ref, vec_ref = layer_refs[5 * l:5 * (l + 1)]
        D = wo_ref.shape[1]
        F = w1_ref.shape[1]

        # per-layer vector slab rows: [b_qkv, b_o, ln1_g, ln1_b, b_ff1, b_ff2, ln2_g, ln2_b]
        b_qkv = vec_ref[0:1, :WQKV]
        b_o = vec_ref[1:2, :D]
        g1 = vec_ref[2:3, :D]
        be1 = vec_ref[3:4, :D]
        b_f1 = vec_ref[4:5, :F]
        b_f2 = vec_ref[5:6, :D]
        g2 = vec_ref[6:7, :D]
        be2 = vec_ref[7:8, :D]

        # fused Q|K|V projection: ONE (bb*T, D) @ (D, 2*H*dk + H*dv) matmul.
        # 1/sqrt(d_k) is already folded into the Q columns host-side.
        qkv = jnp.dot(h, wqkv_ref[...], preferred_element_type=jnp.float32) + b_qkv

        o_parts = []
        for b in range(bb):                                               # tiny static loop
            qkv_b = qkv[b * T:(b + 1) * T, :]                             # aligned sublane slice
            if fast_heads:
                # single reshape + swapaxes per tensor: no per-head lane slices / concat
                q3 = jnp.swapaxes(qkv_b[:, :HDK].reshape(T, n_head, d_k), 0, 1)
                k3 = jnp.swapaxes(qkv_b[:, HDK:2 * HDK].reshape(T, n_head, d_k), 0, 1)
                v3 = jnp.swapaxes(qkv_b[:, 2 * HDK:WQKV].reshape(T, n_head, d_v), 0, 1)
            else:
                # fallback (always lowers): per-head lane slices + stack
                q3 = jnp.stack([qkv_b[:, i * d_k:(i + 1) * d_k]
                                for i in range(n_head)], 0)
                k3 = jnp.stack([qkv_b[:, HDK + i * d_k:HDK + (i + 1) * d_k]
                                for i in range(n_head)], 0)
                v3 = jnp.stack([qkv_b[:, 2 * HDK + i * d_v:2 * HDK + (i + 1) * d_v]
                                for i in range(n_head)], 0)

            # head-batched attention: (H, T, T) scores, softmax, (H, T, dv) context
            s = jnp.einsum('hqd,hkd->hqk', q3, k3, preferred_element_type=jnp.float32)
            s = s - jnp.max(s, axis=-1, keepdims=True)
            p = jnp.exp(s)
            # approx reciprocal goes to the EUP slot; fine under the 5e-2 tolerance
            p = p * pl.reciprocal(jnp.sum(p, axis=-1, keepdims=True), approx=True)
            o3 = jnp.einsum('hqk,hkd->hqd', p, v3, preferred_element_type=jnp.float32)

            if fast_heads:
                o_parts.append(jnp.swapaxes(o3, 0, 1).reshape(T, HDV))
            else:
                o_parts.append(jnp.concatenate([o3[i] for i in range(n_head)], axis=-1))
        o = o_parts[0] if bb == 1 else jnp.concatenate(o_parts, axis=0)   # (bb*T, H*dv)

        attn = jnp.dot(o, wo_ref[...], preferred_element_type=jnp.float32) + b_o
        h = _layer_norm(h + attn, g1, be1)                                # residual + LN

        f = jnp.maximum(
            jnp.dot(h, w1_ref[...], preferred_element_type=jnp.float32) + b_f1, 0.0)
        f = jnp.dot(f, w2_ref[...], preferred_element_type=jnp.float32) + b_f2
        h = _layer_norm(h + f, g2, be2)                                   # residual + LN

    # adaptive average pool over T -> 8 rows, as an (8, T) averaging matmul per batch row
    for b in range(bb):
        out_ref[b] = jnp.dot(pool_ref[...], h[b * T:(b + 1) * T, :],
                             preferred_element_type=jnp.float32)


# --------------------- probe: is the fast head split lowerable? -------------- #

_FAST_HEAD_SPLIT_CACHE = {}


def fast_head_split_supported(seq_len, n_head, d_k):
    """Compile + numerically check a tiny kernel using reshape+swapaxes head split."""
    key = (int(seq_len), int(n_head), int(d_k))
    if key in _FAST_HEAD_SPLIT_CACHE:
        return _FAST_HEAD_SPLIT_CACHE[key]
    T, H, dk = key

    def probe_kernel(x_ref, o_ref):
        q3 = jnp.swapaxes(x_ref[...].reshape(T, H, dk), 0, 1)             # split heads
        s = jnp.einsum('hqd,hkd->hqk', q3, q3, preferred_element_type=jnp.float32)
        o3 = jnp.einsum('hqk,hkd->hqd', s, q3, preferred_element_type=jnp.float32)
        o_ref[...] = jnp.swapaxes(o3, 0, 1).reshape(T, H * dk)            # merge heads

    ok = False
    try:
        xs = ((np.arange(T * H * dk, dtype=np.float32) % 13.0) * 0.05 - 0.3)
        xs = xs.reshape(T, H * dk)
        out = pl.pallas_call(
            probe_kernel,
            out_shape=jax.ShapeDtypeStruct((T, H * dk), jnp.float32),
        )(jnp.asarray(xs))
        out = np.asarray(jax.block_until_ready(out))
        q3 = np.swapaxes(xs.reshape(T, H, dk), 0, 1)
        s = np.einsum('hqd,hkd->hqk', q3, q3)
        o3 = np.einsum('hqk,hkd->hqd', s, q3)
        ref = np.swapaxes(o3, 0, 1).reshape(T, H * dk)
        ok = bool(np.max(np.abs(out - ref)) <= 1e-3 * (1.0 + np.max(np.abs(ref))))
    except Exception:
        ok = False
    _FAST_HEAD_SPLIT_CACHE[key] = ok
    return ok


# ----------------------------- wrapper -------------------------------------- #

def _tensorcores_per_device():
    try:
        return max(1, int(getattr(jax.devices()[0], "num_cores", 1) or 1))
    except Exception:
        return 1


def _pack_layer(lp, d_k):
    """Host-side packing: fused Q|K|V weights (with 1/sqrt(d_k) folded into Q) and one
    (8, K) row slab holding all per-layer vectors (biases + LN gamma/beta)."""
    (wq, bq, wk, bk, wv, bv, wo, bo, g1, be1, w1, b1, w2, b2, g2, be2) = lp
    scale = 1.0 / np.sqrt(float(d_k))
    wqkv = jnp.concatenate([wq * scale, wk, wv], axis=1)
    bqkv = jnp.concatenate([bq * scale, bk, bv], axis=1)
    vw = max(bqkv.shape[1], b1.shape[1], bo.shape[1])

    def row(v):
        return jnp.pad(v, ((0, 0), (0, vw - v.shape[1])))

    vec = jnp.concatenate([row(bqkv), row(bo), row(g1), row(be1),
                           row(b1), row(b2), row(g2), row(be2)], axis=0)   # (8, vw)
    return wqkv, wo, w1, w2, vec


def encoder_transformer_forward(x, params, pe, pool_mat, n_head, d_k, d_v,
                                batch_block=None, fast_heads=None):
    (fc_w, fc_b), layers = params
    B, T, _ = x.shape
    D = fc_w.shape[1]
    n_module = len(layers)
    P = pool_mat.shape[0]

    # --- batch folding: fold everything on single-TC chips, split across cores on v7x ---
    if batch_block is None:
        cores = _tensorcores_per_device()
        batch_block = (B // cores) if (cores > 1 and B % cores == 0) else B
    assert B % batch_block == 0, (B, batch_block)
    bb = batch_block

    # --- head-split strategy (probed once; falls back to the proven slice+stack path) ---
    if fast_heads is None:
        fast_heads = fast_head_split_supported(T, n_head, d_k)
        if fast_heads and d_v != d_k:
            fast_heads = fast_head_split_supported(T, n_head, d_v)

    # --- host-side packing / hoisting (done outside the kernel) ---
    x2 = x.reshape(B * T, 2)
    pe_t = jnp.tile(pe, (bb, 1))                       # (bb*T, D), tiled once on host
    flat_layer_args = []
    for lp in layers:
        flat_layer_args.extend(_pack_layer(lp, d_k))

    const2d = lambda shape: pl.BlockSpec(shape, lambda g: (0, 0))
    in_specs = [
        pl.BlockSpec((bb * T, 2), lambda g: (g, 0)),   # bb batch rows per grid step
        const2d(fc_w.shape), const2d(fc_b.shape),
        const2d(pe_t.shape), const2d(pool_mat.shape),
    ] + [const2d(a.shape) for a in flat_layer_args]

    args = (x2, fc_w, fc_b, pe_t, pool_mat, *flat_layer_args)

    def run(fast):
        kernel = functools.partial(_fused_encoder_kernel,
                                   n_module, n_head, d_k, d_v, bb, T, fast)
        return pl.pallas_call(
            kernel,
            out_shape=jax.ShapeDtypeStruct((B, P, D), jnp.float32),
            grid=(B // bb,),
            in_specs=in_specs,
            out_specs=pl.BlockSpec((bb, P, D), lambda g: (g, 0, 0)),
            compiler_params=pltpu.CompilerParams(
                dimension_semantics=("parallel",),
                # explicit scoped-VMEM budget (defaults are 16/32 MiB; toy size needs <1 MiB,
                # re-derive against the 64 MiB v7x physical budget if scaled up)
                vmem_limit_bytes=32 * 1024 * 1024,
            ),
        )(*args)

    if fast_heads:
        try:
            return run(True)
        except Exception:
            return run(False)
    return run(False)


# ----------------------------- glue: params, PE, pool ----------------------- #

def sinusoid_encoding_table(n_position, d_model):
    pos = np.arange(n_position)[:, None].astype(np.float64)
    idx = np.arange(d_model)[None, :]
    angle = pos / np.power(10000.0, 2.0 * (idx // 2) / d_model)
    table = np.zeros((n_position, d_model), np.float32)
    table[:, 0::2] = np.sin(angle[:, 0::2])
    table[:, 1::2] = np.cos(angle[:, 1::2])
    return jnp.asarray(table)


def adaptive_pool_matrix(t_in, t_out):
    # exact torch AdaptiveAvgPool semantics: bin i = mean over [floor(i*T/t_out), ceil((i+1)*T/t_out))
    p = np.zeros((t_out, t_in), np.float32)
    for i in range(t_out):
        s = (i * t_in) // t_out
        e = -((-(i + 1) * t_in) // t_out)
        p[i, s:e] = 1.0 / (e - s)
    return jnp.asarray(p)


def _linear_init(key, fan_in, fan_out):
    bound = 1.0 / np.sqrt(fan_in)
    kw, kb = jax.random.split(key)
    w = jax.random.uniform(kw, (fan_in, fan_out), jnp.float32, -bound, bound)
    b = jax.random.uniform(kb, (1, fan_out), jnp.float32, -bound, bound)
    return w, b


def init_params(key, d_model, d_k, d_v, n_head, n_module, ff_size):
    kfc, key = jax.random.split(key)
    fc_w, fc_b = _linear_init(kfc, 2, d_model)
    layers = []
    for _ in range(n_module):
        ks = jax.random.split(key, 7)
        key = ks[0]
        wq, bq = _linear_init(ks[1], d_model, n_head * d_k)
        wk, bk = _linear_init(ks[2], d_model, n_head * d_k)
        wv, bv = _linear_init(ks[3], d_model, n_head * d_v)
        wo, bo = _linear_init(ks[4], n_head * d_v, d_model)
        w1, b1 = _linear_init(ks[5], d_model, ff_size)
        w2, b2 = _linear_init(ks[6], ff_size, d_model)
        g1 = jnp.ones((1, d_model), jnp.float32)
        be1 = jnp.zeros((1, d_model), jnp.float32)
        g2 = jnp.ones((1, d_model), jnp.float32)
        be2 = jnp.zeros((1, d_model), jnp.float32)
        layers.append((wq, bq, wk, bk, wv, bv, wo, bo, g1, be1, w1, b1, w2, b2, g2, be2))
    return (fc_w, fc_b), layers


# ----------------------------- pure-JAX reference --------------------------- #

def _ln_ref(x, gamma, beta, eps=1e-5):
    mu = jnp.mean(x, axis=-1, keepdims=True)
    var = jnp.mean((x - mu) ** 2, axis=-1, keepdims=True)
    return (x - mu) * jax.lax.rsqrt(var + eps) * gamma + beta


def reference_forward(x, params, pe, pool_mat, n_head, d_k, d_v):
    (fc_w, fc_b), layers = params
    B, T, _ = x.shape
    h = jnp.maximum(x @ fc_w + fc_b, 0.0) + pe[None]
    scale = 1.0 / np.sqrt(float(d_k))
    for (wq, bq, wk, bk, wv, bv, wo, bo, g1, be1, w1, b1, w2, b2, g2, be2) in layers:
        q = (h @ wq + bq).reshape(B, T, n_head, d_k).transpose(0, 2, 1, 3)
        k = (h @ wk + bk).reshape(B, T, n_head, d_k).transpose(0, 2, 1, 3)
        v = (h @ wv + bv).reshape(B, T, n_head, d_v).transpose(0, 2, 1, 3)
        s = jnp.einsum('bhqd,bhkd->bhqk', q, k) * scale
        p = jax.nn.softmax(s, axis=-1)
        o = jnp.einsum('bhqk,bhkd->bhqd', p, v).transpose(0, 2, 1, 3).reshape(B, T, n_head * d_v)
        h = _ln_ref(h + (o @ wo + bo), g1, be1)
        f = jnp.maximum(h @ w1 + b1, 0.0) @ w2 + b2
        h = _ln_ref(h + f, g2, be2)
    return jnp.einsum('ot,btd->bod', pool_mat, h)


# ----------------------------- main ------------------------------------------ #

if __name__ == "__main__":
    B, T = 2, 16
    d_model, d_k, d_v, n_head, n_module, ff_size = 32, 8, 8, 8, 2, 64

    key = jax.random.PRNGKey(0)
    kx, kp = jax.random.split(key)
    x = jax.random.normal(kx, (B, T, 2), jnp.float32)   # (x, y) trajectory coordinates

    params = init_params(kp, d_model, d_k, d_v, n_head, n_module, ff_size)
    pe = sinusoid_encoding_table(T, d_model)             # hoisted: computed once
    pool_mat = adaptive_pool_matrix(T, 8)                # hoisted: computed once

    out = encoder_transformer_forward(x, params, pe, pool_mat,
                                      n_head=n_head, d_k=d_k, d_v=d_v)
    out = jax.block_until_ready(out)
    assert out.shape == (B, 8, d_model), out.shape
    assert bool(jnp.all(jnp.isfinite(out)))

    with jax.default_matmul_precision("float32"):
        ref = reference_forward(x, params, pe, pool_mat, n_head, d_k, d_v)
    max_err = float(jnp.max(jnp.abs(out - ref)))
    assert max_err < 5e-2, f"max abs error {max_err}"

    print("KERNEL_OK")
</pallas_src>

<mosaic_0001>
module attributes {stable_mosaic.version = 11 : i64} {
  func.func @probe_kernel(%arg0: memref<16x64xf32, #tpu.memory_space<vmem>>, %arg1: memref<16x64xf32, #tpu.memory_space<vmem>>) attributes {dimension_semantics = [], scalar_prefetch = 0 : i64, scratch_operands = 0 : i64, tpu.core_type = #tpu.core_type<tc>} {
    %c0 = arith.constant 0 : index
    %c0_0 = arith.constant 0 : index
    %0 = vector.load %arg0[%c0, %c0_0] : memref<16x64xf32, #tpu.memory_space<vmem>>, vector<16x64xf32>
    %1 = vector.shape_cast %0 : vector<16x64xf32> to vector<16x8x8xf32>
    %2 = tpu.transpose %1, [1, 0, 2] : vector<16x8x8xf32> -> vector<8x16x8xf32>
    "tpu.trace_start"() <{level = 10 : i32, message = "hqd,hkd->hqk"}> : () -> ()
    %cst = arith.constant dense<0.000000e+00> : vector<8x16x16xf32>
    %3 = tpu.matmul %2, %2, %cst {dimension_numbers = #tpu.dot_dimension_numbers<[2], [2], [1], [1], [0, 0, 0, 1, 1, 1], [0], [0]>} : vector<8x16x8xf32>, vector<8x16x8xf32>, vector<8x16x16xf32> -> vector<8x16x16xf32>
    "tpu.trace_stop"() : () -> ()
    "tpu.trace_start"() <{level = 10 : i32, message = "hqk,hkd->hqd"}> : () -> ()
    %cst_1 = arith.constant dense<0.000000e+00> : vector<8x16x8xf32>
    %4 = tpu.matmul %3, %2, %cst_1 {dimension_numbers = #tpu.dot_dimension_numbers<[2], [1], [1], [2], [0, 0, 0, 1, 1, 2], [0], [0]>} : vector<8x16x16xf32>, vector<8x16x8xf32>, vector<8x16x8xf32> -> vector<8x16x8xf32>
    "tpu.trace_stop"() : () -> ()
    %5 = tpu.transpose %4, [1, 0, 2] : vector<8x16x8xf32> -> vector<16x8x8xf32>
    %6 = vector.shape_cast %5 : vector<16x8x8xf32> to vector<16x64xf32>
    %c0_2 = arith.constant 0 : index
    %c0_3 = arith.constant 0 : index
    %7 = vector.load %arg1[%c0_2, %c0_3] : memref<16x64xf32, #tpu.memory_space<vmem>>, vector<16x64xf32>
    tpu.vector_store %arg1[%c0_2, %c0_3], %6 {strides = array<i32>} : memref<16x64xf32, #tpu.memory_space<vmem>>, vector<16x64xf32>,
    return
  }
}

module attributes {stable_mosaic.version = 11 : i64} {
  func.func @_fused_encoder_kernel(%arg0: i32, %arg1: memref<32x2xf32, #tpu.memory_space<vmem>>, %arg2: memref<2x32xf32, #tpu.memory_space<vmem>>, %arg3: memref<1x32xf32, #tpu.memory_space<vmem>>, %arg4: memref<32x32xf32, #tpu.memory_space<vmem>>, %arg5: memref<8x16xf32, #tpu.memory_space<vmem>>, %arg6: memref<32x192xf32, #tpu.memory_space<vmem>>, %arg7: memref<64x32xf32, #tpu.memory_space<vmem>>, %arg8: memref<32x64xf32, #tpu.memory_space<vmem>>, %arg9: memref<64x32xf32, #tpu.memory_space<vmem>>, %arg10: memref<8x192xf32, #tpu.memory_space<vmem>>, %arg11: memref<32x192xf32, #tpu.memory_space<vmem>>, %arg12: memref<64x32xf32, #tpu.memory_space<vmem>>, %arg13: memref<32x64xf32, #tpu.memory_space<vmem>>, %arg14: memref<64x32xf32, #tpu.memory_space<vmem>>, %arg15: memref<8x192xf32, #tpu.memory_space<vmem>>, %arg16: memref<2x8x32xf32, #tpu.memory_space<vmem>>) attributes {dimension_semantics = [#tpu.dimension_semantics<parallel>], iteration_bounds = array<i64: 1>, scalar_prefetch = 0 : i64, scratch_operands = 0 : i64, tpu.core_type = #tpu.core_type<tc>, window_params = [{transform_indices = @transform_0, window_bounds = array<i64: 32, 2>}, {pipeline_mode = #tpu.pipeline_mode<synchronous>, transform_indices = @transform_1, window_bounds = array<i64: 2, 32>}, {pipeline_mode = #tpu.pipeline_mode<synchronous>, transform_indices = @transform_2, window_bounds = array<i64: 1, 32>}, {pipeline_mode = #tpu.pipeline_mode<synchronous>, transform_indices = @transform_3, window_bounds = array<i64: 32, 32>}, {pipeline_mode = #tpu.pipeline_mode<synchronous>, transform_indices = @transform_4, window_bounds = array<i64: 8, 16>}, {pipeline_mode = #tpu.pipeline_mode<synchronous>, transform_indices = @transform_5, window_bounds = array<i64: 32, 192>}, {pipeline_mode = #tpu.pipeline_mode<synchronous>, transform_indices = @transform_6, window_bounds = array<i64: 64, 32>}, {pipeline_mode = #tpu.pipeline_mode<synchronous>, transform_indices = @transform_7, window_bounds = array<i64: 32, 64>}, {pipeline_mode = #tpu.pipeline_mode<synchronous>, transform_indices = @transform_8, window_bounds = array<i64: 64, 32>}, {pipeline_mode = #tpu.pipeline_mode<synchronous>, transform_indices = @transform_9, window_bounds = array<i64: 8, 192>}, {pipeline_mode = #tpu.pipeline_mode<synchronous>, transform_indices = @transform_10, window_bounds = array<i64: 32, 192>}, {pipeline_mode = #tpu.pipeline_mode<synchronous>, transform_indices = @transform_11, window_bounds = array<i64: 64, 32>}, {pipeline_mode = #tpu.pipeline_mode<synchronous>, transform_indices = @transform_12, window_bounds = array<i64: 32, 64>}, {pipeline_mode = #tpu.pipeline_mode<synchronous>, transform_indices = @transform_13, window_bounds = array<i64: 64, 32>}, {pipeline_mode = #tpu.pipeline_mode<synchronous>, transform_indices = @transform_14, window_bounds = array<i64: 8, 192>}, {transform_indices = @transform_15, window_bounds = array<i64: 2, 8, 32>}]} {
    %c0 = arith.constant 0 : index
    %c0_0 = arith.constant 0 : index
    %0 = vector.load %arg1[%c0, %c0_0] : memref<32x2xf32, #tpu.memory_space<vmem>>, vector<32x2xf32>
    %1 = vector.extract_strided_slice %0 {offsets = [0, 0], sizes = [32, 1], strides = [1, 1]} : vector<32x2xf32> to vector<32x1xf32>
    %c0_1 = arith.constant 0 : index
    %c0_2 = arith.constant 0 : index
    %2 = vector.load %arg2[%c0_1, %c0_2] : memref<2x32xf32, #tpu.memory_space<vmem>>, vector<1x32xf32>
    %3 = vector.broadcast %1 : vector<32x1xf32> to vector<32x32xf32>
    %4 = vector.broadcast %2 : vector<1x32xf32> to vector<32x32xf32>
    %5 = arith.mulf %3, %4 : vector<32x32xf32>
    %6 = vector.extract_strided_slice %0 {offsets = [0, 1], sizes = [32, 1], strides = [1, 1]} : vector<32x2xf32> to vector<32x1xf32>
    %c1 = arith.constant 1 : index
    %c0_3 = arith.constant 0 : index
    %7 = vector.load %arg2[%c1, %c0_3] : memref<2x32xf32, #tpu.memory_space<vmem>>, vector<1x32xf32>
    %8 = vector.broadcast %6 : vector<32x1xf32> to vector<32x32xf32>
    %9 = vector.broadcast %7 : vector<1x32xf32> to vector<32x32xf32>
    %10 = arith.mulf %8, %9 : vector<32x32xf32>
    %11 = arith.addf %5, %10 : vector<32x32xf32>
    %c0_4 = arith.constant 0 : index
    %c0_5 = arith.constant 0 : index
    %12 = vector.load %arg3[%c0_4, %c0_5] : memref<1x32xf32, #tpu.memory_space<vmem>>, vector<1x32xf32>
    %13 = vector.broadcast %12 : vector<1x32xf32> to vector<32x32xf32>
    %14 = arith.addf %11, %13 : vector<32x32xf32>
    %cst = arith.constant 0.000000e+00 : f32
    %15 = vector.broadcast %cst : f32 to vector<32x32xf32>
    %16 = arith.maximumf %14, %15 : vector<32x32xf32>
    %c0_6 = arith.constant 0 : index
    %c0_7 = arith.constant 0 : index
    %17 = vector.load %arg4[%c0_6, %c0_7] : memref<32x32xf32, #tpu.memory_space<vmem>>, vector<32x32xf32>
    %18 = arith.addf %16, %17 : vector<32x32xf32>
    %c0_8 = arith.constant 0 : index
    %c0_9 = arith.constant 0 : index
    %19 = vector.load %arg10[%c0_8, %c0_9] : memref<8x192xf32, #tpu.memory_space<vmem>>, vector<1x192xf32>
    %c1_10 = arith.constant 1 : index
    %c0_11 = arith.constant 0 : index
    %20 = vector.load %arg10[%c1_10, %c0_11] : memref<8x192xf32, #tpu.memory_space<vmem>>, vector<1x32xf32>
    %c2 = arith.constant 2 : index
    %c0_12 = arith.constant 0 : index
    %21 = vector.load %arg10[%c2, %c0_12] : memref<8x192xf32, #tpu.memory_space<vmem>>, vector<1x32xf32>
    %c3 = arith.constant 3 : index
    %c0_13 = arith.constant 0 : index
    %22 = vector.load %arg10[%c3, %c0_13] : memref<8x192xf32, #tpu.memory_space<vmem>>, vector<1x32xf32>
    %c4 = arith.constant 4 : index
    %c0_14 = arith.constant 0 : index
    %23 = vector.load %arg10[%c4, %c0_14] : memref<8x192xf32, #tpu.memory_space<vmem>>, vector<1x64xf32>
    %c5 = arith.constant 5 : index
    %c0_15 = arith.constant 0 : index
    %24 = vector.load %arg10[%c5, %c0_15] : memref<8x192xf32, #tpu.memory_space<vmem>>, vector<1x32xf32>
    %c6 = arith.constant 6 : index
    %c0_16 = arith.constant 0 : index
    %25 = vector.load %arg10[%c6, %c0_16] : memref<8x192xf32, #tpu.memory_space<vmem>>, vector<1x32xf32>
    %c7 = arith.constant 7 : index
    %c0_17 = arith.constant 0 : index
    %26 = vector.load %arg10[%c7, %c0_17] : memref<8x192xf32, #tpu.memory_space<vmem>>, vector<1x32xf32>
    %c0_18 = arith.constant 0 : index
    %c0_19 = arith.constant 0 : index
    %27 = vector.load %arg6[%c0_18, %c0_19] : memref<32x192xf32, #tpu.memory_space<vmem>>, vector<32x192xf32>
    %cst_20 = arith.constant dense<0.000000e+00> : vector<32x192xf32>
    %28 = tpu.matmul %18, %27, %cst_20 {dimension_numbers = #tpu.dot_dimension_numbers<[1], [0], [0], [1], [0, 0, 1, 1], [], []>} : vector<32x32xf32>, vector<32x192xf32>, vector<32x192xf32> -> vector<32x192xf32>
    %29 = vector.broadcast %19 : vector<1x192xf32> to vector<32x192xf32>
    %30 = arith.addf %28, %29 : vector<32x192xf32>
    %31 = vector.extract_strided_slice %30 {offsets = [0, 0], sizes = [16, 192], strides = [1, 1]} : vector<32x192xf32> to vector<16x192xf32>
    %32 = vector.extract_strided_slice %31 {offsets = [0, 0], sizes = [16, 8], strides = [1, 1]} : vector<16x192xf32> to vector<16x8xf32>
    %33 = vector.extract_strided_slice %31 {offsets = [0, 8], sizes = [16, 8], strides = [1, 1]} : vector<16x192xf32> to vector<16x8xf32>
    %34 = vector.extract_strided_slice %31 {offsets = [0, 16], sizes = [16, 8], strides = [1, 1]} : vector<16x192xf32> to vector<16x8xf32>
    %35 = vector.extract_strided_slice %31 {offsets = [0, 24], sizes = [16, 8], strides = [1, 1]} : vector<16x192xf32> to vector<16x8xf32>
    %36 = vector.extract_strided_slice %31 {offsets = [0, 32], sizes = [16, 8], strides = [1, 1]} : vector<16x192xf32> to vector<16x8xf32>
    %37 = vector.extract_strided_slice %31 {offsets = [0, 40], sizes = [16, 8], strides = [1, 1]} : vector<16x192xf32> to vector<16x8xf32>
    %38 = vector.extract_strided_slice %31 {offsets = [0, 48], sizes = [16, 8], strides = [1, 1]} : vector<16x192xf32> to vector<16x8xf32>
    %39 = vector.extract_strided_slice %31 {offsets = [0, 56], sizes = [16, 8], strides = [1, 1]} : vector<16x192xf32> to vector<16x8xf32>
    %40 = vector.shape_cast %32 : vector<16x8xf32> to vector<1x16x8xf32>
    %41 = vector.shape_cast %33 : vector<16x8xf32> to vector<1x16x8xf32>
    %42 = vector.shape_cast %34 : vector<16x8xf32> to vector<1x16x8xf32>
    %43 = vector.shape_cast %35 : vector<16x8xf32> to vector<1x16x8xf32>
    %44 = vector.shape_cast %36 : vector<16x8xf32> to vector<1x16x8xf32>
    %45 = vector.shape_cast %37 : vector<16x8xf32> to vector<1x16x8xf32>
    %46 = vector.shape_cast %38 : vector<16x8xf32> to vector<1x16x8xf32>
    %47 = vector.shape_cast %39 : vector<16x8xf32> to vector<1x16x8xf32>
    %48 = tpu.concatenate %40, %41, %42, %43, %44, %45, %46, %47 in 0 : vector<1x16x8xf32>, vector<1x16x8xf32>, vector<1x16x8xf32>, vector<1x16x8xf32>, vector<1x16x8xf32>, vector<1x16x8xf32>, vector<1x16x8xf32>, vector<1x16x8xf32> -> vector<8x16x8xf32>
    %49 = vector.extract_strided_slice %31 {offsets = [0, 64], sizes = [16, 8], strides = [1, 1]} : vector<16x192xf32> to vector<16x8xf32>
    %50 = vector.extract_strided_slice %31 {offsets = [0, 72], sizes = [16, 8], strides = [1, 1]} : vector<16x192xf32> to vector<16x8xf32>
    %51 = vector.extract_strided_slice %31 {offsets = [0, 80], sizes = [16, 8], strides = [1, 1]} : vector<16x192xf32> to vector<16x8xf32>
    %52 = vector.extract_strided_slice %31 {offsets = [0, 88], sizes = [16, 8], strides = [1, 1]} : vector<16x192xf32> to vector<16x8xf32>
    %53 = vector.extract_strided_slice %31 {offsets = [0, 96], sizes = [16, 8], strides = [1, 1]} : vector<16x192xf32> to vector<16x8xf32>
    %54 = vector.extract_strided_slice %31 {offsets = [0, 104], sizes = [16, 8], strides = [1, 1]} : vector<16x192xf32> to vector<16x8xf32>
    %55 = vector.extract_strided_slice %31 {offsets = [0, 112], sizes = [16, 8], strides = [1, 1]} : vector<16x192xf32> to vector<16x8xf32>
    %56 = vector.extract_strided_slice %31 {offsets = [0, 120], sizes = [16, 8], strides = [1, 1]} : vector<16x192xf32> to vector<16x8xf32>
    %57 = vector.shape_cast %49 : vector<16x8xf32> to vector<1x16x8xf32>
    %58 = vector.shape_cast %50 : vector<16x8xf32> to vector<1x16x8xf32>
    %59 = vector.shape_cast %51 : vector<16x8xf32> to vector<1x16x8xf32>
    %60 = vector.shape_cast %52 : vector<16x8xf32> to vector<1x16x8xf32>
    %61 = vector.shape_cast %53 : vector<16x8xf32> to vector<1x16x8xf32>
    %62 = vector.shape_cast %54 : vector<16x8xf32> to vector<1x16x8xf32>
    %63 = vector.shape_cast %55 : vector<16x8xf32> to vector<1x16x8xf32>
    %64 = vector.shape_cast %56 : vector<16x8xf32> to vector<1x16x8xf32>
    %65 = tpu.concatenate %57, %58, %59, %60, %61, %62, %63, %64 in 0 : vector<1x16x8xf32>, vector<1x16x8xf32>, vector<1x16x8xf32>, vector<1x16x8xf32>, vector<1x16x8xf32>, vector<1x16x8xf32>, vector<1x16x8xf32>, vector<1x16x8xf32> -> vector<8x16x8xf32>
    %66 = vector.extract_strided_slice %31 {offsets = [0, 128], sizes = [16, 8], strides = [1, 1]} : vector<16x192xf32> to vector<16x8xf32>
    %67 = vector.extract_strided_slice %31 {offsets = [0, 136], sizes = [16, 8], strides = [1, 1]} : vector<16x192xf32> to vector<16x8xf32>
    %68 = vector.extract_strided_slice %31 {offsets = [0, 144], sizes = [16, 8], strides = [1, 1]} : vector<16x192xf32> to vector<16x8xf32>
    %69 = vector.extract_strided_slice %31 {offsets = [0, 152], sizes = [16, 8], strides = [1, 1]} : vector<16x192xf32> to vector<16x8xf32>
    %70 = vector.extract_strided_slice %31 {offsets = [0, 160], sizes = [16, 8], strides = [1, 1]} : vector<16x192xf32> to vector<16x8xf32>
    %71 = vector.extract_strided_slice %31 {offsets = [0, 168], sizes = [16, 8], strides = [1, 1]} : vector<16x192xf32> to vector<16x8xf32>
    %72 = vector.extract_strided_slice %31 {offsets = [0, 176], sizes = [16, 8], strides = [1, 1]} : vector<16x192xf32> to vector<16x8xf32>
    %73 = vector.extract_strided_slice %31 {offsets = [0, 184], sizes = [16, 8], strides = [1, 1]} : vector<16x192xf32> to vector<16x8xf32>
    %74 = vector.shape_cast %66 : vector<16x8xf32> to vector<1x16x8xf32>
    %75 = vector.shape_cast %67 : vector<16x8xf32> to vector<1x16x8xf32>
    %76 = vector.shape_cast %68 : vector<16x8xf32> to vector<1x16x8xf32>
    %77 = vector.shape_cast %69 : vector<16x8xf32> to vector<1x16x8xf32>
    %78 = vector.shape_cast %70 : vector<16x8xf32> to vector<1x16x8xf32>
    %79 = vector.shape_cast %71 : vector<16x8xf32> to vector<1x16x8xf32>
    %80 = vector.shape_cast %72 : vector<16x8xf32> to vector<1x16x8xf32>
    %81 = vector.shape_cast %73 : vector<16x8xf32> to vector<1x16x8xf32>
    %82 = tpu.concatenate %74, %75, %76, %77, %78, %79, %80, %81 in 0 : vector<1x16x8xf32>, vector<1x16x8xf32>, vector<1x16x8xf32>, vector<1x16x8xf32>, vector<1x16x8xf32>, vector<1x16x8xf32>, vector<1x16x8xf32>, vector<1x16x8xf32> -> vector<8x16x8xf32>
    "tpu.trace_start"() <{level = 10 : i32, message = "hqd,hkd->hqk"}> : () -> ()
    %cst_21 = arith.constant dense<0.000000e+00> : vector<8x16x16xf32>
    %83 = tpu.matmul %48, %65, %cst_21 {dimension_numbers = #tpu.dot_dimension_numbers<[2], [2], [1], [1], [0, 0, 0, 1, 1, 1], [0], [0]>} : vector<8x16x8xf32>, vector<8x16x8xf32>, vector<8x16x16xf32> -> vector<8x16x16xf32>
    "tpu.trace_stop"() : () -> ()
    %cst_22 = arith.constant dense<0xFF800000> : vector<8x16xf32>
    %84 = vector.multi_reduction <maximumf>, %83, %cst_22 [2] : vector<8x16x16xf32> to vector<8x16xf32>
    %85 = vector.shape_cast %84 : vector<8x16xf32> to vector<8x16x1xf32>
    %86 = vector.broadcast %85 : vector<8x16x1xf32> to vector<8x16x16xf32>
    %87 = arith.subf %83, %86 : vector<8x16x16xf32>
    %88 = math.exp %87 : vector<8x16x16xf32>
    %cst_23 = arith.constant dense<0.000000e+00> : vector<8x16xf32>
    %89 = vector.multi_reduction <add>, %88, %cst_23 [2] : vector<8x16x16xf32> to vector<8x16xf32>
    %90 = vector.shape_cast %89 : vector<8x16xf32> to vector<8x16x1xf32>
    %91 = tpu.reciprocal %90 {approx = true} : vector<8x16x1xf32> -> vector<8x16x1xf32>
    %92 = vector.broadcast %91 : vector<8x16x1xf32> to vector<8x16x16xf32>
    %93 = arith.mulf %88, %92 : vector<8x16x16xf32>
    "tpu.trace_start"() <{level = 10 : i32, message = "hqk,hkd->hqd"}> : () -> ()
    %cst_24 = arith.constant dense<0.000000e+00> : vector<8x16x8xf32>
    %94 = tpu.matmul %93, %82, %cst_24 {dimension_numbers = #tpu.dot_dimension_numbers<[2], [1], [1], [2], [0, 0, 0, 1, 1, 2], [0], [0]>} : vector<8x16x16xf32>, vector<8x16x8xf32>, vector<8x16x8xf32> -> vector<8x16x8xf32>
    "tpu.trace_stop"() : () -> ()
    %95 = vector.extract_strided_slice %94 {offsets = [0, 0, 0], sizes = [1, 16, 8], strides = [1, 1, 1]} : vector<8x16x8xf32> to vector<1x16x8xf32>
    %96 = vector.shape_cast %95 : vector<1x16x8xf32> to vector<16x8xf32>
    %97 = vector.extract_strided_slice %94 {offsets = [1, 0, 0], sizes = [1, 16, 8], strides = [1, 1, 1]} : vector<8x16x8xf32> to vector<1x16x8xf32>
    %98 = vector.shape_cast %97 : vector<1x16x8xf32> to vector<16x8xf32>
    %99 = vector.extract_strided_slice %94 {offsets = [2, 0, 0], sizes = [1, 16, 8], strides = [1, 1, 1]} : vector<8x16x8xf32> to vector<1x16x8xf32>
    %100 = vector.shape_cast %99 : vector<1x16x8xf32> to vector<16x8xf32>
    %101 = vector.extract_strided_slice %94 {offsets = [3, 0, 0], sizes = [1, 16, 8], strides = [1, 1, 1]} : vector<8x16x8xf32> to vector<1x16x8xf32>
    %102 = vector.shape_cast %101 : vector<1x16x8xf32> to vector<16x8xf32>
    %103 = vector.extract_strided_slice %94 {offsets = [4, 0, 0], sizes = [1, 16, 8], strides = [1, 1, 1]} : vector<8x16x8xf32> to vector<1x16x8xf32>
    %104 = vector.shape_cast %103 : vector<1x16x8xf32> to vector<16x8xf32>
    %105 = vector.extract_strided_slice %94 {offsets = [5, 0, 0], sizes = [1, 16, 8], strides = [1, 1, 1]} : vector<8x16x8xf32> to vector<1x16x8xf32>
    %106 = vector.shape_cast %105 : vector<1x16x8xf32> to vector<16x8xf32>
    %107 = vector.extract_strided_slice %94 {offsets = [6, 0, 0], sizes = [1, 16, 8], strides = [1, 1, 1]} : vector<8x16x8xf32> to vector<1x16x8xf32>
    %108 = vector.shape_cast %107 : vector<1x16x8xf32> to vector<16x8xf32>
    %109 = vector.extract_strided_slice %94 {offsets = [7, 0, 0], sizes = [1, 16, 8], strides = [1, 1, 1]} : vector<8x16x8xf32> to vector<1x16x8xf32>
    %110 = vector.shape_cast %109 : vector<1x16x8xf32> to vector<16x8xf32>
    %111 = tpu.concatenate %96, %98, %100, %102, %104, %106, %108, %110 in 1 : vector<16x8xf32>, vector<16x8xf32>, vector<16x8xf32>, vector<16x8xf32>, vector<16x8xf32>, vector<16x8xf32>, vector<16x8xf32>, vector<16x8xf32> -> vector<16x64xf32>
    %112 = vector.extract_strided_slice %30 {offsets = [16, 0], sizes = [16, 192], strides = [1, 1]} : vector<32x192xf32> to vector<16x192xf32>
    %113 = vector.extract_strided_slice %112 {offsets = [0, 0], sizes = [16, 8], strides = [1, 1]} : vector<16x192xf32> to vector<16x8xf32>
    %114 = vector.extract_strided_slice %112 {offsets = [0, 8], sizes = [16, 8], strides = [1, 1]} : vector<16x192xf32> to vector<16x8xf32>
    %115 = vector.extract_strided_slice %112 {offsets = [0, 16], sizes = [16, 8], strides = [1, 1]} : vector<16x192xf32> to vector<16x8xf32>
    %116 = vector.extract_strided_slice %112 {offsets = [0, 24], sizes = [16, 8], strides = [1, 1]} : vector<16x192xf32> to vector<16x8xf32>
    %117 = vector.extract_strided_slice %112 {offsets = [0, 32], sizes = [16, 8], strides = [1, 1]} : vector<16x192xf32> to vector<16x8xf32>
    %118 = vector.extract_strided_slice %112 {offsets = [0, 40], sizes = [16, 8], strides = [1, 1]} : vector<16x192xf32> to vector<16x8xf32>
    %119 = vector.extract_strided_slice %112 {offsets = [0, 48], sizes = [16, 8], strides = [1, 1]} : vector<16x192xf32> to vector<16x8xf32>
    %120 = vector.extract_strided_slice %112 {offsets = [0, 56], sizes = [16, 8], strides = [1, 1]} : vector<16x192xf32> to vector<16x8xf32>
    %121 = vector.shape_cast %113 : vector<16x8xf32> to vector<1x16x8xf32>
    %122 = vector.shape_cast %114 : vector<16x8xf32> to vector<1x16x8xf32>
    %123 = vector.shape_cast %115 : vector<16x8xf32> to vector<1x16x8xf32>
    %124 = vector.shape_cast %116 : vector<16x8xf32> to vector<1x16x8xf32>
    %125 = vector.shape_cast %117 : vector<16x8xf32> to vector<1x16x8xf32>
    %126 = vector.shape_cast %118 : vector<16x8xf32> to vector<1x16x8xf32>
    %127 = vector.shape_cast %119 : vector<16x8xf32> to vector<1x16x8xf32>
    %128 = vector.shape_cast %120 : vector<16x8xf32> to vector<1x16x8xf32>
    %129 = tpu.concatenate %121, %122, %123, %124, %125, %126, %127, %128 in 0 : vector<1x16x8xf32>, vector<1x16x8xf32>, vector<1x16x8xf32>, vector<1x16x8xf32>, vector<1x16x8xf32>, vector<1x16x8xf32>, vector<1x16x8xf32>, vector<1x16x8xf32> -> vector<8x16x8xf32>
    %130 = vector.extract_strided_slice %112 {offsets = [0, 64], sizes = [16, 8], strides = [1, 1]} : vector<16x192xf32> to vector<16x8xf32>
    %131 = vector.extract_strided_slice %112 {offsets = [0, 72], sizes = [16, 8], strides = [1, 1]} : vector<16x192xf32> to vector<16x8xf32>
    %132 = vector.extract_strided_slice %112 {offsets = [0, 80], sizes = [16, 8], strides = [1, 1]} : vector<16x192xf32> to vector<16x8xf32>
    %133 = vector.extract_strided_slice %112 {offsets = [0, 88], sizes = [16, 8], strides = [1, 1]} : vector<16x192xf32> to vector<16x8xf32>
    %134 = vector.extract_strided_slice %112 {offsets = [0, 96], sizes = [16, 8], strides = [1, 1]} : vector<16x192xf32> to vector<16x8xf32>
    %135 = vector.extract_strided_slice %112 {offsets = [0, 104], sizes = [16, 8], strides = [1, 1]} : vector<16x192xf32> to vector<16x8xf32>
    %136 = vector.extract_strided_slice %112 {offsets = [0, 112], sizes = [16, 8], strides = [1, 1]} : vector<16x192xf32> to vector<16x8xf32>
    %137 = vector.extract_strided_slice %112 {offsets = [0, 120], sizes = [16, 8], strides = [1, 1]} : vector<16x192xf32> to vector<16x8xf32>
    %138 = vector.shape_cast %130 : vector<16x8xf32> to vector<1x16x8xf32>
    %139 = vector.shape_cast %131 : vector<16x8xf32> to vector<1x16x8xf32>
    %140 = vector.shape_cast %132 : vector<16x8xf32> to vector<1x16x8xf32>
    %141 = vector.shape_cast %133 : vector<16x8xf32> to vector<1x16x8xf32>
    %142 = vector.shape_cast %134 : vector<16x8xf32> to vector<1x16x8xf32>
    %143 = vector.shape_cast %135 : vector<16x8xf32> to vector<1x16x8xf32>
    %144 = vector.shape_cast %136 : vector<16x8xf32> to vector<1x16x8xf32>
    %145 = vector.shape_cast %137 : vector<16x8xf32> to vector<1x16x8xf32>
    %146 = tpu.concatenate %138, %139, %140, %141, %142, %143, %144, %145 in 0 : vector<1x16x8xf32>, vector<1x16x8xf32>, vector<1x16x8xf32>, vector<1x16x8xf32>, vector<1x16x8xf32>, vector<1x16x8xf32>, vector<1x16x8xf32>, vector<1x16x8xf32> -> vector<8x16x8xf32>
    %147 = vector.extract_strided_slice %112 {offsets = [0, 128], sizes = [16, 8], strides = [1, 1]} : vector<16x192xf32> to vector<16x8xf32>
    %148 = vector.extract_strided_slice %112 {offsets = [0, 136], sizes = [16, 8], strides = [1, 1]} : vector<16x192xf32> to vector<16x8xf32>
    %149 = vector.extract_strided_slice %112 {offsets = [0, 144], sizes = [16, 8], strides = [1, 1]} : vector<16x192xf32> to vector<16x8xf32>
    %150 = vector.extract_strided_slice %112 {offsets = [0, 152], sizes = [16, 8], strides = [1, 1]} : vector<16x192xf32> to vector<16x8xf32>
    %151 = vector.extract_strided_slice %112 {offsets = [0, 160], sizes = [16, 8], strides = [1, 1]} : vector<16x192xf32> to vector<16x8xf32>
    %152 = vector.extract_strided_slice %112 {offsets = [0, 168], sizes = [16, 8], strides = [1, 1]} : vector<16x192xf32> to vector<16x8xf32>
    %153 = vector.extract_strided_slice %112 {offsets = [0, 176], sizes = [16, 8], strides = [1, 1]} : vector<16x192xf32> to vector<16x8xf32>
    %154 = vector.extract_strided_slice %112 {offsets = [0, 184], sizes = [16, 8], strides = [1, 1]} : vector<16x192xf32> to vector<16x8xf32>
    %155 = vector.shape_cast %147 : vector<16x8xf32> to vector<1x16x8xf32>
    %156 = vector.shape_cast %148 : vector<16x8xf32> to vector<1x16x8xf32>
    %157 = vector.shape_cast %149 : vector<16x8xf32> to vector<1x16x8xf32>
    %158 = vector.shape_cast %150 : vector<16x8xf32> to vector<1x16x8xf32>
    %159 = vector.shape_cast %151 : vector<16x8xf32> to vector<1x16x8xf32>
    %160 = vector.shape_cast %152 : vector<16x8xf32> to vector<1x16x8xf32>
    %161 = vector.shape_cast %153 : vector<16x8xf32> to vector<1x16x8xf32>
    %162 = vector.shape_cast %154 : vector<16x8xf32> to vector<1x16x8xf32>
    %163 = tpu.concatenate %155, %156, %157, %158, %159, %160, %161, %162 in 0 : vector<1x16x8xf32>, vector<1x16x8xf32>, vector<1x16x8xf32>, vector<1x16x8xf32>, vector<1x16x8xf32>, vector<1x16x8xf32>, vector<1x16x8xf32>, vector<1x16x8xf32> -> vector<8x16x8xf32>
    "tpu.trace_start"() <{level = 10 : i32, message = "hqd,hkd->hqk"}> : () -> ()
    %cst_25 = arith.constant dense<0.000000e+00> : vector<8x16x16xf32>
    %164 = tpu.matmul %129, %146, %cst_25 {dimension_numbers = #tpu.dot_dimension_numbers<[2], [2], [1], [1], [0, 0, 0, 1, 1, 1], [0], [0]>} : vector<8x16x8xf32>, vector<8x16x8xf32>, vector<8x16x16xf32> -> vector<8x16x16xf32>
    "tpu.trace_stop"() : () -> ()
    %cst_26 = arith.constant dense<0xFF800000> : vector<8x16xf32>
    %165 = vector.multi_reduction <maximumf>, %164, %cst_26 [2] : vector<8x16x16xf32> to vector<8x16xf32>
    %166 = vector.shape_cast %165 : vector<8x16xf32> to vector<8x16x1xf32>
    %167 = vector.broadcast %166 : vector<8x16x1xf32> to vector<8x16x16xf32>
    %168 = arith.subf %164, %167 : vector<8x16x16xf32>
    %169 = math.exp %168 : vector<8x16x16xf32>
    %cst_27 = arith.constant dense<0.000000e+00> : vector<8x16xf32>
    %170 = vector.multi_reduction <add>, %169, %cst_27 [2] : vector<8x16x16xf32> to vector<8x16xf32>
    %171 = vector.shape_cast %170 : vector<8x16xf32> to vector<8x16x1xf32>
    %172 = tpu.reciprocal %171 {approx = true} : vector<8x16x1xf32> -> vector<8x16x1xf32>
    %173 = vector.broadcast %172 : vector<8x16x1xf32> to vector<8x16x16xf32>
    %174 = arith.mulf %169, %173 : vector<8x16x16xf32>
    "tpu.trace_start"() <{level = 10 : i32, message = "hqk,hkd->hqd"}> : () -> ()
    %cst_28 = arith.constant dense<0.000000e+00> : vector<8x16x8xf32>
    %175 = tpu.matmul %174, %163, %cst_28 {dimension_numbers = #tpu.dot_dimension_numbers<[2], [1], [1], [2], [0, 0, 0, 1, 1, 2], [0], [0]>} : vector<8x16x16xf32>, vector<8x16x8xf32>, vector<8x16x8xf32> -> vector<8x16x8xf32>
    "tpu.trace_stop"() : () -> ()
    %176 = vector.extract_strided_slice %175 {offsets = [0, 0, 0], sizes = [1, 16, 8], strides = [1, 1, 1]} : vector<8x16x8xf32> to vector<1x16x8xf32>
    %177 = vector.shape_cast %176 : vector<1x16x8xf32> to vector<16x8xf32>
    %178 = vector.extract_strided_slice %175 {offsets = [1, 0, 0], sizes = [1, 16, 8], strides = [1, 1, 1]} : vector<8x16x8xf32> to vector<1x16x8xf32>
    %179 = vector.shape_cast %178 : vector<1x16x8xf32> to vector<16x8xf32>
    %180 = vector.extract_strided_slice %175 {offsets = [2, 0, 0], sizes = [1, 16, 8], strides = [1, 1, 1]} : vector<8x16x8xf32> to vector<1x16x8xf32>
    %181 = vector.shape_cast %180 : vector<1x16x8xf32> to vector<16x8xf32>
    %182 = vector.extract_strided_slice %175 {offsets = [3, 0, 0], sizes = [1, 16, 8], strides = [1, 1, 1]} : vector<8x16x8xf32> to vector<1x16x8xf32>
    %183 = vector.shape_cast %182 : vector<1x16x8xf32> to vector<16x8xf32>
    %184 = vector.extract_strided_slice %175 {offsets = [4, 0, 0], sizes = [1, 16, 8], strides = [1, 1, 1]} : vector<8x16x8xf32> to vector<1x16x8xf32>
    %185 = vector.shape_cast %184 : vector<1x16x8xf32> to vector<16x8xf32>
    %186 = vector.extract_strided_slice %175 {offsets = [5, 0, 0], sizes = [1, 16, 8], strides = [1, 1, 1]} : vector<8x16x8xf32> to vector<1x16x8xf32>
    %187 = vector.shape_cast %186 : vector<1x16x8xf32> to vector<16x8xf32>
    %188 = vector.extract_strided_slice %175 {offsets = [6, 0, 0], sizes = [1, 16, 8], strides = [1, 1, 1]} : vector<8x16x8xf32> to vector<1x16x8xf32>
    %189 = vector.shape_cast %188 : vector<1x16x8xf32> to vector<16x8xf32>
    %190 = vector.extract_strided_slice %175 {offsets = [7, 0, 0], sizes = [1, 16, 8], strides = [1, 1, 1]} : vector<8x16x8xf32> to vector<1x16x8xf32>
    %191 = vector.shape_cast %190 : vector<1x16x8xf32> to vector<16x8xf32>
    %192 = tpu.concatenate %177, %179, %181, %183, %185, %187, %189, %191 in 1 : vector<16x8xf32>, vector<16x8xf32>, vector<16x8xf32>, vector<16x8xf32>, vector<16x8xf32>, vector<16x8xf32>, vector<16x8xf32>, vector<16x8xf32> -> vector<16x64xf32>
    %193 = tpu.concatenate %111, %192 in 0 : vector<16x64xf32>, vector<16x64xf32> -> vector<32x64xf32>
    %c0_29 = arith.constant 0 : index
    %c0_30 = arith.constant 0 : index
    %194 = vector.load %arg7[%c0_29, %c0_30] : memref<64x32xf32, #tpu.memory_space<vmem>>, vector<64x32xf32>
    %cst_31 = arith.constant dense<0.000000e+00> : vector<32x32xf32>
    %195 = tpu.matmul %193, %194, %cst_31 {dimension_numbers = #tpu.dot_dimension_numbers<[1], [0], [0], [1], [0, 0, 1, 1], [], []>} : vector<32x64xf32>, vector<64x32xf32>, vector<32x32xf32> -> vector<32x32xf32>
    %196 = vector.broadcast %20 : vector<1x32xf32> to vector<32x32xf32>
    %197 = arith.addf %195, %196 : vector<32x32xf32>
    %198 = arith.addf %18, %197 : vector<32x32xf32>
    %cst_32 = arith.constant dense<0.000000e+00> : vector<32xf32>
    %199 = vector.multi_reduction <add>, %198, %cst_32 [1] : vector<32x32xf32> to vector<32xf32>
    %200 = vector.shape_cast %199 : vector<32xf32> to vector<32x1xf32>
    %cst_33 = arith.constant 3.200000e+01 : f32
    %201 = vector.broadcast %cst_33 : f32 to vector<32x1xf32>
    %202 = arith.divf %200, %201 : vector<32x1xf32>
    %203 = vector.broadcast %202 : vector<32x1xf32> to vector<32x32xf32>
    %204 = arith.subf %198, %203 : vector<32x32xf32>
    %205 = arith.mulf %204, %204 : vector<32x32xf32>
    %cst_34 = arith.constant dense<0.000000e+00> : vector<32xf32>
    %206 = vector.multi_reduction <add>, %205, %cst_34 [1] : vector<32x32xf32> to vector<32xf32>
    %207 = vector.shape_cast %206 : vector<32xf32> to vector<32x1xf32>
    %cst_35 = arith.constant 3.200000e+01 : f32
    %208 = vector.broadcast %cst_35 : f32 to vector<32x1xf32>
    %209 = arith.divf %207, %208 : vector<32x1xf32>
    %cst_36 = arith.constant 9.99999974E-6 : f32
    %210 = vector.broadcast %cst_36 : f32 to vector<32x1xf32>
    %211 = arith.addf %209, %210 : vector<32x1xf32>
    %212 = math.rsqrt %211 : vector<32x1xf32>
    %213 = vector.broadcast %212 : vector<32x1xf32> to vector<32x32xf32>
    %214 = arith.mulf %204, %213 : vector<32x32xf32>
    %215 = vector.broadcast %21 : vector<1x32xf32> to vector<32x32xf32>
    %216 = arith.mulf %214, %215 : vector<32x32xf32>
    %217 = vector.broadcast %22 : vector<1x32xf32> to vector<32x32xf32>
    %218 = arith.addf %216, %217 : vector<32x32xf32>
    %c0_37 = arith.constant 0 : index
    %c0_38 = arith.constant 0 : index
    %219 = vector.load %arg8[%c0_37, %c0_38] : memref<32x64xf32, #tpu.memory_space<vmem>>, vector<32x64xf32>
    %cst_39 = arith.constant dense<0.000000e+00> : vector<32x64xf32>
    %220 = tpu.matmul %218, %219, %cst_39 {dimension_numbers = #tpu.dot_dimension_numbers<[1], [0], [0], [1], [0, 0, 1, 1], [], []>} : vector<32x32xf32>, vector<32x64xf32>, vector<32x64xf32> -> vector<32x64xf32>
    %221 = vector.broadcast %23 : vector<1x64xf32> to vector<32x64xf32>
    %222 = arith.addf %220, %221 : vector<32x64xf32>
    %cst_40 = arith.constant 0.000000e+00 : f32
    %223 = vector.broadcast %cst_40 : f32 to vector<32x64xf32>
    %224 = arith.maximumf %222, %223 : vector<32x64xf32>
    %c0_41 = arith.constant 0 : index
    %c0_42 = arith.constant 0 : index
    %225 = vector.load %arg9[%c0_41, %c0_42] : memref<64x32xf32, #tpu.memory_space<vmem>>, vector<64x32xf32>
    %cst_43 = arith.constant dense<0.000000e+00> : vector<32x32xf32>
    %226 = tpu.matmul %224, %225, %cst_43 {dimension_numbers = #tpu.dot_dimension_numbers<[1], [0], [0], [1], [0, 0, 1, 1], [], []>} : vector<32x64xf32>, vector<64x32xf32>, vector<32x32xf32> -> vector<32x32xf32>
    %227 = vector.broadcast %24 : vector<1x32xf32> to vector<32x32xf32>
    %228 = arith.addf %226, %227 : vector<32x32xf32>
    %229 = arith.addf %218, %228 : vector<32x32xf32>
    %cst_44 = arith.constant dense<0.000000e+00> : vector<32xf32>
    %230 = vector.multi_reduction <add>, %229, %cst_44 [1] : vector<32x32xf32> to vector<32xf32>
    %231 = vector.shape_cast %230 : vector<32xf32> to vector<32x1xf32>
    %cst_45 = arith.constant 3.200000e+01 : f32
    %232 = vector.broadcast %cst_45 : f32 to vector<32x1xf32>
    %233 = arith.divf %231, %232 : vector<32x1xf32>
    %234 = vector.broadcast %233 : vector<32x1xf32> to vector<32x32xf32>
    %235 = arith.subf %229, %234 : vector<32x32xf32>
    %236 = arith.mulf %235, %235 : vector<32x32xf32>
    %cst_46 = arith.constant dense<0.000000e+00> : vector<32xf32>
    %237 = vector.multi_reduction <add>, %236, %cst_46 [1] : vector<32x32xf32> to vector<32xf32>
    %238 = vector.shape_cast %237 : vector<32xf32> to vector<32x1xf32>
    %cst_47 = arith.constant 3.200000e+01 : f32
    %239 = vector.broadcast %cst_47 : f32 to vector<32x1xf32>
    %240 = arith.divf %238, %239 : vector<32x1xf32>
    %cst_48 = arith.constant 9.99999974E-6 : f32
    %241 = vector.broadcast %cst_48 : f32 to vector<32x1xf32>
    %242 = arith.addf %240, %241 : vector<32x1xf32>
    %243 = math.rsqrt %242 : vector<32x1xf32>
    %244 = vector.broadcast %243 : vector<32x1xf32> to vector<32x32xf32>
    %245 = arith.mulf %235, %244 : vector<32x32xf32>
    %246 = vector.broadcast %25 : vector<1x32xf32> to vector<32x32xf32>
    %247 = arith.mulf %245, %246 : vector<32x32xf32>
    %248 = vector.broadcast %26 : vector<1x32xf32> to vector<32x32xf32>
    %249 = arith.addf %247, %248 : vector<32x32xf32>
    %c0_49 = arith.constant 0 : index
    %c0_50 = arith.constant 0 : index
    %250 = vector.load %arg15[%c0_49, %c0_50] : memref<8x192xf32, #tpu.memory_space<vmem>>, vector<1x192xf32>
    %c1_51 = arith.constant 1 : index
    %c0_52 = arith.constant 0 : index
    %251 = vector.load %arg15[%c1_51, %c0_52] : memref<8x192xf32, #tpu.memory_space<vmem>>, vector<1x32xf32>
    %c2_53 = arith.constant 2 : index
    %c0_54 = arith.constant 0 : index
    %252 = vector.load %arg15[%c2_53, %c0_54] : memref<8x192xf32, #tpu.memory_space<vmem>>, vector<1x32xf32>
    %c3_55 = arith.constant 3 : index
    %c0_56 = arith.constant 0 : index
    %253 = vector.load %arg15[%c3_55, %c0_56] : memref<8x192xf32, #tpu.memory_space<vmem>>, vector<1x32xf32>
    %c4_57 = arith.constant 4 : index
    %c0_58 = arith.constant 0 : index
    %254 = vector.load %arg15[%c4_57, %c0_58] : memref<8x192xf32, #tpu.memory_space<vmem>>, vector<1x64xf32>
    %c5_59 = arith.constant 5 : index
    %c0_60 = arith.constant 0 : index
    %255 = vector.load %arg15[%c5_59, %c0_60] : memref<8x192xf32, #tpu.memory_space<vmem>>, vector<1x32xf32>
    %c6_61 = arith.constant 6 : index
    %c0_62 = arith.constant 0 : index
    %256 = vector.load %arg15[%c6_61, %c0_62] : memref<8x192xf32, #tpu.memory_space<vmem>>, vector<1x32xf32>
    %c7_63 = arith.constant 7 : index
    %c0_64 = arith.constant 0 : index
    %257 = vector.load %arg15[%c7_63, %c0_64] : memref<8x192xf32, #tpu.memory_space<vmem>>, vector<1x32xf32>
    %c0_65 = arith.constant 0 : index
    %c0_66 = arith.constant 0 : index
    %258 = vector.load %arg11[%c0_65, %c0_66] : memref<32x192xf32, #tpu.memory_space<vmem>>, vector<32x192xf32>
    %cst_67 = arith.constant dense<0.000000e+00> : vector<32x192xf32>
    %259 = tpu.matmul %249, %258, %cst_67 {dimension_numbers = #tpu.dot_dimension_numbers<[1], [0], [0], [1], [0, 0, 1, 1], [], []>} : vector<32x32xf32>, vector<32x192xf32>, vector<32x192xf32> -> vector<32x192xf32>
    %260 = vector.broadcast %250 : vector<1x192xf32> to vector<32x192xf32>
    %261 = arith.addf %259, %260 : vector<32x192xf32>
    %262 = vector.extract_strided_slice %261 {offsets = [0, 0], sizes = [16, 192], strides = [1, 1]} : vector<32x192xf32> to vector<16x192xf32>
    %263 = vector.extract_strided_slice %262 {offsets = [0, 0], sizes = [16, 8], strides = [1, 1]} : vector<16x192xf32> to vector<16x8xf32>
    %264 = vector.extract_strided_slice %262 {offsets = [0, 8], sizes = [16, 8], strides = [1, 1]} : vector<16x192xf32> to vector<16x8xf32>
    %265 = vector.extract_strided_slice %262 {offsets = [0, 16], sizes = [16, 8], strides = [1, 1]} : vector<16x192xf32> to vector<16x8xf32>
    %266 = vector.extract_strided_slice %262 {offsets = [0, 24], sizes = [16, 8], strides = [1, 1]} : vector<16x192xf32> to vector<16x8xf32>
    %267 = vector.extract_strided_slice %262 {offsets = [0, 32], sizes = [16, 8], strides = [1, 1]} : vector<16x192xf32> to vector<16x8xf32>
    %268 = vector.extract_strided_slice %262 {offsets = [0, 40], sizes = [16, 8], strides = [1, 1]} : vector<16x192xf32> to vector<16x8xf32>
    %269 = vector.extract_strided_slice %262 {offsets = [0, 48], sizes = [16, 8], strides = [1, 1]} : vector<16x192xf32> to vector<16x8xf32>
    %270 = vector.extract_strided_slice %262 {offsets = [0, 56], sizes = [16, 8], strides = [1, 1]} : vector<16x192xf32> to vector<16x8xf32>
    %271 = vector.shape_cast %263 : vector<16x8xf32> to vector<1x16x8xf32>
    %272 = vector.shape_cast %264 : vector<16x8xf32> to vector<1x16x8xf32>
    %273 = vector.shape_cast %265 : vector<16x8xf32> to vector<1x16x8xf32>
    %274 = vector.shape_cast %266 : vector<16x8xf32> to vector<1x16x8xf32>
    %275 = vector.shape_cast %267 : vector<16x8xf32> to vector<1x16x8xf32>
    %276 = vector.shape_cast %268 : vector<16x8xf32> to vector<1x16x8xf32>
    %277 = vector.shape_cast %269 : vector<16x8xf32> to vector<1x16x8xf32>
    %278 = vector.shape_cast %270 : vector<16x8xf32> to vector<1x16x8xf32>
    %279 = tpu.concatenate %271, %272, %273, %274, %275, %276, %277, %278 in 0 : vector<1x16x8xf32>, vector<1x16x8xf32>, vector<1x16x8xf32>, vector<1x16x8xf32>, vector<1x16x8xf32>, vector<1x16x8xf32>, vector<1x16x8xf32>, vector<1x16x8xf32> -> vector<8x16x8xf32>
    %280 = vector.extract_strided_slice %262 {offsets = [0, 64], sizes = [16, 8], strides = [1, 1]} : vector<16x192xf32> to vector<16x8xf32>
    %281 = vector.extract_strided_slice %262 {offsets = [0, 72], sizes = [16, 8], strides = [1, 1]} : vector<16x192xf32> to vector<16x8xf32>
    %282 = vector.extract_strided_slice %262 {offsets = [0, 80], sizes = [16, 8], strides = [1, 1]} : vector<16x192xf32> to vector<16x8xf32>
    %283 = vector.extract_strided_slice %262 {offsets = [0, 88], sizes = [16, 8], strides = [1, 1]} : vector<16x192xf32> to vector<16x8xf32>
    %284 = vector.extract_strided_slice %262 {offsets = [0, 96], sizes = [16, 8], strides = [1, 1]} : vector<16x192xf32> to vector<16x8xf32>
    %285 = vector.extract_strided_slice %262 {offsets = [0, 104], sizes = [16, 8], strides = [1, 1]} : vector<16x192xf32> to vector<16x8xf32>
    %286 = vector.extract_strided_slice %262 {offsets = [0, 112], sizes = [16, 8], strides = [1, 1]} : vector<16x192xf32> to vector<16x8xf32>
    %287 = vector.extract_strided_slice %262 {offsets = [0, 120], sizes = [16, 8], strides = [1, 1]} : vector<16x192xf32> to vector<16x8xf32>
    %288 = vector.shape_cast %280 : vector<16x8xf32> to vector<1x16x8xf32>
    %289 = vector.shape_cast %281 : vector<16x8xf32> to vector<1x16x8xf32>
    %290 = vector.shape_cast %282 : vector<16x8xf32> to vector<1x16x8xf32>
    %291 = vector.shape_cast %283 : vector<16x8xf32> to vector<1x16x8xf32>
    %292 = vector.shape_cast %284 : vector<16x8xf32> to vector<1x16x8xf32>
    %293 = vector.shape_cast %285 : vector<16x8xf32> to vector<1x16x8xf32>
    %294 = vector.shape_cast %286 : vector<16x8xf32> to vector<1x16x8xf32>
    %295 = vector.shape_cast %287 : vector<16x8xf32> to vector<1x16x8xf32>
    %296 = tpu.concatenate %288, %289, %290, %291, %292, %293, %294, %295 in 0 : vector<1x16x8xf32>, vector<1x16x8xf32>, vector<1x16x8xf32>, vector<1x16x8xf32>, vector<1x16x8xf32>, vector<1x16x8xf32>, vector<1x16x8xf32>, vector<1x16x8xf32> -> vector<8x16x8xf32>
    %297 = vector.extract_strided_slice %262 {offsets = [0, 128], sizes = [16, 8], strides = [1, 1]} : vector<16x192xf32> to vector<16x8xf32>
    %298 = vector.extract_strided_slice %262 {offsets = [0, 136], sizes = [16, 8], strides = [1, 1]} : vector<16x192xf32> to vector<16x8xf32>
    %299 = vector.extract_strided_slice %262 {offsets = [0, 144], sizes = [16, 8], strides = [1, 1]} : vector<16x192xf32> to vector<16x8xf32>
    %300 = vector.extract_strided_slice %262 {offsets = [0, 152], sizes = [16, 8], strides = [1, 1]} : vector<16x192xf32> to vector<16x8xf32>
    %301 = vector.extract_strided_slice %262 {offsets = [0, 160], sizes = [16, 8], strides = [1, 1]} : vector<16x192xf32> to vector<16x8xf32>
    %302 = vector.extract_strided_slice %262 {offsets = [0, 168], sizes = [16, 8], strides = [1, 1]} : vector<16x192xf32> to vector<16x8xf32>
    %303 = vector.extract_strided_slice %262 {offsets = [0, 176], sizes = [16, 8], strides = [1, 1]} : vector<16x192xf32> to vector<16x8xf32>
    %304 = vector.extract_strided_slice %262 {offsets = [0, 184], sizes = [16, 8], strides = [1, 1]} : vector<16x192xf32> to vector<16x8xf32>
    %305 = vector.shape_cast %297 : vector<16x8xf32> to vector<1x16x8xf32>
    %306 = vector.shape_cast %298 : vector<16x8xf32> to vector<1x16x8xf32>
    %307 = vector.shape_cast %299 : vector<16x8xf32> to vector<1x16x8xf32>
    %308 = vector.shape_cast %300 : vector<16x8xf32> to vector<1x16x8xf32>
    %309 = vector.shape_cast %301 : vector<16x8xf32> to vector<1x16x8xf32>
    %310 = vector.shape_cast %302 : vector<16x8xf32> to vector<1x16x8xf32>
    %311 = vector.shape_cast %303 : vector<16x8xf32> to vector<1x16x8xf32>
    %312 = vector.shape_cast %304 : vector<16x8xf32> to vector<1x16x8xf32>
    %313 = tpu.concatenate %305, %306, %307, %308, %309, %310, %311, %312 in 0 : vector<1x16x8xf32>, vector<1x16x8xf32>, vector<1x16x8xf32>, vector<1x16x8xf32>, vector<1x16x8xf32>, vector<1x16x8xf32>, vector<1x16x8xf32>, vector<1x16x8xf32> -> vector<8x16x8xf32>
    "tpu.trace_start"() <{level = 10 : i32, message = "hqd,hkd->hqk"}> : () -> ()
    %cst_68 = arith.constant dense<0.000000e+00> : vector<8x16x16xf32>
    %314 = tpu.matmul %279, %296, %cst_68 {dimension_numbers = #tpu.dot_dimension_numbers<[2], [2], [1], [1], [0, 0, 0, 1, 1, 1], [0], [0]>} : vector<8x16x8xf32>, vector<8x16x8xf32>, vector<8x16x16xf32> -> vector<8x16x16xf32>
    "tpu.trace_stop"() : () -> ()
    %cst_69 = arith.constant dense<0xFF800000> : vector<8x16xf32>
    %315 = vector.multi_reduction <maximumf>, %314, %cst_69 [2] : vector<8x16x16xf32> to vector<8x16xf32>
    %316 = vector.shape_cast %315 : vector<8x16xf32> to vector<8x16x1xf32>
    %317 = vector.broadcast %316 : vector<8x16x1xf32> to vector<8x16x16xf32>
    %318 = arith.subf %314, %317 : vector<8x16x16xf32>
    %319 = math.exp %318 : vector<8x16x16xf32>
    %cst_70 = arith.constant dense<0.000000e+00> : vector<8x16xf32>
    %320 = vector.multi_reduction <add>, %319, %cst_70 [2] : vector<8x16x16xf32> to vector<8x16xf32>
    %321 = vector.shape_cast %320 : vector<8x16xf32> to vector<8x16x1xf32>
    %322 = tpu.reciprocal %321 {approx = true} : vector<8x16x1xf32> -> vector<8x16x1xf32>
    %323 = vector.broadcast %322 : vector<8x16x1xf32> to vector<8x16x16xf32>
    %324 = arith.mulf %319, %323 : vector<8x16x16xf32>
    "tpu.trace_start"() <{level = 10 : i32, message = "hqk,hkd->hqd"}> : () -> ()
    %cst_71 = arith.constant dense<0.000000e+00> : vector<8x16x8xf32>
    %325 = tpu.matmul %324, %313, %cst_71 {dimension_numbers = #tpu.dot_dimension_numbers<[2], [1], [1], [2], [0, 0, 0, 1, 1, 2], [0], [0]>} : vector<8x16x16xf32>, vector<8x16x8xf32>, vector<8x16x8xf32> -> vector<8x16x8xf32>
    "tpu.trace_stop"() : () -> ()
    %326 = vector.extract_strided_slice %325 {offsets = [0, 0, 0], sizes = [1, 16, 8], strides = [1, 1, 1]} : vector<8x16x8xf32> to vector<1x16x8xf32>
    %327 = vector.shape_cast %326 : vector<1x16x8xf32> to vector<16x8xf32>
    %328 = vector.extract_strided_slice %325 {offsets = [1, 0, 0], sizes = [1, 16, 8], strides = [1, 1, 1]} : vector<8x16x8xf32> to vector<1x16x8xf32>
    %329 = vector.shape_cast %328 : vector<1x16x8xf32> to vector<16x8xf32>
    %330 = vector.extract_strided_slice %325 {offsets = [2, 0, 0], sizes = [1, 16, 8], strides = [1, 1, 1]} : vector<8x16x8xf32> to vector<1x16x8xf32>
    %331 = vector.shape_cast %330 : vector<1x16x8xf32> to vector<16x8xf32>
    %332 = vector.extract_strided_slice %325 {offsets = [3, 0, 0], sizes = [1, 16, 8], strides = [1, 1, 1]} : vector<8x16x8xf32> to vector<1x16x8xf32>
    %333 = vector.shape_cast %332 : vector<1x16x8xf32> to vector<16x8xf32>
    %334 = vector.extract_strided_slice %325 {offsets = [4, 0, 0], sizes = [1, 16, 8], strides = [1, 1, 1]} : vector<8x16x8xf32> to vector<1x16x8xf32>
    %335 = vector.shape_cast %334 : vector<1x16x8xf32> to vector<16x8xf32>
    %336 = vector.extract_strided_slice %325 {offsets = [5, 0, 0], sizes = [1, 16, 8], strides = [1, 1, 1]} : vector<8x16x8xf32> to vector<1x16x8xf32>
    %337 = vector.shape_cast %336 : vector<1x16x8xf32> to vector<16x8xf32>
    %338 = vector.extract_strided_slice %325 {offsets = [6, 0, 0], sizes = [1, 16, 8], strides = [1, 1, 1]} : vector<8x16x8xf32> to vector<1x16x8xf32>
    %339 = vector.shape_cast %338 : vector<1x16x8xf32> to vector<16x8xf32>
    %340 = vector.extract_strided_slice %325 {offsets = [7, 0, 0], sizes = [1, 16, 8], strides = [1, 1, 1]} : vector<8x16x8xf32> to vector<1x16x8xf32>
    %341 = vector.shape_cast %340 : vector<1x16x8xf32> to vector<16x8xf32>
    %342 = tpu.concatenate %327, %329, %331, %333, %335, %337, %339, %341 in 1 : vector<16x8xf32>, vector<16x8xf32>, vector<16x8xf32>, vector<16x8xf32>, vector<16x8xf32>, vector<16x8xf32>, vector<16x8xf32>, vector<16x8xf32> -> vector<16x64xf32>
    %343 = vector.extract_strided_slice %261 {offsets = [16, 0], sizes = [16, 192], strides = [1, 1]} : vector<32x192xf32> to vector<16x192xf32>
    %344 = vector.extract_strided_slice %343 {offsets = [0, 0], sizes = [16, 8], strides = [1, 1]} : vector<16x192xf32> to vector<16x8xf32>
    %345 = vector.extract_strided_slice %343 {offsets = [0, 8], sizes = [16, 8], strides = [1, 1]} : vector<16x192xf32> to vector<16x8xf32>
    %346 = vector.extract_strided_slice %343 {offsets = [0, 16], sizes = [16, 8], strides = [1, 1]} : vector<16x192xf32> to vector<16x8xf32>
    %347 = vector.extract_strided_slice %343 {offsets = [0, 24], sizes = [16, 8], strides = [1, 1]} : vector<16x192xf32> to vector<16x8xf32>
    %348 = vector.extract_strided_slice %343 {offsets = [0, 32], sizes = [16, 8], strides = [1, 1]} : vector<16x192xf32> to vector<16x8xf32>
    %349 = vector.extract_strided_slice %343 {offsets = [0, 40], sizes = [16, 8], strides = [1, 1]} : vector<16x192xf32> to vector<16x8xf32>
    %350 = vector.extract_strided_slice %343 {offsets = [0, 48], sizes = [16, 8], strides = [1, 1]} : vector<16x192xf32> to vector<16x8xf32>
    %351 = vector.extract_strided_slice %343 {offsets = [0, 56], sizes = [16, 8], strides = [1, 1]} : vector<16x192xf32> to vector<16x8xf32>
    %352 = vector.shape_cast %344 : vector<16x8xf32> to vector<1x16x8xf32>
    %353 = vector.shape_cast %345 : vector<16x8xf32> to vector<1x16x8xf32>
    %354 = vector.shape_cast %346 : vector<16x8xf32> to vector<1x16x8xf32>
    %355 = vector.shape_cast %347 : vector<16x8xf32> to vector<1x16x8xf32>
    %356 = vector.shape_cast %348 : vector<16x8xf32> to vector<1x16x8xf32>
    %357 = vector.shape_cast %349 : vector<16x8xf32> to vector<1x16x8xf32>
    %358 = vector.shape_cast %350 : vector<16x8xf32> to vector<1x16x8xf32>
    %359 = vector.shape_cast %351 : vector<16x8xf32> to vector<1x16x8xf32>
    %360 = tpu.concatenate %352, %353, %354, %355, %356, %357, %358, %359 in 0 : vector<1x16x8xf32>, vector<1x16x8xf32>, vector<1x16x8xf32>, vector<1x16x8xf32>, vector<1x16x8xf32>, vector<1x16x8xf32>, vector<1x16x8xf32>, vector<1x16x8xf32> -> vector<8x16x8xf32>
    %361 = vector.extract_strided_slice %343 {offsets = [0, 64], sizes = [16, 8], strides = [1, 1]} : vector<16x192xf32> to vector<16x8xf32>
    %362 = vector.extract_strided_slice %343 {offsets = [0, 72], sizes = [16, 8], strides = [1, 1]} : vector<16x192xf32> to vector<16x8xf32>
    %363 = vector.extract_strided_slice %343 {offsets = [0, 80], sizes = [16, 8], strides = [1, 1]} : vector<16x192xf32> to vector<16x8xf32>
    %364 = vector.extract_strided_slice %343 {offsets = [0, 88], sizes = [16, 8], strides = [1, 1]} : vector<16x192xf32> to vector<16x8xf32>
    %365 = vector.extract_strided_slice %343 {offsets = [0, 96], sizes = [16, 8], strides = [1, 1]} : vector<16x192xf32> to vector<16x8xf32>
    %366 = vector.extract_strided_slice %343 {offsets = [0, 104], sizes = [16, 8], strides = [1, 1]} : vector<16x192xf32> to vector<16x8xf32>
    %367 = vector.extract_strided_slice %343 {offsets = [0, 112], sizes = [16, 8], strides = [1, 1]} : vector<16x192xf32> to vector<16x8xf32>
    %368 = vector.extract_strided_slice %343 {offsets = [0, 120], sizes = [16, 8], strides = [1, 1]} : vector<16x192xf32> to vector<16x8xf32>
    %369 = vector.shape_cast %361 : vector<16x8xf32> to vector<1x16x8xf32>
    %370 = vector.shape_cast %362 : vector<16x8xf32> to vector<1x16x8xf32>
    %371 = vector.shape_cast %363 : vector<16x8xf32> to vector<1x16x8xf32>
    %372 = vector.shape_cast %364 : vector<16x8xf32> to vector<1x16x8xf32>
    %373 = vector.shape_cast %365 : vector<16x8xf32> to vector<1x16x8xf32>
    %374 = vector.shape_cast %366 : vector<16x8xf32> to vector<1x16x8xf32>
    %375 = vector.shape_cast %367 : vector<16x8xf32> to vector<1x16x8xf32>
    %376 = vector.shape_cast %368 : vector<16x8xf32> to vector<1x16x8xf32>
    %377 = tpu.concatenate %369, %370, %371, %372, %373, %374, %375, %376 in 0 : vector<1x16x8xf32>, vector<1x16x8xf32>, vector<1x16x8xf32>, vector<1x16x8xf32>, vector<1x16x8xf32>, vector<1x16x8xf32>, vector<1x16x8xf32>, vector<1x16x8xf32> -> vector<8x16x8xf32>
    %378 = vector.extract_strided_slice %343 {offsets = [0, 128], sizes = [16, 8], strides = [1, 1]} : vector<16x192xf32> to vector<16x8xf32>
    %379 = vector.extract_strided_slice %343 {offsets = [0, 136], sizes = [16, 8], strides = [1, 1]} : vector<16x192xf32> to vector<16x8xf32>
    %380 = vector.extract_strided_slice %343 {offsets = [0, 144], sizes = [16, 8], strides = [1, 1]} : vector<16x192xf32> to vector<16x8xf32>
    %381 = vector.extract_strided_slice %343 {offsets = [0, 152], sizes = [16, 8], strides = [1, 1]} : vector<16x192xf32> to vector<16x8xf32>
    %382 = vector.extract_strided_slice %343 {offsets = [0, 160], sizes = [16, 8], strides = [1, 1]} : vector<16x192xf32> to vector<16x8xf32>
    %383 = vector.extract_strided_slice %343 {offsets = [0, 168], sizes = [16, 8], strides = [1, 1]} : vector<16x192xf32> to vector<16x8xf32>
    %384 = vector.extract_strided_slice %343 {offsets = [0, 176], sizes = [16, 8], strides = [1, 1]} : vector<16x192xf32> to vector<16x8xf32>
    %385 = vector.extract_strided_slice %343 {offsets = [0, 184], sizes = [16, 8], strides = [1, 1]} : vector<16x192xf32> to vector<16x8xf32>
    %386 = vector.shape_cast %378 : vector<16x8xf32> to vector<1x16x8xf32>
    %387 = vector.shape_cast %379 : vector<16x8xf32> to vector<1x16x8xf32>
    %388 = vector.shape_cast %380 : vector<16x8xf32> to vector<1x16x8xf32>
    %389 = vector.shape_cast %381 : vector<16x8xf32> to vector<1x16x8xf32>
    %390 = vector.shape_cast %382 : vector<16x8xf32> to vector<1x16x8xf32>
    %391 = vector.shape_cast %383 : vector<16x8xf32> to vector<1x16x8xf32>
    %392 = vector.shape_cast %384 : vector<16x8xf32> to vector<1x16x8xf32>
    %393 = vector.shape_cast %385 : vector<16x8xf32> to vector<1x16x8xf32>
    %394 = tpu.concatenate %386, %387, %388, %389, %390, %391, %392, %393 in 0 : vector<1x16x8xf32>, vector<1x16x8xf32>, vector<1x16x8xf32>, vector<1x16x8xf32>, vector<1x16x8xf32>, vector<1x16x8xf32>, vector<1x16x8xf32>, vector<1x16x8xf32> -> vector<8x16x8xf32>
    "tpu.trace_start"() <{level = 10 : i32, message = "hqd,hkd->hqk"}> : () -> ()
    %cst_72 = arith.constant dense<0.000000e+00> : vector<8x16x16xf32>
    %395 = tpu.matmul %360, %377, %cst_72 {dimension_numbers = #tpu.dot_dimension_numbers<[2], [2], [1], [1], [0, 0, 0, 1, 1, 1], [0], [0]>} : vector<8x16x8xf32>, vector<8x16x8xf32>, vector<8x16x16xf32> -> vector<8x16x16xf32>
    "tpu.trace_stop"() : () -> ()
    %cst_73 = arith.constant dense<0xFF800000> : vector<8x16xf32>
    %396 = vector.multi_reduction <maximumf>, %395, %cst_73 [2] : vector<8x16x16xf32> to vector<8x16xf32>
    %397 = vector.shape_cast %396 : vector<8x16xf32> to vector<8x16x1xf32>
    %398 = vector.broadcast %397 : vector<8x16x1xf32> to vector<8x16x16xf32>
    %399 = arith.subf %395, %398 : vector<8x16x16xf32>
    %400 = math.exp %399 : vector<8x16x16xf32>
    %cst_74 = arith.constant dense<0.000000e+00> : vector<8x16xf32>
    %401 = vector.multi_reduction <add>, %400, %cst_74 [2] : vector<8x16x16xf32> to vector<8x16xf32>
    %402 = vector.shape_cast %401 : vector<8x16xf32> to vector<8x16x1xf32>
    %403 = tpu.reciprocal %402 {approx = true} : vector<8x16x1xf32> -> vector<8x16x1xf32>
    %404 = vector.broadcast %403 : vector<8x16x1xf32> to vector<8x16x16xf32>
    %405 = arith.mulf %400, %404 : vector<8x16x16xf32>
    "tpu.trace_start"() <{level = 10 : i32, message = "hqk,hkd->hqd"}> : () -> ()
    %cst_75 = arith.constant dense<0.000000e+00> : vector<8x16x8xf32>
    %406 = tpu.matmul %405, %394, %cst_75 {dimension_numbers = #tpu.dot_dimension_numbers<[2], [1], [1], [2], [0, 0, 0, 1, 1, 2], [0], [0]>} : vector<8x16x16xf32>, vector<8x16x8xf32>, vector<8x16x8xf32> -> vector<8x16x8xf32>
    "tpu.trace_stop"() : () -> ()
    %407 = vector.extract_strided_slice %406 {offsets = [0, 0, 0], sizes = [1, 16, 8], strides = [1, 1, 1]} : vector<8x16x8xf32> to vector<1x16x8xf32>
    %408 = vector.shape_cast %407 : vector<1x16x8xf32> to vector<16x8xf32>
    %409 = vector.extract_strided_slice %406 {offsets = [1, 0, 0], sizes = [1, 16, 8], strides = [1, 1, 1]} : vector<8x16x8xf32> to vector<1x16x8xf32>
    %410 = vector.shape_cast %409 : vector<1x16x8xf32> to vector<16x8xf32>
    %411 = vector.extract_strided_slice %406 {offsets = [2, 0, 0], sizes = [1, 16, 8], strides = [1, 1, 1]} : vector<8x16x8xf32> to vector<1x16x8xf32>
    %412 = vector.shape_cast %411 : vector<1x16x8xf32> to vector<16x8xf32>
    %413 = vector.extract_strided_slice %406 {offsets = [3, 0, 0], sizes = [1, 16, 8], strides = [1, 1, 1]} : vector<8x16x8xf32> to vector<1x16x8xf32>
    %414 = vector.shape_cast %413 : vector<1x16x8xf32> to vector<16x8xf32>
    %415 = vector.extract_strided_slice %406 {offsets = [4, 0, 0], sizes = [1, 16, 8], strides = [1, 1, 1]} : vector<8x16x8xf32> to vector<1x16x8xf32>
    %416 = vector.shape_cast %415 : vector<1x16x8xf32> to vector<16x8xf32>
    %417 = vector.extract_strided_slice %406 {offsets = [5, 0, 0], sizes = [1, 16, 8], strides = [1, 1, 1]} : vector<8x16x8xf32> to vector<1x16x8xf32>
    %418 = vector.shape_cast %417 : vector<1x16x8xf32> to vector<16x8xf32>
    %419 = vector.extract_strided_slice %406 {offsets = [6, 0, 0], sizes = [1, 16, 8], strides = [1, 1, 1]} : vector<8x16x8xf32> to vector<1x16x8xf32>
    %420 = vector.shape_cast %419 : vector<1x16x8xf32> to vector<16x8xf32>
    %421 = vector.extract_strided_slice %406 {offsets = [7, 0, 0], sizes = [1, 16, 8], strides = [1, 1, 1]} : vector<8x16x8xf32> to vector<1x16x8xf32>
    %422 = vector.shape_cast %421 : vector<1x16x8xf32> to vector<16x8xf32>
    %423 = tpu.concatenate %408, %410, %412, %414, %416, %418, %420, %422 in 1 : vector<16x8xf32>, vector<16x8xf32>, vector<16x8xf32>, vector<16x8xf32>, vector<16x8xf32>, vector<16x8xf32>, vector<16x8xf32>, vector<16x8xf32> -> vector<16x64xf32>
    %424 = tpu.concatenate %342, %423 in 0 : vector<16x64xf32>, vector<16x64xf32> -> vector<32x64xf32>
    %c0_76 = arith.constant 0 : index
    %c0_77 = arith.constant 0 : index
    %425 = vector.load %arg12[%c0_76, %c0_77] : memref<64x32xf32, #tpu.memory_space<vmem>>, vector<64x32xf32>
    %cst_78 = arith.constant dense<0.000000e+00> : vector<32x32xf32>
    %426 = tpu.matmul %424, %425, %cst_78 {dimension_numbers = #tpu.dot_dimension_numbers<[1], [0], [0], [1], [0, 0, 1, 1], [], []>} : vector<32x64xf32>, vector<64x32xf32>, vector<32x32xf32> -> vector<32x32xf32>
    %427 = vector.broadcast %251 : vector<1x32xf32> to vector<32x32xf32>
    %428 = arith.addf %426, %427 : vector<32x32xf32>
    %429 = arith.addf %249, %428 : vector<32x32xf32>
    %cst_79 = arith.constant dense<0.000000e+00> : vector<32xf32>
    %430 = vector.multi_reduction <add>, %429, %cst_79 [1] : vector<32x32xf32> to vector<32xf32>
    %431 = vector.shape_cast %430 : vector<32xf32> to vector<32x1xf32>
    %cst_80 = arith.constant 3.200000e+01 : f32
    %432 = vector.broadcast %cst_80 : f32 to vector<32x1xf32>
    %433 = arith.divf %431, %432 : vector<32x1xf32>
    %434 = vector.broadcast %433 : vector<32x1xf32> to vector<32x32xf32>
    %435 = arith.subf %429, %434 : vector<32x32xf32>
    %436 = arith.mulf %435, %435 : vector<32x32xf32>
    %cst_81 = arith.constant dense<0.000000e+00> : vector<32xf32>
    %437 = vector.multi_reduction <add>, %436, %cst_81 [1] : vector<32x32xf32> to vector<32xf32>
    %438 = vector.shape_cast %437 : vector<32xf32> to vector<32x1xf32>
    %cst_82 = arith.constant 3.200000e+01 : f32
    %439 = vector.broadcast %cst_82 : f32 to vector<32x1xf32>
    %440 = arith.divf %438, %439 : vector<32x1xf32>
    %cst_83 = arith.constant 9.99999974E-6 : f32
    %441 = vector.broadcast %cst_83 : f32 to vector<32x1xf32>
    %442 = arith.addf %440, %441 : vector<32x1xf32>
    %443 = math.rsqrt %442 : vector<32x1xf32>
    %444 = vector.broadcast %443 : vector<32x1xf32> to vector<32x32xf32>
    %445 = arith.mulf %435, %444 : vector<32x32xf32>
    %446 = vector.broadcast %252 : vector<1x32xf32> to vector<32x32xf32>
    %447 = arith.mulf %445, %446 : vector<32x32xf32>
    %448 = vector.broadcast %253 : vector<1x32xf32> to vector<32x32xf32>
    %449 = arith.addf %447, %448 : vector<32x32xf32>
    %c0_84 = arith.constant 0 : index
    %c0_85 = arith.constant 0 : index
    %450 = vector.load %arg13[%c0_84, %c0_85] : memref<32x64xf32, #tpu.memory_space<vmem>>, vector<32x64xf32>
    %cst_86 = arith.constant dense<0.000000e+00> : vector<32x64xf32>
    %451 = tpu.matmul %449, %450, %cst_86 {dimension_numbers = #tpu.dot_dimension_numbers<[1], [0], [0], [1], [0, 0, 1, 1], [], []>} : vector<32x32xf32>, vector<32x64xf32>, vector<32x64xf32> -> vector<32x64xf32>
    %452 = vector.broadcast %254 : vector<1x64xf32> to vector<32x64xf32>
    %453 = arith.addf %451, %452 : vector<32x64xf32>
    %cst_87 = arith.constant 0.000000e+00 : f32
    %454 = vector.broadcast %cst_87 : f32 to vector<32x64xf32>
    %455 = arith.maximumf %453, %454 : vector<32x64xf32>
    %c0_88 = arith.constant 0 : index
    %c0_89 = arith.constant 0 : index
    %456 = vector.load %arg14[%c0_88, %c0_89] : memref<64x32xf32, #tpu.memory_space<vmem>>, vector<64x32xf32>
    %cst_90 = arith.constant dense<0.000000e+00> : vector<32x32xf32>
    %457 = tpu.matmul %455, %456, %cst_90 {dimension_numbers = #tpu.dot_dimension_numbers<[1], [0], [0], [1], [0, 0, 1, 1], [], []>} : vector<32x64xf32>, vector<64x32xf32>, vector<32x32xf32> -> vector<32x32xf32>
    %458 = vector.broadcast %255 : vector<1x32xf32> to vector<32x32xf32>
    %459 = arith.addf %457, %458 : vector<32x32xf32>
    %460 = arith.addf %449, %459 : vector<32x32xf32>
    %cst_91 = arith.constant dense<0.000000e+00> : vector<32xf32>
    %461 = vector.multi_reduction <add>, %460, %cst_91 [1] : vector<32x32xf32> to vector<32xf32>
    %462 = vector.shape_cast %461 : vector<32xf32> to vector<32x1xf32>
    %cst_92 = arith.constant 3.200000e+01 : f32
    %463 = vector.broadcast %cst_92 : f32 to vector<32x1xf32>
    %464 = arith.divf %462, %463 : vector<32x1xf32>
    %465 = vector.broadcast %464 : vector<32x1xf32> to vector<32x32xf32>
    %466 = arith.subf %460, %465 : vector<32x32xf32>
    %467 = arith.mulf %466, %466 : vector<32x32xf32>
    %cst_93 = arith.constant dense<0.000000e+00> : vector<32xf32>
    %468 = vector.multi_reduction <add>, %467, %cst_93 [1] : vector<32x32xf32> to vector<32xf32>
    %469 = vector.shape_cast %468 : vector<32xf32> to vector<32x1xf32>
    %cst_94 = arith.constant 3.200000e+01 : f32
    %470 = vector.broadcast %cst_94 : f32 to vector<32x1xf32>
    %471 = arith.divf %469, %470 : vector<32x1xf32>
    %cst_95 = arith.constant 9.99999974E-6 : f32
    %472 = vector.broadcast %cst_95 : f32 to vector<32x1xf32>
    %473 = arith.addf %471, %472 : vector<32x1xf32>
    %474 = math.rsqrt %473 : vector<32x1xf32>
    %475 = vector.broadcast %474 : vector<32x1xf32> to vector<32x32xf32>
    %476 = arith.mulf %466, %475 : vector<32x32xf32>
    %477 = vector.broadcast %256 : vector<1x32xf32> to vector<32x32xf32>
    %478 = arith.mulf %476, %477 : vector<32x32xf32>
    %479 = vector.broadcast %257 : vector<1x32xf32> to vector<32x32xf32>
    %480 = arith.addf %478, %479 : vector<32x32xf32>
    %c0_96 = arith.constant 0 : index
    %c0_97 = arith.constant 0 : index
    %481 = vector.load %arg5[%c0_96, %c0_97] : memref<8x16xf32, #tpu.memory_space<vmem>>, vector<8x16xf32>
    %482 = vector.extract_strided_slice %480 {offsets = [0, 0], sizes = [16, 32], strides = [1, 1]} : vector<32x32xf32> to vector<16x32xf32>
    %cst_98 = arith.constant dense<0.000000e+00> : vector<8x32xf32>
    %483 = tpu.matmul %481, %482, %cst_98 {dimension_numbers = #tpu.dot_dimension_numbers<[1], [0], [0], [1], [0, 0, 1, 1], [], []>} : vector<8x16xf32>, vector<16x32xf32>, vector<8x32xf32> -> vector<8x32xf32>
    %c0_99 = arith.constant 0 : index
    %c0_100 = arith.constant 0 : index
    %c0_101 = arith.constant 0 : index
    %484 = vector.load %arg16[%c0_99, %c0_100, %c0_101] : memref<2x8x32xf32, #tpu.memory_space<vmem>>, vector<1x8x32xf32>
    %485 = vector.shape_cast %484 : vector<1x8x32xf32> to vector<8x32xf32>
    %486 = vector.shape_cast %483 : vector<8x32xf32> to vector<1x8x32xf32>
    tpu.vector_store %arg16[%c0_99, %c0_100, %c0_101], %486 {strides = array<i32>} : memref<2x8x32xf32, #tpu.memory_space<vmem>>, vector<1x8x32xf32>,
    %c0_102 = arith.constant 0 : index
    %c0_103 = arith.constant 0 : index
    %487 = vector.load %arg5[%c0_102, %c0_103] : memref<8x16xf32, #tpu.memory_space<vmem>>, vector<8x16xf32>
    %488 = vector.extract_strided_slice %480 {offsets = [16, 0], sizes = [16, 32], strides = [1, 1]} : vector<32x32xf32> to vector<16x32xf32>
    %cst_104 = arith.constant dense<0.000000e+00> : vector<8x32xf32>
    %489 = tpu.matmul %487, %488, %cst_104 {dimension_numbers = #tpu.dot_dimension_numbers<[1], [0], [0], [1], [0, 0, 1, 1], [], []>} : vector<8x16xf32>, vector<16x32xf32>, vector<8x32xf32> -> vector<8x32xf32>
    %c1_105 = arith.constant 1 : index
    %c0_106 = arith.constant 0 : index
    %c0_107 = arith.constant 0 : index
    %490 = vector.load %arg16[%c1_105, %c0_106, %c0_107] : memref<2x8x32xf32, #tpu.memory_space<vmem>>, vector<1x8x32xf32>
    %491 = vector.shape_cast %490 : vector<1x8x32xf32> to vector<8x32xf32>
    %492 = vector.shape_cast %489 : vector<8x32xf32> to vector<1x8x32xf32>
    tpu.vector_store %arg16[%c1_105, %c0_106, %c0_107], %492 {strides = array<i32>} : memref<2x8x32xf32, #tpu.memory_space<vmem>>, vector<1x8x32xf32>,
    return
  }
  func.func @transform_0(%arg0: i32) -> (i32, i32) {
    %c0_i32 = arith.constant 0 : i32
    %c0_i32_0 = arith.constant 0 : i32
    return %arg0, %c0_i32 : i32, i32
  }
  func.func @transform_1(%arg0: i32) -> (i32, i32) {
    %c0_i32 = arith.constant 0 : i32
    %c0_i32_0 = arith.constant 0 : i32
    %c0_i32_1 = arith.constant 0 : i32
    return %c0_i32, %c0_i32_0 : i32, i32
  }
  func.func @transform_2(%arg0: i32) -> (i32, i32) {
    %c0_i32 = arith.constant 0 : i32
    %c0_i32_0 = arith.constant 0 : i32
    %c0_i32_1 = arith.constant 0 : i32
    return %c0_i32, %c0_i32_0 : i32, i32
  }
  func.func @transform_3(%arg0: i32) -> (i32, i32) {
    %c0_i32 = arith.constant 0 : i32
    %c0_i32_0 = arith.constant 0 : i32
    %c0_i32_1 = arith.constant 0 : i32
    return %c0_i32, %c0_i32_0 : i32, i32
  }
  func.func @transform_4(%arg0: i32) -> (i32, i32) {
    %c0_i32 = arith.constant 0 : i32
    %c0_i32_0 = arith.constant 0 : i32
    %c0_i32_1 = arith.constant 0 : i32
    return %c0_i32, %c0_i32_0 : i32, i32
  }
  func.func @transform_5(%arg0: i32) -> (i32, i32) {
    %c0_i32 = arith.constant 0 : i32
    %c0_i32_0 = arith.constant 0 : i32
    %c0_i32_1 = arith.constant 0 : i32
    return %c0_i32, %c0_i32_0 : i32, i32
  }
  func.func @transform_6(%arg0: i32) -> (i32, i32) {
    %c0_i32 = arith.constant 0 : i32
    %c0_i32_0 = arith.constant 0 : i32
    %c0_i32_1 = arith.constant 0 : i32
    return %c0_i32, %c0_i32_0 : i32, i32
  }
  func.func @transform_7(%arg0: i32) -> (i32, i32) {
    %c0_i32 = arith.constant 0 : i32
    %c0_i32_0 = arith.constant 0 : i32
    %c0_i32_1 = arith.constant 0 : i32
    return %c0_i32, %c0_i32_0 : i32, i32
  }
  func.func @transform_8(%arg0: i32) -> (i32, i32) {
    %c0_i32 = arith.constant 0 : i32
    %c0_i32_0 = arith.constant 0 : i32
    %c0_i32_1 = arith.constant 0 : i32
    return %c0_i32, %c0_i32_0 : i32, i32
  }
  func.func @transform_9(%arg0: i32) -> (i32, i32) {
    %c0_i32 = arith.constant 0 : i32
    %c0_i32_0 = arith.constant 0 : i32
    %c0_i32_1 = arith.constant 0 : i32
    return %c0_i32, %c0_i32_0 : i32, i32
  }
  func.func @transform_10(%arg0: i32) -> (i32, i32) {
    %c0_i32 = arith.constant 0 : i32
    %c0_i32_0 = arith.constant 0 : i32
    %c0_i32_1 = arith.constant 0 : i32
    return %c0_i32, %c0_i32_0 : i32, i32
  }
  func.func @transform_11(%arg0: i32) -> (i32, i32) {
    %c0_i32 = arith.constant 0 : i32
    %c0_i32_0 = arith.constant 0 : i32
    %c0_i32_1 = arith.constant 0 : i32
    return %c0_i32, %c0_i32_0 : i32, i32
  }
  func.func @transform_12(%arg0: i32) -> (i32, i32) {
    %c0_i32 = arith.constant 0 : i32
    %c0_i32_0 = arith.constant 0 : i32
    %c0_i32_1 = arith.constant 0 : i32
    return %c0_i32, %c0_i32_0 : i32, i32
  }
  func.func @transform_13(%arg0: i32) -> (i32, i32) {
    %c0_i32 = arith.constant 0 : i32
    %c0_i32_0 = arith.constant 0 : i32
    %c0_i32_1 = arith.constant 0 : i32
    return %c0_i32, %c0_i32_0 : i32, i32
  }
  func.func @transform_14(%arg0: i32) -> (i32, i32) {
    %c0_i32 = arith.constant 0 : i32
    %c0_i32_0 = arith.constant 0 : i32
    %c0_i32_1 = arith.constant 0 : i32
    return %c0_i32, %c0_i32_0 : i32, i32
  }
  func.func @transform_15(%arg0: i32) -> (i32, i32, i32) {
    %c0_i32 = arith.constant 0 : i32
    %c0_i32_0 = arith.constant 0 : i32
    %c0_i32_1 = arith.constant 0 : i32
    return %arg0, %c0_i32, %c0_i32_0 : i32, i32, i32
  }
}

</mosaic_0001>

<bundles_post_ra>
// kernel: tpu_custom_call.1
= control target key start
LH: loop header
LB: loop body
LE: loop exit
PB: predicated region body
PF: predicated region fallthrough
CT: control target
= control target key end

     0   :  { %6 = vsyncpa [#allocation3], 0  ;;  %s3325_s0 = inlined_call_operand.hbm [shape: f32[16,64], index: 0, kind: input, shape index: {}]   ;;  %s3326_s1 = inlined_call_operand.hbm [shape: f32[16,64], index: 1, kind: output, shape index: {}]  }
   0x1   :  { %7 = vsyncpa [#allocation4], 0  ;;  %s2953_s6 = smov [#allocation2]   ;;  %s2905_s10 = scalar_lea.hbm %s3325_s0, 256 }
   0x2   :  { %s13_s7 = sshll.u32 %s2953_s6, 4  ;;  %p2906_p0 = scmp.ne.s32.totalorder %s3325_s0, %s2905_s10  ;;  %s14_s7 = int_to_ptr.vmem [resolvable:$true] %s13_s7 }
   0x3   :  { %p2909_p1 = scmp.lt.u32.totalorder %s2905_s10, %s3325_s0 }
   0x5   :  { %p2911_p2 = pnand %p2909_p1, %p2906_p0 }
   0x7   :  { %2914 = shalt.err (!%p2911_p2)
}
   0x8   :  { %s2915_s15 = scalar_lea.vmem %s14_s7, 256  ;;  %p2920_p4 = scmp.lt.s32.totalorder %s14_s7, %s14_s7 }
   0x9   :  { %p2916_p3 = scmp.ne.s32.totalorder %s14_s7, %s2915_s15  ;;  %p2921_p5 = scmp.lt.s32.totalorder %s2915_s15, %s2915_s15 }
   0xb   :  { %p2922_p6 = por %p2921_p5, %p2920_p4 }
   0xd   :  { %p2923_p7 = pnand %p2922_p6, %p2916_p3 }
   0xf   :  { %2926 = shalt.err (!%p2923_p7)
}
  0x10   :  { %s2954_s16 = smov 128   ;;  %s2955_s17 = smov 8  }
  0x11   :  { %19 = dma.hbm_to_vmem [thread:$0]  %s3325_s0, 256, %s14_s7, [#allocation3], %s2954_s16, %s2954_s16, %s2955_s17  }
  0x12   :  { %2949 = dma.done.wait [#allocation3], 256  }
  0x13   :  { %2950 = vsyncadd [#allocation3], 4294967040  ;;  %v23_v0 = vld [vmem:[#allocation2] sm:$0xff]  ;;  %s2956_s20 = smov 112   ;;  %s2957_s21 = smov 120   ;;  %v24_v1 = vld [vmem:[#allocation2 + $0x8] sm:$0xff]  ;;  %v74_v4 = vlaneseq }
  0x14   :  { %33 = vrot.lane.b32.xlu1 %v23_v0, %s2956_s20  ;;  %27 = vrot.lane.b32.xlu0 %v23_v0, %s2957_s21  ;;  %s2958_s22 = smov 104   ;;  %s2959_s23 = smov 96   ;;  %v2963_v2 = vmov 1983009808   ;;  %v2964_v7 = vmov 1934713408  }
  0x15   :  { %s2960_s24 = smov 88   ;;  %s2961_s0 = smov 80   ;;  %v72_v3 = vunpack.c.l.s4 %v2963_v2  ;;  %v136_v8 = vunpack.c.l.s4 %v2964_v7  ;;  %v75_v10 = vshrl.u32 %v74_v4, 7  ;;  %vm613_vm0 = vcmask 64512  }
  0x16   :  { %s2962_s25 = smov 72   ;;  %vm3082_vm1 = vmpackc.low %vm613_vm0, %vm613_vm0  ;;  %vm1262_vm2 = vcmask 130048   ;;  %s2965_s26 = smov 16   ;;  %vm2515_vm3 = vcmask 195584   ;;  %vm2518_vm4 = vcmask 261120   ;;  %vm2521_vm5 = vcmask 326656  }
  0x17   :  { %v73_v9 = vunpack.c.0.s8 %v72_v3  ;;  %v137_v15 = vunpack.c.0.s8 %v136_v8  ;;  %s2966_s27 = smov 24   ;;  %s2967_s28 = smov 32   ;;  %vm2524_vm6 = vcmask 392192   ;;  %vm2527_vm7 = vcmask 457728  }
  0x18   :  { %35 = vrot.lane.b32.xlu1 %v24_v1, %s2956_s20  ;;  %29 = vrot.lane.b32.xlu0 %v24_v1, %s2957_s21  ;;  %s2968_s29 = smov 40   ;;  %s2969_s30 = smov 48   ;;  %vm2530_vm8 = vcmask 523264  }
  0x19   :  { %v2997_v16 = vsub.s32 %v73_v9, %v75_v10  ;;  %v3001_v27 = vsub.s32 %v137_v15, %v75_v10  ;;  %s2970_s2 = smov 56   ;;  %s2971_s3 = smov [#allocation5]  }
  0x1a   :  { %s2538_s4 = sshll.u32 %s2971_s3, 4  ;;  %s2539_s4 = int_to_ptr.vmem [resolvable:$true] %s2538_s4 }
  0x1b   :  { %s2927_s5 = scalar_lea.vmem %s2539_s4, 256  ;;  %p2932_p9 = scmp.lt.s32.totalorder %s2539_s4, %s2539_s4 }
  0x1c   :  { %41 = vrot.lane.b32.xlu1 %v24_v1, %s2958_s22  ;;  %39 = vrot.lane.b32.xlu0 %v23_v0, %s2958_s22  ;;  %p2928_p8 = scmp.ne.s32.totalorder %s2539_s4, %s2927_s5  ;;  %p2933_p10 = scmp.lt.s32.totalorder %s2927_s5, %s2927_s5 }
  0x1e   :  { %p2934_p11 = por %p2933_p10, %p2932_p9 }
  0x20   :  { %47 = vrot.lane.b32.xlu1 %v24_v1, %s2959_s23  ;;  %45 = vrot.lane.b32.xlu0 %v23_v0, %s2959_s23  ;;  %p2935_p12 = pnand %p2934_p11, %p2928_p8 }
  0x24   :  { %53 = vrot.lane.b32.xlu1 %v24_v1, %s2960_s24  ;;  %51 = vrot.lane.b32.xlu0 %v23_v0, %s2960_s24 }
  0x28   :  { %59 = vrot.lane.b32.xlu1 %v24_v1, %s2961_s0  ;;  %57 = vrot.lane.b32.xlu0 %v23_v0, %s2961_s0 }
  0x2c   :  { %65 = vrot.lane.b32.xlu1 %v24_v1, %s2962_s25  ;;  %63 = vrot.lane.b32.xlu0 %v23_v0, %s2962_s25 }
  0x86   :  { %v34_v5 = vpop.permute.xlu1 %33  ;;  %v28_v6 = vpop.permute.xlu0 %27 }
  0x87   :  { %v69_v17 = vcombine.low %v23_v0, %v34_v5  ;;  %v70_v18 = vcombine.high %v23_v0, %v34_v5 }
  0x89   :  { %v77_v32 = vrot.slane %v69_v17, %v2997_v16  ;;  %v84_v33 = vrot.slane %v70_v18, %v2997_v16 }
  0x8a   :  { %v36_v11 = vpop.permute.xlu1 %35  ;;  %v30_v12 = vpop.permute.xlu0 %29 }
  0x8b   :  { %v205_v13 = vcombine.low %v24_v1, %v36_v11  ;;  %v206_v14 = vcombine.high %v24_v1, %v36_v11 }
  0x8d   :  { %v213_v25 = vrot.slane %v205_v13, %v2997_v16  ;;  %v220_v26 = vrot.slane %v206_v14, %v2997_v16 }
  0x8e   :  { %v42_v19 = vpop.permute.xlu1 %41  ;;  %v40_v20 = vpop.permute.xlu0 %39 }
  0x8f   :  { %v221_v21 = vcombine.low %v30_v12, %v42_v19  ;;  %v222_v22 = vcombine.high %v30_v12, %v42_v19  ;;  %v85_v23 = vcombine.low %v28_v6, %v40_v20  ;;  %v86_v24 = vcombine.high %v28_v6, %v40_v20 }
  0x91   :  { %v229_v28 = vrot.slane %v221_v21, %v2997_v16  ;;  %v236_v29 = vrot.slane %v222_v22, %v2997_v16  ;;  %v93_v30 = vrot.slane %v85_v23, %v2997_v16  ;;  %v100_v31 = vrot.slane %v86_v24, %v2997_v16 }
  0x92   :  { %v48_v34 = vpop.permute.xlu1 %47  ;;  %v46_v35 = vpop.permute.xlu0 %45 }
  0x93   :  { %v269_v36 = vcombine.low %v213_v25, %v229_v28  ;;  %v270_v37 = vcombine.high %v213_v25, %v229_v28  ;;  %v285_v38 = vcombine.low %v220_v26, %v236_v29  ;;  %v286_v39 = vcombine.high %v220_v26, %v236_v29 }
  0x94   :  { %v133_v40 = vcombine.low %v77_v32, %v93_v30  ;;  %v134_v41 = vcombine.high %v77_v32, %v93_v30  ;;  %v149_v42 = vcombine.low %v84_v33, %v100_v31  ;;  %v150_v43 = vcombine.high %v84_v33, %v100_v31 }
  0x95   :  { %v277_v44 = vrot.slane %v269_v36, %v3001_v27  ;;  %v284_v45 = vrot.slane %v270_v37, %v3001_v27  ;;  %v293_v46 = vrot.slane %v285_v38, %v3001_v27  ;;  %v300_v47 = vrot.slane %v286_v39, %v3001_v27 }
  0x96   :  { %v141_v48 = vrot.slane %v133_v40, %v3001_v27  ;;  %v148_v49 = vrot.slane %v134_v41, %v3001_v27  ;;  %v157_v50 = vrot.slane %v149_v42, %v3001_v27  ;;  %v164_v51 = vrot.slane %v150_v43, %v3001_v27  ;;  %v54_v52 = vpop.permute.xlu1 %53  ;;  %v52_v53 = vpop.permute.xlu0 %51 }
  0x97   :  { %v2558_v54 = vcombine.low %v277_v44, %v284_v45  ;;  %v2560_v55 = vcombine.high %v277_v44, %v284_v45  ;;  %v2562_v56 = vcombine.low %v293_v46, %v300_v47  ;;  %v2564_v57 = vcombine.high %v293_v46, %v300_v47 }
  0x98   :  { %v2550_v58 = vcombine.low %v141_v48, %v148_v49  ;;  %v2552_v59 = vcombine.high %v141_v48, %v148_v49  ;;  %v2554_v60 = vcombine.low %v157_v50, %v164_v51  ;;  %v2556_v61 = vcombine.high %v157_v50, %v164_v51 }
  0x99   :  { %v3018_v62 = vrot.slane %v2558_v54, %v2997_v16  ;;  %v3021_v63 = vrot.slane %v2560_v55, %v2997_v16  ;;  %v3024_v0 = vrot.slane %v2562_v56, %v2997_v16  ;;  %v3027_v1 = vrot.slane %v2564_v57, %v2997_v16 }
  0x9a   :  { %v60_v2 = vpop.permute.xlu1 %59  ;;  %v58_v3 = vpop.permute.xlu0 %57  ;;  %v349_v4 = vrot.slane %v2550_v58, %v2997_v16  ;;  %v365_v5 = vrot.slane %v2552_v59, %v2997_v16  ;;  %v3032_v6 = vrot.slane %v2554_v60, %v2997_v16  ;;  %v3035_v7 = vrot.slane %v2556_v61, %v2997_v16 }
  0x9b   :  { %v237_v8 = vcombine.low %v48_v34, %v60_v2  ;;  %v238_v9 = vcombine.high %v48_v34, %v60_v2  ;;  %v101_v10 = vcombine.low %v46_v35, %v58_v3  ;;  %v102_v11 = vcombine.high %v46_v35, %v58_v3 }
  0x9c   :  { %v405_v12 = vcombine.low %v349_v4, %v365_v5  ;;  %v406_v13 = vcombine.high %v349_v4, %v365_v5  ;;  %v437_v14 = vcombine.low %v3032_v6, %v3035_v7  ;;  %v438_v15 = vcombine.high %v3032_v6, %v3035_v7 }
  0x9d   :  { %v245_v17 = vrot.slane %v237_v8, %v2997_v16  ;;  %v252_v18 = vrot.slane %v238_v9, %v2997_v16  ;;  %v109_v19 = vrot.slane %v101_v10, %v2997_v16  ;;  %v116_v20 = vrot.slane %v102_v11, %v2997_v16 }
  0x9e   :  { %v66_v21 = vpop.permute.xlu1 %65  ;;  %v64_v22 = vpop.permute.xlu0 %63  ;;  %v413_v23 = vrot.slane %v405_v12, %v3001_v27  ;;  %v445_v24 = vrot.slane %v437_v14, %v3001_v27  ;;  %v541_v25 = vcombine.low %v3018_v62, %v3021_v63  ;;  %v573_v26 = vcombine.low %v3024_v0, %v3027_v1 }
  0x9f   :  { %v253_v28 = vcombine.low %v54_v52, %v66_v21  ;;  %v254_v29 = vcombine.high %v54_v52, %v66_v21  ;;  %v117_v30 = vcombine.low %v52_v53, %v64_v22  ;;  %v118_v31 = vcombine.high %v52_v53, %v64_v22 }
  0xa0   :  { %v469_v32 = vcombine.low %v413_v23, %v445_v24  ;;  %v549_v33 = vrot.slane %v541_v25, %v3001_v27  ;;  %v581_v34 = vrot.slane %v573_v26, %v3001_v27  ;;  %v470_v35 = vcombine.high %v413_v23, %v445_v24 }
  0xa1   :  { %v261_v36 = vrot.slane %v253_v28, %v2997_v16  ;;  %v268_v37 = vrot.slane %v254_v29, %v2997_v16  ;;  %v125_v38 = vrot.slane %v117_v30, %v2997_v16  ;;  %v132_v39 = vrot.slane %v118_v31, %v2997_v16 }
  0xa2   :  { %v3057_v40 = vcombine.low %v549_v33, %v581_v34  ;;  %2698 = vmatprep.mubr.msk.f32.mxu0 %vm613_vm0, %v469_v32  ;;  %v3060_v41 = vcombine.high %v549_v33, %v581_v34  ;;  %2705 = vmatprep.mubr.msk.f32.mxu1 %vm613_vm0, %v470_v35  ;;  %v420_v42 = vrot.slane %v406_v13, %v3001_v27 }
  0xa3   :  { %v301_v43 = vcombine.low %v245_v17, %v261_v36  ;;  %v302_v44 = vcombine.high %v245_v17, %v261_v36  ;;  %v317_v45 = vcombine.low %v252_v18, %v268_v37  ;;  %v318_v46 = vcombine.high %v252_v18, %v268_v37 }
  0xa4   :  { %v165_v47 = vcombine.low %v109_v19, %v125_v38  ;;  %v166_v48 = vcombine.high %v109_v19, %v125_v38  ;;  %v181_v49 = vcombine.low %v116_v20, %v132_v39  ;;  %v182_v50 = vcombine.high %v116_v20, %v132_v39 }
  0xa5   :  { %v309_v51 = vrot.slane %v301_v43, %v3001_v27  ;;  %v316_v52 = vrot.slane %v302_v44, %v3001_v27  ;;  %v325_v53 = vrot.slane %v317_v45, %v3001_v27  ;;  %v332_v54 = vrot.slane %v318_v46, %v3001_v27 }
  0xa6   :  { %v173_v55 = vrot.slane %v165_v47, %v3001_v27  ;;  %v180_v56 = vrot.slane %v166_v48, %v3001_v27  ;;  %v189_v57 = vrot.slane %v181_v49, %v3001_v27  ;;  %v196_v58 = vrot.slane %v182_v50, %v3001_v27 }
  0xa7   :  { %v2559_v59 = vcombine.low %v309_v51, %v316_v52  ;;  %v2561_v60 = vcombine.high %v309_v51, %v316_v52  ;;  %v2563_v61 = vcombine.low %v325_v53, %v332_v54  ;;  %v2565_v2 = vcombine.high %v325_v53, %v332_v54 }
  0xa8   :  { %v2551_v3 = vcombine.low %v173_v55, %v180_v56  ;;  %v2553_v4 = vcombine.high %v173_v55, %v180_v56  ;;  %v2555_v5 = vcombine.low %v189_v57, %v196_v58  ;;  %v2557_v8 = vcombine.high %v189_v57, %v196_v58 }
  0xa9   :  { %v492_v9 = vrot.slane %v2559_v59, %v2997_v16  ;;  %v508_v10 = vrot.slane %v2561_v60, %v2997_v16  ;;  %v524_v11 = vrot.slane %v2563_v61, %v2997_v16  ;;  %v540_v12 = vrot.slane %v2565_v2, %v2997_v16 }
  0xaa   :  { %v356_v13 = vrot.slane %v2551_v3, %v2997_v16  ;;  %v372_v14 = vrot.slane %v2553_v4, %v2997_v16  ;;  %v388_v17 = vrot.slane %v2555_v5, %v2997_v16  ;;  %v404_v18 = vrot.slane %v2557_v8, %v2997_v16 }
  0xab   :  { %v3087_v20 = vpack.c.bf16 %v3057_v40, %v469_v32  ;;  %v3090_v21 = vpack.c.bf16 %v3060_v41, %v470_v35  ;;  %v452_v22 = vrot.slane %v438_v15, %v3001_v27  ;;  %v542_v23 = vcombine.high %v3018_v62, %v3021_v63 }
  0xac   :  { %v574_v24 = vcombine.high %v3024_v0, %v3027_v1  ;;  %v421_v25 = vcombine.low %v356_v13, %v372_v14  ;;  %v453_v26 = vcombine.low %v388_v17, %v404_v18  ;;  %v557_v28 = vcombine.low %v492_v9, %v508_v10 }
  0xad   :  { %2808 = vmatprep.subr.msk.bf16.mxu0 %vm3082_vm1, %v3087_v20  ;;  %2814 = vmatprep.subr.msk.bf16.mxu1 %vm3082_vm1, %v3090_v21  ;;  %v471_v29 = vcombine.low %v420_v42, %v452_v22  ;;  %v556_v6 = vrot.slane %v542_v23, %v3001_v27  ;;  %v472_v7 = vcombine.high %v420_v42, %v452_v22 }
  0xae   :  { %2811 = vmatpush3.bf16.xpose.msk.msra.mxu0 %vm3082_vm1, %v3087_v20  ;;  %2817 = vmatpush3.bf16.xpose.msk.msra.mxu1 %vm3082_vm1, %v3090_v21  ;;  %v588_v62 = vrot.slane %v574_v24, %v3001_v27  ;;  %v429_v63 = vrot.slane %v421_v25, %v3001_v27  ;;  %v461_v0 = vrot.slane %v453_v26, %v3001_v27 }
  0xaf   :  { %v565_v1 = vrot.slane %v557_v28, %v3001_v27  ;;  %v589_v15 = vcombine.low %v524_v11, %v540_v12  ;;  %v422_v32 = vcombine.high %v356_v13, %v372_v14  ;;  %v454_v36 = vcombine.high %v388_v17, %v404_v18 }
  0xb0   :  { %v607_v30 = vcombine.low %v556_v6, %v588_v62  ;;  %v608_v31 = vcombine.high %v556_v6, %v588_v62  ;;  %v473_v33 = vcombine.low %v429_v63, %v461_v0  ;;  %v474_v35 = vcombine.high %v429_v63, %v461_v0 }
  0xb1   :  { %v597_v34 = vrot.slane %v589_v15, %v3001_v27  ;;  %v558_v39 = vcombine.high %v492_v9, %v508_v10  ;;  %v590_v42 = vcombine.high %v524_v11, %v540_v12  ;;  %v436_v47 = vrot.slane %v422_v32, %v3001_v27 }
  0xb2   :  { %v2818_v37 = vpack.c.bf16 %v607_v30, %v471_v29  ;;  %v2824_v38 = vpack.c.bf16 %v608_v31, %v472_v7  ;;  %v468_v48 = vrot.slane %v454_v36, %v3001_v27 }
  0xb3   :  { %v609_v43 = vcombine.low %v565_v1, %v597_v34  ;;  %v610_v44 = vcombine.high %v565_v1, %v597_v34  ;;  %v572_v49 = vrot.slane %v558_v39, %v3001_v27  ;;  %v604_v50 = vrot.slane %v590_v42, %v3001_v27 }
  0xb4   :  { %2820 = vmatprep.subr.msk.bf16.mxu0 %vm3082_vm1, %v2818_v37  ;;  %2826 = vmatprep.subr.msk.bf16.mxu1 %vm3082_vm1, %v2824_v38  ;;  %v476_v51 = vcombine.high %v436_v47, %v468_v48 }
  0xb5   :  { %2699 = vmatmul.mubr.msk.f32.vlgmr.msra.gmra.mrb[0].mxu0 %vm613_vm0, %v3057_v40  ;;  %2706 = vmatmul.mubr.msk.f32.vlgmr.msra.gmra.mrb[0].mxu1 %vm613_vm0, %v3060_v41  ;;  %v2830_v45 = vpack.c.bf16 %v609_v43, %v473_v33  ;;  %v2836_v46 = vpack.c.bf16 %v610_v44, %v474_v35  ;;  %v475_v40 = vcombine.low %v436_v47, %v468_v48 }
  0xb6   :  { %2823 = vmatpush3.bf16.xpose.msk.msra.mxu0 %vm3082_vm1, %v2818_v37  ;;  %2712 = vmatprep.mubr.msk.f32.mxu0 %vm613_vm0, %v471_v29  ;;  %v611_v41 = vcombine.low %v572_v49, %v604_v50  ;;  %v612_v52 = vcombine.high %v572_v49, %v604_v50 }
  0xb7   :  { %2829 = vmatpush3.bf16.xpose.msk.msra.mxu1 %vm3082_vm1, %v2824_v38  ;;  %2719 = vmatprep.mubr.msk.f32.mxu1 %vm613_vm0, %v472_v7 }
  0xb8   :  { %2832 = vmatprep.subr.msk.bf16.mxu0 %vm3082_vm1, %v2830_v45  ;;  %2838 = vmatprep.subr.msk.bf16.mxu1 %vm3082_vm1, %v2836_v46  ;;  %v2842_v53 = vpack.c.bf16 %v611_v41, %v475_v40  ;;  %v2848_v54 = vpack.c.bf16 %v612_v52, %v476_v51 }
  0xbd   :  { %2713 = vmatmul.mubr.msk.f32.vlgmr.msra.gmra.mrb[2].mxu0 %vm613_vm0, %v607_v30 }
  0xbe   :  { %2720 = vmatmul.mubr.msk.f32.vlgmr.msra.gmra.mrb[2].mxu1 %vm613_vm0, %v608_v31  ;;  %2835 = vmatpush3.bf16.xpose.msk.msra.mxu0 %vm3082_vm1, %v2830_v45 }
  0xbf   :  { %2726 = vmatprep.mubr.msk.f32.mxu0 %vm613_vm0, %v473_v33  ;;  %2841 = vmatpush3.bf16.xpose.msk.msra.mxu1 %vm3082_vm1, %v2836_v46 }
  0xc0   :  { %2733 = vmatprep.mubr.msk.f32.mxu1 %vm613_vm0, %v474_v35  ;;  %2844 = vmatprep.subr.msk.bf16.mxu0 %vm3082_vm1, %v2842_v53 }
  0xc1   :  { %2850 = vmatprep.subr.msk.bf16.mxu1 %vm3082_vm1, %v2848_v54 }
  0xc5   :  { %2727 = vmatmul.mubr.msk.f32.vlgmr.msra.gmra.mrb[4].mxu0 %vm613_vm0, %v609_v43 }
  0xc6   :  { %2734 = vmatmul.mubr.msk.f32.vlgmr.msra.gmra.mrb[4].mxu1 %vm613_vm0, %v610_v44  ;;  %2847 = vmatpush3.bf16.xpose.msk.msra.mxu0 %vm3082_vm1, %v2842_v53 }
  0xc7   :  { %2740 = vmatprep.mubr.msk.f32.mxu0 %vm613_vm0, %v475_v40  ;;  %2853 = vmatpush3.bf16.xpose.msk.msra.mxu1 %vm3082_vm1, %v2848_v54 }
  0xc8   :  { %2747 = vmatprep.mubr.msk.f32.mxu1 %vm613_vm0, %v476_v51  ;;  %2855 = vmatprep.subr.bf16.mxu0 %v3087_v20 }
  0xc9   :  { %2859 = vmatprep.subr.bf16.mxu1 %v3090_v21 }
  0xcd   :  { %2741 = vmatmul.mubr.msk.f32.vlgmr.msra.gmra.mrb[6].mxu0 %vm613_vm0, %v611_v41 }
  0xce   :  { %2748 = vmatmul.mubr.msk.f32.vlgmr.msra.gmra.mrb[6].mxu1 %vm613_vm0, %v612_v52  ;;  %2857 = vmatpush3.bf16.msra.mxu0 %v3087_v20 }
  0xcf   :  { %2861 = vmatpush3.bf16.msra.mxu1 %v3090_v21  ;;  %2863 = vmatprep.subr.bf16.mxu0 %v2818_v37 }
  0xd0   :  { %2867 = vmatprep.subr.bf16.mxu1 %v2824_v38 }
 0x188   :  { %v2700_v55 = vpop.f32.mrb[0].mxu0  ;;  %v2707_v56 = vpop.f32.mrb[0].mxu1 }
 0x189   :  { %v686_v57 = vpop.f32.mrb[1].mxu0  ;;  %v767_v58 = vpop.f32.mrb[1].mxu1 }
 0x18a   :  { %2754 = vmatprep.mubr.msk.f32.mxu0 %vm1262_vm2, %v686_v57  ;;  %2761 = vmatprep.mubr.msk.f32.mxu1 %vm1262_vm2, %v767_v58 }
 0x18b   :  { %2755 = vmatmul.mubr.msk.f32.vlgmr.msra.gmra.mrb[8].mxu0 %vm1262_vm2, %v2700_v55  ;;  %2762 = vmatmul.mubr.msk.f32.vlgmr.msra.gmra.mrb[8].mxu1 %vm1262_vm2, %v2707_v56 }
 0x18c   :  { %2865 = vmatpush3.bf16.msra.mxu0 %v2818_v37  ;;  %2869 = vmatpush3.bf16.msra.mxu1 %v2824_v38 }
 0x18d   :  { %2871 = vmatprep.subr.bf16.mxu0 %v2830_v45  ;;  %2875 = vmatprep.subr.bf16.mxu1 %v2836_v46 }
 0x190   :  { %v2714_v59 = vpop.f32.mrb[2].mxu0 }
 0x191   :  { %v2721_v60 = vpop.f32.mrb[2].mxu1  ;;  %v848_v61 = vpop.f32.mrb[3].mxu0 }
 0x192   :  { %v929_v2 = vpop.f32.mrb[3].mxu1  ;;  %2768 = vmatprep.mubr.msk.f32.mxu0 %vm1262_vm2, %v848_v61 }
 0x193   :  { %2775 = vmatprep.mubr.msk.f32.mxu1 %vm1262_vm2, %v929_v2  ;;  %2769 = vmatmul.mubr.msk.f32.vlgmr.msra.gmra.mrb[10].mxu0 %vm1262_vm2, %v2714_v59 }
 0x194   :  { %2776 = vmatmul.mubr.msk.f32.vlgmr.msra.gmra.mrb[10].mxu1 %vm1262_vm2, %v2721_v60  ;;  %2873 = vmatpush3.bf16.msra.mxu0 %v2830_v45 }
 0x195   :  { %2877 = vmatpush3.bf16.msra.mxu1 %v2836_v46  ;;  %2879 = vmatprep.subr.bf16.mxu0 %v2842_v53 }
 0x196   :  { %2883 = vmatprep.subr.bf16.mxu1 %v2848_v54 }
 0x198   :  { %v2728_v3 = vpop.f32.mrb[4].mxu0 }
 0x199   :  { %v2735_v4 = vpop.f32.mrb[4].mxu1  ;;  %v1010_v5 = vpop.f32.mrb[5].mxu0 }
 0x19a   :  { %v1091_v8 = vpop.f32.mrb[5].mxu1  ;;  %2782 = vmatprep.mubr.msk.f32.mxu0 %vm1262_vm2, %v1010_v5 }
 0x19b   :  { %2789 = vmatprep.mubr.msk.f32.mxu1 %vm1262_vm2, %v1091_v8  ;;  %2783 = vmatmul.mubr.msk.f32.vlgmr.msra.gmra.mrb[12].mxu0 %vm1262_vm2, %v2728_v3 }
 0x19c   :  { %2790 = vmatmul.mubr.msk.f32.vlgmr.msra.gmra.mrb[12].mxu1 %vm1262_vm2, %v2735_v4  ;;  %2881 = vmatpush3.bf16.msra.mxu0 %v2842_v53 }
 0x19d   :  { %2885 = vmatpush3.bf16.msra.mxu1 %v2848_v54 }
 0x1a0   :  { %v2742_v9 = vpop.f32.mrb[6].mxu0 }
 0x1a1   :  { %v2749_v10 = vpop.f32.mrb[6].mxu1  ;;  %v1172_v11 = vpop.f32.mrb[7].mxu0 }
 0x1a2   :  { %v1253_v12 = vpop.f32.mrb[7].mxu1  ;;  %2796 = vmatprep.mubr.msk.f32.mxu0 %vm1262_vm2, %v1172_v11 }
 0x1a3   :  { %2803 = vmatprep.mubr.msk.f32.mxu1 %vm1262_vm2, %v1253_v12  ;;  %2797 = vmatmul.mubr.msk.f32.vlgmr.msra.gmra.mrb[14].mxu0 %vm1262_vm2, %v2742_v9 }
 0x1a4   :  { %2804 = vmatmul.mubr.msk.f32.vlgmr.msra.gmra.mrb[14].mxu1 %vm1262_vm2, %v2749_v10 }
 0x25e   :  { %v2756_v13 = vpop.f32.mrb[8].mxu0  ;;  %v2763_v14 = vpop.f32.mrb[8].mxu1 }
 0x25f   :  { %v1335_v17 = vpop.f32.mrb[9].mxu0  ;;  %v1416_v18 = vpop.f32.mrb[9].mxu1 }
 0x266   :  { %v2770_v19 = vpop.f32.mrb[10].mxu0 }
 0x267   :  { %v2047_v20 = vcombine.low %v2756_v13, %v2770_v19  ;;  %v2048_v21 = vcombine.high %v2756_v13, %v2770_v19  ;;  %v2777_v22 = vpop.f32.mrb[10].mxu1  ;;  %v1497_v23 = vpop.f32.mrb[11].mxu0 }
 0x268   :  { %v2063_v24 = vcombine.low %v2763_v14, %v2777_v22  ;;  %v2064_v25 = vcombine.high %v2763_v14, %v2777_v22  ;;  %v1911_v26 = vcombine.low %v1335_v17, %v1497_v23  ;;  %v1912_v28 = vcombine.high %v1335_v17, %v1497_v23  ;;  %v1578_v29 = vpop.f32.mrb[11].mxu1 }
 0x269   :  { %v2055_v6 = vrot.slane %v2047_v20, %v2997_v16  ;;  %v2062_v7 = vrot.slane %v2048_v21, %v2997_v16  ;;  %v1927_v62 = vcombine.low %v1416_v18, %v1578_v29  ;;  %v1928_v63 = vcombine.high %v1416_v18, %v1578_v29 }
 0x26a   :  { %v2071_v0 = vrot.slane %v2063_v24, %v2997_v16  ;;  %v2078_v1 = vrot.slane %v2064_v25, %v2997_v16  ;;  %v1919_v15 = vrot.slane %v1911_v26, %v2997_v16  ;;  %v1926_v30 = vrot.slane %v1912_v28, %v2997_v16 }
 0x26b   :  { %v1935_v31 = vrot.slane %v1927_v62, %v2997_v16  ;;  %v1942_v32 = vrot.slane %v1928_v63, %v2997_v16 }
 0x26c   :  { %v2111_v33 = vcombine.low %v2055_v6, %v2071_v0  ;;  %v2112_v34 = vcombine.high %v2055_v6, %v2071_v0  ;;  %v2127_v35 = vcombine.low %v2062_v7, %v2078_v1  ;;  %v2128_v36 = vcombine.high %v2062_v7, %v2078_v1 }
 0x26d   :  { %v1975_v37 = vcombine.low %v1919_v15, %v1935_v31  ;;  %v1976_v38 = vcombine.high %v1919_v15, %v1935_v31  ;;  %v1991_v39 = vcombine.low %v1926_v30, %v1942_v32  ;;  %v1992_v42 = vcombine.high %v1926_v30, %v1942_v32 }
 0x26e   :  { %v2119_v43 = vrot.slane %v2111_v33, %v3001_v27  ;;  %v2126_v44 = vrot.slane %v2112_v34, %v3001_v27  ;;  %v2135_v45 = vrot.slane %v2127_v35, %v3001_v27  ;;  %v2142_v46 = vrot.slane %v2128_v36, %v3001_v27  ;;  %v2784_v47 = vpop.f32.mrb[12].mxu0 }
 0x26f   :  { %v1983_v48 = vrot.slane %v1975_v37, %v3001_v27  ;;  %v1990_v49 = vrot.slane %v1976_v38, %v3001_v27  ;;  %v1999_v50 = vrot.slane %v1991_v39, %v3001_v27  ;;  %v2006_v40 = vrot.slane %v1992_v42, %v3001_v27  ;;  %v2791_v41 = vpop.f32.mrb[12].mxu1  ;;  %v1659_v51 = vpop.f32.mrb[13].mxu0 }
 0x270   :  { %v1740_v52 = vpop.f32.mrb[13].mxu1  ;;  %v2622_v53 = vcombine.low %v2119_v43, %v2126_v44  ;;  %v2624_v54 = vcombine.high %v2119_v43, %v2126_v44  ;;  %v2626_v55 = vcombine.low %v2135_v45, %v2142_v46  ;;  %v2628_v56 = vcombine.high %v2135_v45, %v2142_v46 }
 0x271   :  { %v2614_v57 = vcombine.low %v1983_v48, %v1990_v49  ;;  %v2616_v58 = vcombine.high %v1983_v48, %v1990_v49  ;;  %v2618_v59 = vcombine.low %v1999_v50, %v2006_v40  ;;  %v2620_v60 = vcombine.high %v1999_v50, %v2006_v40 }
 0x272   :  { %v2327_v61 = vrot.slane %v2622_v53, %v2997_v16  ;;  %v2343_v2 = vrot.slane %v2624_v54, %v2997_v16  ;;  %v2359_v3 = vrot.slane %v2626_v55, %v2997_v16  ;;  %v2375_v4 = vrot.slane %v2628_v56, %v2997_v16 }
 0x273   :  { %v3203_v5 = vrot.slane %v2614_v57, %v2997_v16  ;;  %v3206_v8 = vrot.slane %v2616_v58, %v2997_v16  ;;  %v3209_v9 = vrot.slane %v2618_v59, %v2997_v16  ;;  %v3212_v10 = vrot.slane %v2620_v60, %v2997_v16 }
 0x274   :  { %v2383_v11 = vcombine.low %v2327_v61, %v2343_v2  ;;  %v2415_v12 = vcombine.low %v2359_v3, %v2375_v4  ;;  %v2384_v13 = vcombine.high %v2327_v61, %v2343_v2  ;;  %v2416_v14 = vcombine.high %v2359_v3, %v2375_v4 }
 0x275   :  { %v2247_v17 = vcombine.low %v3203_v5, %v3206_v8  ;;  %v2279_v18 = vcombine.low %v3209_v9, %v3212_v10  ;;  %v2248_v19 = vcombine.high %v3203_v5, %v3206_v8  ;;  %v2280_v20 = vcombine.high %v3209_v9, %v3212_v10 }
 0x276   :  { %v2798_v21 = vpop.f32.mrb[14].mxu0  ;;  %v3223_v22 = vrot.slane %v2383_v11, %v3001_v27  ;;  %v3226_v23 = vrot.slane %v2415_v12, %v3001_v27  ;;  %v3229_v24 = vrot.slane %v2384_v13, %v3001_v27  ;;  %v3232_v25 = vrot.slane %v2416_v14, %v3001_v27 }
 0x277   :  { %v2079_v26 = vcombine.low %v2784_v47, %v2798_v21  ;;  %v2080_v28 = vcombine.high %v2784_v47, %v2798_v21  ;;  %v2805_v29 = vpop.f32.mrb[14].mxu1  ;;  %v1821_v6 = vpop.f32.mrb[15].mxu0  ;;  %v3235_v7 = vrot.slane %v2247_v17, %v3001_v27  ;;  %v3238_v62 = vrot.slane %v2279_v18, %v3001_v27 }
 0x278   :  { %v2095_v63 = vcombine.low %v2791_v41, %v2805_v29  ;;  %v2096_v0 = vcombine.high %v2791_v41, %v2805_v29  ;;  %v1943_v1 = vcombine.low %v1659_v51, %v1821_v6  ;;  %v1944_v15 = vcombine.high %v1659_v51, %v1821_v6  ;;  %v1902_v30 = vpop.f32.mrb[15].mxu1 }
 0x279   :  { %v2087_v31 = vrot.slane %v2079_v26, %v2997_v16  ;;  %v2094_v32 = vrot.slane %v2080_v28, %v2997_v16  ;;  %v1959_v33 = vcombine.low %v1740_v52, %v1902_v30  ;;  %v1960_v34 = vcombine.high %v1740_v52, %v1902_v30 }
 0x27a   :  { %v2103_v35 = vrot.slane %v2095_v63, %v2997_v16  ;;  %v2110_v36 = vrot.slane %v2096_v0, %v2997_v16  ;;  %v1951_v37 = vrot.slane %v1943_v1, %v2997_v16  ;;  %v1958_v38 = vrot.slane %v1944_v15, %v2997_v16 }
 0x27b   :  { %v1967_v39 = vrot.slane %v1959_v33, %v2997_v16  ;;  %v1974_v42 = vrot.slane %v1960_v34, %v2997_v16  ;;  %v2448_v43 = vcombine.high %v3223_v22, %v3226_v23  ;;  %v2447_v44 = vcombine.low %v3223_v22, %v3226_v23 }
 0x27c   :  { %v2143_v45 = vcombine.low %v2087_v31, %v2103_v35  ;;  %v2144_v46 = vcombine.high %v2087_v31, %v2103_v35  ;;  %v2159_v47 = vcombine.low %v2094_v32, %v2110_v36  ;;  %v2160_v48 = vcombine.high %v2094_v32, %v2110_v36 }
 0x27d   :  { %v2007_v49 = vcombine.low %v1951_v37, %v1967_v39  ;;  %v2008_v50 = vcombine.high %v1951_v37, %v1967_v39  ;;  %v2023_v40 = vcombine.low %v1958_v38, %v1974_v42  ;;  %v2024_v41 = vcombine.high %v1958_v38, %v1974_v42  ;;  %2459 = vrot.lane.b32.xlu1 %v2448_v43, %s2955_s17 }
 0x27e   :  { %v2151_v51 = vrot.slane %v2143_v45, %v3001_v27  ;;  %v2158_v52 = vrot.slane %v2144_v46, %v3001_v27  ;;  %v2167_v53 = vrot.slane %v2159_v47, %v3001_v27  ;;  %v2174_v54 = vrot.slane %v2160_v48, %v3001_v27 }
 0x27f   :  { %v2015_v55 = vrot.slane %v2007_v49, %v3001_v27  ;;  %v2022_v56 = vrot.slane %v2008_v50, %v3001_v27  ;;  %v2031_v57 = vrot.slane %v2023_v40, %v3001_v27  ;;  %v2038_v58 = vrot.slane %v2024_v41, %v3001_v27 }
 0x280   :  { %v2623_v59 = vcombine.low %v2151_v51, %v2158_v52  ;;  %v2625_v60 = vcombine.high %v2151_v51, %v2158_v52  ;;  %v2627_v61 = vcombine.low %v2167_v53, %v2174_v54  ;;  %v2629_v2 = vcombine.high %v2167_v53, %v2174_v54 }
 0x281   :  { %v2615_v3 = vcombine.low %v2015_v55, %v2022_v56  ;;  %v2617_v4 = vcombine.high %v2015_v55, %v2022_v56  ;;  %v2619_v5 = vcombine.low %v2031_v57, %v2038_v58  ;;  %v2621_v8 = vcombine.high %v2031_v57, %v2038_v58 }
 0x282   :  { %v2312_v9 = vcombine.high %v3235_v7, %v3238_v62  ;;  %v2311_v10 = vcombine.low %v3235_v7, %v3238_v62  ;;  %v2449_v11 = vcombine.low %v3229_v24, %v3232_v25  ;;  %v2262_v12 = vrot.slane %v2248_v19, %v3001_v27 }
 0x283   :  { %v2294_v13 = vrot.slane %v2280_v20, %v3001_v27  ;;  %v2450_v14 = vcombine.high %v3229_v24, %v3232_v25  ;;  %v2334_v17 = vrot.slane %v2623_v59, %v2997_v16  ;;  %v2350_v18 = vrot.slane %v2625_v60, %v2997_v16 }
 0x284   :  { %2457 = vrot.lane.b32.xlu0 %v2312_v9, %s2955_s17  ;;  %2467 = vrot.lane.b32.xlu1 %v2449_v11, %s2965_s26  ;;  %v2366_v21 = vrot.slane %v2627_v61, %v2997_v16  ;;  %v2382_v26 = vrot.slane %v2629_v2, %v2997_v16  ;;  %v2198_v28 = vrot.slane %v2615_v3, %v2997_v16 }
 0x285   :  { %v2313_v19 = vcombine.low %v2262_v12, %v2294_v13  ;;  %v2314_v29 = vcombine.high %v2262_v12, %v2294_v13  ;;  %v2399_v20 = vcombine.low %v2334_v17, %v2350_v18  ;;  %v2214_v6 = vrot.slane %v2617_v4, %v2997_v16 }
 0x286   :  { %v2431_v24 = vcombine.low %v2366_v21, %v2382_v26  ;;  %v2230_v25 = vrot.slane %v2619_v5, %v2997_v16  ;;  %v2246_v63 = vrot.slane %v2621_v8, %v2997_v16  ;;  %v2400_v0 = vcombine.high %v2334_v17, %v2350_v18 }
 0x287   :  { %v2407_v1 = vrot.slane %v2399_v20, %v3001_v27  ;;  %v2263_v15 = vcombine.low %v2198_v28, %v2214_v6  ;;  %v2432_v30 = vcombine.high %v2366_v21, %v2382_v26  ;;  %v2264_v31 = vcombine.high %v2198_v28, %v2214_v6 }
 0x288   :  { %2465 = vrot.lane.b32.xlu0 %v2313_v19, %s2965_s26  ;;  %2475 = vrot.lane.b32.xlu1 %v2450_v14, %s2966_s27  ;;  %v2439_v32 = vrot.slane %v2431_v24, %v3001_v27  ;;  %v2295_v33 = vcombine.low %v2230_v25, %v2246_v63  ;;  %v2414_v34 = vrot.slane %v2400_v0, %v3001_v27 }
 0x289   :  { %v2271_v35 = vrot.slane %v2263_v15, %v3001_v27  ;;  %v2446_v36 = vrot.slane %v2432_v30, %v3001_v27  ;;  %v2278_v16 = vrot.slane %v2264_v31, %v3001_v27  ;;  %v2296_v37 = vcombine.high %v2230_v25, %v2246_v63 }
 0x28a   :  { %v2451_v38 = vcombine.low %v2407_v1, %v2439_v32  ;;  %v2303_v39 = vrot.slane %v2295_v33, %v3001_v27  ;;  %v2452_v42 = vcombine.high %v2407_v1, %v2439_v32 }
 0x28b   :  { %v2453_v43 = vcombine.low %v2414_v34, %v2446_v36  ;;  %v2310_v45 = vrot.slane %v2296_v37, %v3001_v27  ;;  %v2454_v46 = vcombine.high %v2414_v34, %v2446_v36 }
 0x28c   :  { %2473 = vrot.lane.b32.xlu0 %v2314_v29, %s2966_s27  ;;  %2483 = vrot.lane.b32.xlu1 %v2451_v38, %s2967_s28  ;;  %v2315_v47 = vcombine.low %v2271_v35, %v2303_v39  ;;  %v2316_v48 = vcombine.high %v2271_v35, %v2303_v39 }
 0x28d   :  { %v2317_v49 = vcombine.low %v2278_v16, %v2310_v45  ;;  %v2318_v50 = vcombine.high %v2278_v16, %v2310_v45 }
 0x290   :  { %2481 = vrot.lane.b32.xlu0 %v2315_v47, %s2967_s28  ;;  %2491 = vrot.lane.b32.xlu1 %v2452_v42, %s2968_s29 }
 0x294   :  { %2489 = vrot.lane.b32.xlu0 %v2316_v48, %s2968_s29  ;;  %2499 = vrot.lane.b32.xlu1 %v2453_v43, %s2969_s30 }
 0x298   :  { %2497 = vrot.lane.b32.xlu0 %v2317_v49, %s2969_s30  ;;  %2507 = vrot.lane.b32.xlu1 %v2454_v46, %s2970_s2 }
 0x29c   :  { %2505 = vrot.lane.b32.xlu0 %v2318_v50, %s2970_s2 }
 0x2ef   :  { %v2460_v40 = vpop.permute.xlu1 %2459 }
 0x2f0   :  { %v2512_v57 = vsel %vm613_vm0, %v2447_v44, %v2460_v40 }
 0x2f6   :  { %v2458_v27 = vpop.permute.xlu0 %2457  ;;  %v2468_v41 = vpop.permute.xlu1 %2467 }
 0x2f7   :  { %v2514_v58 = vsel %vm1262_vm2, %v2512_v57, %v2468_v41  ;;  %v2511_v3 = vsel %vm613_vm0, %v2311_v10, %v2458_v27 }
 0x2fa   :  { %v2466_v51 = vpop.permute.xlu0 %2465  ;;  %v2476_v52 = vpop.permute.xlu1 %2475 }
 0x2fb   :  { %v2517_v61 = vsel %vm2515_vm3, %v2514_v58, %v2476_v52  ;;  %v2513_v23 = vsel %vm1262_vm2, %v2511_v3, %v2466_v51 }
 0x2fe   :  { %v2474_v53 = vpop.permute.xlu0 %2473  ;;  %v2484_v54 = vpop.permute.xlu1 %2483 }
 0x2ff   :  { %v2520_v2 = vsel %vm2518_vm4, %v2517_v61, %v2484_v54  ;;  %v2516_v8 = vsel %vm2515_vm3, %v2513_v23, %v2474_v53 }
 0x302   :  { %v2482_v55 = vpop.permute.xlu0 %2481  ;;  %v2492_v56 = vpop.permute.xlu1 %2491 }
 0x303   :  { %v2523_v22 = vsel %vm2521_vm5, %v2520_v2, %v2492_v56  ;;  %v2519_v11 = vsel %vm2518_vm4, %v2516_v8, %v2482_v55 }
 0x306   :  { %v2490_v59 = vpop.permute.xlu0 %2489  ;;  %v2500_v60 = vpop.permute.xlu1 %2499 }
 0x307   :  { %v2526_v44 = vsel %vm2524_vm6, %v2523_v22, %v2500_v60  ;;  %v2522_v7 = vsel %vm2521_vm5, %v2519_v11, %v2490_v59 }
 0x30a   :  { %v2498_v4 = vpop.permute.xlu0 %2497  ;;  %v2508_v5 = vpop.permute.xlu1 %2507 }
 0x30b   :  { %v2529_v9 = vsel %vm2527_vm7, %v2526_v44, %v2508_v5  ;;  %v2525_v62 = vsel %vm2524_vm6, %v2522_v7, %v2498_v4 }
 0x30c   :  { %2532 = vst.msk [vmem:[#allocation5 + $0x8] sm:$0xff] %vm2530_vm8, %v2529_v9 }
 0x30e   :  { %v2506_v10 = vpop.permute.xlu0 %2505 }
 0x30f   :  { %v2528_v12 = vsel %vm2527_vm7, %v2525_v62, %v2506_v10 }
 0x310   :  { %2531 = vst.msk [vmem:[#allocation5] sm:$0xff] %vm2530_vm8, %v2528_v12 }
 0x311   :  { %2938 = shalt.err (!%p2935_p12)
}
 0x312   :  { %s2939_s8 = scalar_lea.hbm %s3326_s1, 256 }
 0x313   :  { %p2940_p13 = scmp.ne.s32.totalorder %s3326_s1, %s2939_s8  ;;  %p2943_p0 = scmp.lt.u32.totalorder %s2939_s8, %s3326_s1 }
 0x315   :  { %p2945_p1 = pnand %p2943_p0, %p2940_p13 }
 0x317   :  { %2948 = shalt.err (!%p2945_p1)
}
 0x318   :  { %2544 = dma.vmem_to_hbm [thread:$0]  %s2539_s4, 256, %s3326_s1, [#allocation4], %s2954_s16, %s2954_s16, %s2955_s17  }
 0x319   :  { %2951 = dma.done.wait [#allocation4], 256  }
 0x31a   :  { %2952 = vsyncadd [#allocation4], 4294967040 }
 0x31b   :  { %2548 = vsyncpa [#allocation3], 1 }
 0x31c   :  { %2549 = vsyncpa [#allocation4], 1 }

// kernel: tpu_custom_call.1
= control target key start
LH: loop header
LB: loop body
LE: loop exit
PB: predicated region body
PF: predicated region fallthrough
CT: control target
= control target key end

     0   :  { %v10306_v2 = vmov 0   ;;  %s12449_s0 = inlined_call_operand.vmem [shape: f32[32,2], index: 0, kind: input, shape index: {}]   ;;  %s12450_s1 = inlined_call_operand.vmem [shape: f32[2,32], index: 1, kind: input, shape index: {}]   ;;  %s12451_s2 = inlined_call_operand.vmem [shape: f32[1,32], index: 2, kind: input, shape index: {}]   ;;  %s12452_s3 = inlined_call_operand.vmem [shape: f32[32,32], index: 3, kind: input, shape index: {}]   ;;  %s12453_s4 = inlined_call_operand.vmem [shape: f32[8,16], index: 4, kind: input, shape index: {}]   ;;  %s12454_s5 = inlined_call_operand.vmem [shape: f32[32,192], index: 5, kind: input, shape index: {}]   ;;  %s12455_s6 = inlined_call_operand.vmem [shape: f32[64,32], index: 6, kind: input, shape index: {}]   ;;  %s12456_s7 = inlined_call_operand.vmem [shape: f32[32,64], index: 7, kind: input, shape index: {}]   ;;  %s12457_s8 = inlined_call_operand.vmem [shape: f32[64,32], index: 8, kind: input, shape index: {}]   ;;  %s12458_s9 = inlined_call_operand.vmem [shape: f32[8,192], index: 9, kind: input, shape index: {}]   ;;  %s12459_s10 = inlined_call_operand.vmem [shape: f32[32,192], index: 10, kind: input, shape index: {}]   ;;  %s12460_s11 = inlined_call_operand.vmem [shape: f32[64,32], index: 11, kind: input, shape index: {}]   ;;  %s12461_s12 = inlined_call_operand.vmem [shape: f32[32,64], index: 12, kind: input, shape index: {}]   ;;  %s12462_s13 = inlined_call_operand.vmem [shape: f32[64,32], index: 13, kind: input, shape index: {}]   ;;  %s12463_s14 = inlined_call_operand.vmem [shape: f32[8,192], index: 14, kind: input, shape index: {}]   ;;  %s12464_s15 = inlined_call_operand.hbm [shape: f32[2,8,32], index: 15, kind: output, shape index: {}]  }
   0x1   :  { %v52_v0 = vld [vmem:[%s12449_s0 + $0x8] sm:$0xff]  ;;  %v51_v1 = vld [vmem:[%s12449_s0] sm:$0xff]  ;;  %9689 = vset.pattern.permute.xlu1 %v10306_v2  ;;  %9687 = vset.pattern.permute.xlu0 %v10306_v2 }
   0x2   :  { %20 = vsyncpa [#allocation3], 0  ;;  %63 = vperm.xlu1 %9689, %v52_v0   ;;  %58 = vperm.xlu0 %9687, %v51_v1   ;;  %v10307_v3 = vmov 1   ;;  %v145_v4 = vld [vmem:[%s12454_s5 + $0x8] sm:$0xff]  ;;  %v147_v5 = vld [vmem:[%s12454_s5 + $0x18] sm:$0xff]  ;;  %v10308_v16 = vmov 0.0   ;;  %v153_v38 = vlaneseq }
   0x3   :  { %v9243_v6 = vpack.c.bf16 %v147_v5, %v145_v4  ;;  %v144_v7 = vld [vmem:[%s12454_s5] sm:$0xff]  ;;  %v146_v8 = vld [vmem:[%s12454_s5 + $0x10] sm:$0xff]  ;;  %v149_v10 = vld [vmem:[%s12454_s5 + $0x28] sm:$0xff]  ;;  %240 = vmatprep.mubr.f32.mxu0 %v10308_v16  ;;  %vm163_vm0 = vcmask 261120   ;;  %vm343_vm1 = vcmask 64512   ;;  %s10309_s17 = smov 120  }
   0x4   :  { %v9245_v9 = vpack.c.bf16 %v146_v8, %v144_v7  ;;  %v151_v11 = vld [vmem:[%s12454_s5 + $0x38] sm:$0xff]  ;;  %v148_v13 = vld [vmem:[%s12454_s5 + $0x20] sm:$0xff]  ;;  %v150_v14 = vld [vmem:[%s12454_s5 + $0x30] sm:$0xff]  ;;  %v10481_v39 = vshrl.u32 %v153_v38, 7  ;;  %s10310_s18 = smov 112   ;;  %s10311_s19 = smov 104  }
   0x5   :  { %9244 = vmatprep.subr.bf16.mxu0 %v9243_v6  ;;  %v9247_v12 = vpack.c.bf16 %v151_v11, %v149_v10  ;;  %v9249_v15 = vpack.c.bf16 %v150_v14, %v148_v13  ;;  %v10447_v19 = vld [vmem:[%s12450_s1] ss:$0 sm:$0xff]  ;;  %v10452_v20 = vld [vmem:[%s12450_s1 + $0x1] ss:$0 sm:$0xff]  ;;  %v129_v36 = vld [vmem:[%s12452_s3 + $0x8] sm:$0xff]  ;;  %s10312_s20 = smov 96  }
   0x6   :  { %9690 = vset.pattern.permute.xlu1 %v10307_v3  ;;  %9688 = vset.pattern.permute.xlu0 %v10307_v3  ;;  %v10461_v27 = vld [vmem:[%s12451_s2] ss:$0 sm:$0xff]  ;;  %v155_v40 = vsub.s32 0, %v10481_v39  ;;  %v159_v43 = vsub.s32 1, %v10481_v39  ;;  %s10313_s21 = smov 88   ;;  %s10314_s22 = smov 80   ;;  %vm10585_vm2 = vmpackc.low %vm343_vm1, %vm343_vm1 }
   0x7   :  { %90 = vperm.xlu1 %9690, %v52_v0   ;;  %86 = vperm.xlu0 %9688, %v51_v1   ;;  %v128_v32 = vld [vmem:[%s12452_s3] sm:$0xff]  ;;  %s10315_s23 = smov 72   ;;  %v53_v55 = vld [vmem:[%s12449_s0 + $0x10] sm:$0xff]  ;;  %s10316_s26 = smov 64   ;;  %v54_v57 = vld [vmem:[%s12449_s0 + $0x18] sm:$0xff]  ;;  %vm1036_vm3 = vcmask 130048  }
   0x8   :  { %9246 = vmatpush1.bf16.msra.mxu0 %v9245_v9  ;;  %v136_v41 = vld [vmem:[%s12458_s9] ss:$8 sm:$0x3]  ;;  %s10318_s30 = smov 16   ;;  %s10319_s2 = smov 24   ;;  %vm1921_vm4 = vcmask 195584  }
   0x9   :  { %9248 = vmatprep.subr.bf16.mxu0 %v9247_v12  ;;  %v10489_v42 = vrot.slane %v136_v41, %v155_v40  ;;  %v10495_v47 = vrot.slane %v136_v41, %v159_v43  ;;  %s10320_s16 = smov 32   ;;  %s12469_s24 = smov 40   ;;  %vm1926_vm5 = vcmask 326656   ;;  %vm1929_vm6 = vcmask 392192  }
   0xa   :  { %s12467_s25 = smov 48   ;;  %s12465_s5 = smov 56   ;;  %vm1932_vm7 = vcmask 457728   ;;  %vm3607_vm8 = vcmask 523264   ;;  %vm10325_vm9 = vmmov 0  }
   0xb   :  { %9691 = vset.pattern.permute.xlu0 %v10306_v2 }
   0xc   :  { %9250 = vmatpush1.bf16.msra.mxu0 %v9249_v15 }
  0x81   :  { %v59_v17 = vpop.permute.xlu0 %58  ;;  %v64_v18 = vpop.permute.xlu1 %63 }
  0x82   :  { %v81_v21 = vmul.f32 %v10447_v19, %v64_v18  ;;  %v80_v24 = vmul.f32 %v10447_v19, %v59_v17 }
  0x86   :  { %v91_v22 = vpop.permute.xlu1 %90  ;;  %v87_v23 = vpop.permute.xlu0 %86 }
  0x87   :  { %v106_v25 = vmul.f32 %v10452_v20, %v91_v22  ;;  %v105_v26 = vmul.f32 %v10452_v20, %v87_v23 }
  0x89   :  { %v110_v28 = vadd.f32 %v106_v25, %v81_v21  ;;  %v109_v29 = vadd.f32 %v105_v26, %v80_v24 }
  0x8b   :  { %v121_v30 = vadd.f32 %v10461_v27, %v110_v28  ;;  %v120_v31 = vadd.f32 %v10461_v27, %v109_v29 }
  0x8d   :  { %v124_v33 = vmax.f32 %v120_v31, 0.0  ;;  %v125_v34 = vmax.f32 %v121_v30, 0.0 }
  0x8f   :  { %v10468_v35 = vadd.f32 %v128_v32, %v124_v33  ;;  %v10476_v37 = vadd.f32 %v129_v36, %v125_v34  ;;  %v130_v34 = vld [vmem:[%s12452_s3 + $0x10] sm:$0xff] }
  0x91   :  { %8113 = vmatmul.mubr.msk.f32.vlgmr.msra.gmra.mrb[0].mxu0 %vm163_vm0, %v10468_v35 }
  0x92   :  { %246 = vmatprep.mubr.f32.mxu0 %v10308_v16 }
  0x95   :  { %8114 = vmatmul.mubr.msk.f32.gmra.mrb[2].mxu0 %vm163_vm0, %v10476_v37 }
  0x96   :  { %252 = vmatprep.mubr.f32.mxu0 %v10308_v16 }
 0x164   :  { %v242_v44 = vpop.f32.mrb[0].mxu0 }
 0x165   :  { %v243_v45 = vadd.f32 %v242_v44, %v10489_v42  ;;  %v244_v46 = vpop.f32.mrb[1].mxu0 }
 0x166   :  { %v245_v51 = vadd.f32 %v244_v46, %v10495_v47 }
 0x167   :  { %267 = vrot.lane.b32.xlu1 %v243_v45, %s10309_s17  ;;  %8669 = vmatprep.mubr.msk.f32.mxu1 %vm343_vm1, %v243_v45 }
 0x168   :  { %v248_v48 = vpop.f32.mrb[2].mxu0 }
 0x169   :  { %v10500_v49 = vadd.f32 %v248_v48, %v10489_v42  ;;  %v250_v50 = vpop.f32.mrb[3].mxu0 }
 0x16a   :  { %v251_v52 = vadd.f32 %v250_v50, %v10495_v47 }
 0x16b   :  { %269 = vrot.lane.b32.xlu0 %v10500_v49, %s10309_s17  ;;  %271 = vrot.lane.b32.xlu1 %v243_v45, %s10310_s18  ;;  %v9692_v56 = vpack.i.bf16 %v10500_v49, %v243_v45 }
 0x16c   :  { %v10507_v53 = vpack.c.bf16 %v251_v52, %v245_v51  ;;  %v10509_v54 = vpack.i.bf16 %v251_v52, %v245_v51 }
 0x16f   :  { %273 = vrot.lane.b32.xlu0 %v10500_v49, %s10310_s18  ;;  %275 = vrot.lane.b32.xlu1 %v243_v45, %s10311_s19 }
 0x173   :  { %277 = vrot.lane.b32.xlu0 %v10500_v49, %s10311_s19  ;;  %279 = vrot.lane.b32.xlu1 %v243_v45, %s10312_s20 }
 0x177   :  { %281 = vrot.lane.b32.xlu0 %v10500_v49, %s10312_s20  ;;  %283 = vrot.lane.b32.xlu1 %v243_v45, %s10313_s21 }
 0x17b   :  { %285 = vrot.lane.b32.xlu0 %v10500_v49, %s10313_s21  ;;  %287 = vrot.lane.b32.xlu1 %v243_v45, %s10314_s22 }
 0x17f   :  { %289 = vrot.lane.b32.xlu0 %v10500_v49, %s10314_s22  ;;  %291 = vrot.lane.b32.xlu1 %v243_v45, %s10315_s23 }
 0x183   :  { %293 = vrot.lane.b32.xlu0 %v10500_v49, %s10315_s23  ;;  %94 = vperm.xlu1 %9690, %v53_v55  }
 0x187   :  { %68 = vperm.xlu0 %9691, %v53_v55   ;;  %9693 = vrot.lane.b32.xlu1 %v9692_v56, %s10316_s26 }
 0x188   :  { %9697 = vset.pattern.permute.xlu1 %v10306_v2 }
 0x18b   :  { %9698 = vset.pattern.permute.xlu0 %v10307_v3  ;;  %73 = vperm.xlu1 %9697, %v54_v57  }
 0x18c   :  { %98 = vperm.xlu0 %9698, %v54_v57  }
 0x1d9   :  { %v268_v58 = vpop.permute.xlu1 %267 }
 0x1dd   :  { %v10538_v59 = vpop.permute.xlu0 %269  ;;  %v272_v60 = vpop.permute.xlu1 %271 }
 0x1de   :  { %v9699_v61 = vpack.i.bf16 %v10538_v59, %v268_v58 }
 0x1e0   :  { %9700 = vrot.lane.b32.xlu1 %v9699_v61, %s10316_s26 }
 0x1e1   :  { %v10542_v62 = vpop.permute.xlu0 %273  ;;  %v10544_v63 = vpop.permute.xlu1 %275 }
 0x1e2   :  { %v9704_v0 = vpack.i.bf16 %v10542_v62, %v272_v60 }
 0x1e4   :  { %9705 = vrot.lane.b32.xlu1 %v9704_v0, %s10316_s26 }
 0x1e5   :  { %v10548_v1 = vpop.permute.xlu0 %277  ;;  %v10550_v2 = vpop.permute.xlu1 %279 }
 0x1e6   :  { %v9709_v3 = vpack.i.bf16 %v10548_v1, %v10544_v63 }
 0x1e8   :  { %9710 = vrot.lane.b32.xlu0 %v9709_v3, %s10316_s26 }
 0x1e9   :  { %v10555_v4 = vpop.permute.xlu0 %281  ;;  %v10557_v5 = vpop.permute.xlu1 %283 }
 0x1ea   :  { %v9714_v6 = vpack.i.bf16 %v10555_v4, %v10550_v2 }
 0x1ec   :  { %9715 = vrot.lane.b32.xlu1 %v9714_v6, %s10316_s26 }
 0x1ed   :  { %v10562_v7 = vpop.permute.xlu0 %285  ;;  %v10566_v9 = vpop.permute.xlu1 %287 }
 0x1ee   :  { %v9719_v8 = vpack.i.bf16 %v10562_v7, %v10557_v5 }
 0x1f0   :  { %9720 = vrot.lane.b32.xlu0 %v9719_v8, %s10316_s26 }
 0x1f1   :  { %v10569_v10 = vpop.permute.xlu0 %289  ;;  %v10574_v12 = vpop.permute.xlu1 %291 }
 0x1f2   :  { %v9724_v11 = vpack.i.bf16 %v10569_v10, %v10566_v9 }
 0x1f4   :  { %9725 = vrot.lane.b32.xlu1 %v9724_v11, %s10316_s26 }
 0x1f5   :  { %v10576_v13 = vpop.permute.xlu0 %293 }
 0x1f6   :  { %v9729_v14 = vpack.i.bf16 %v10576_v13, %v10574_v12 }
 0x1f8   :  { %9730 = vrot.lane.b32.xlu0 %v9729_v14, %s10316_s26 }
 0x202   :  { %v95_v15 = vpop.permute.xlu1 %94 }
 0x203   :  { %v107_v21 = vmul.f32 %v10452_v20, %v95_v15 }
 0x206   :  { %v69_v17 = vpop.permute.xlu0 %68  ;;  %v9694_v18 = vpop.permute.xlu1 %9693 }
 0x207   :  { %v82_v22 = vmul.f32 %v10447_v19, %v69_v17  ;;  %v9696_v23 = vunpack.i.h.bf16 %v9694_v18  ;;  %v9695_v24 = vunpack.i.l.bf16 %v9694_v18 }
 0x209   :  { %v111_v26 = vadd.f32 %v107_v21, %v82_v22  ;;  %v9251_v28 = vpack.c.bf16 %v9696_v23, %v9695_v24 }
 0x20a   :  { %v74_v29 = vpop.permute.xlu1 %73 }
 0x20b   :  { %v122_v30 = vadd.f32 %v10461_v27, %v111_v26  ;;  %v99_v31 = vpop.permute.xlu0 %98  ;;  %v83_v32 = vmul.f32 %v10447_v19, %v74_v29  ;;  %9253 = vmatprep.subr.msk.bf16.mxu1 %vm10585_vm2, %v9251_v28  ;;  %v131_v19 = vld [vmem:[%s12452_s3 + $0x18] sm:$0xff]  ;;  %s10317_s3 = smov 8  }
 0x20c   :  { %v108_v33 = vmul.f32 %v10452_v20, %v99_v31  ;;  %9256 = vmatpush3.bf16.xpose.msk.msra.mxu1 %vm10585_vm2, %v9251_v28 }
 0x20d   :  { %v126_v36 = vmax.f32 %v122_v30, 0.0 }
 0x20e   :  { %v112_v38 = vadd.f32 %v108_v33, %v83_v32 }
 0x20f   :  { %v10599_v41 = vadd.f32 %v130_v34, %v126_v36 }
 0x210   :  { %v123_v44 = vadd.f32 %v10461_v27, %v112_v38 }
 0x211   :  { %8115 = vmatmul.mubr.msk.f32.gmra.mrb[4].mxu0 %vm163_vm0, %v10599_v41 }
 0x212   :  { %v127_v20 = vmax.f32 %v123_v44, 0.0  ;;  %258 = vmatprep.mubr.f32.mxu0 %v10308_v16 }
 0x213   :  { %8670 = vmatmul.mubr.msk.f32.vlgmr.msra.gmra.mrb[0].mxu1 %vm343_vm1, %v10500_v49 }
 0x214   :  { %8676 = vmatprep.mubr.msk.f32.mxu1 %vm343_vm1, %v268_v58  ;;  %v10611_v45 = vadd.f32 %v131_v19, %v127_v20 }
 0x216   :  { %8116 = vmatmul.mubr.msk.f32.gmra.mrb[6].mxu0 %vm163_vm0, %v10611_v45 }
 0x217   :  { %8683 = vmatprep.mubr.msk.f32.mxu0 %vm343_vm1, %v272_v60 }
 0x252   :  { %v9701_v27 = vpop.permute.xlu1 %9700 }
 0x253   :  { %v9703_v46 = vunpack.i.h.bf16 %v9701_v27  ;;  %v9702_v48 = vunpack.i.l.bf16 %v9701_v27 }
 0x255   :  { %v9257_v50 = vpack.c.bf16 %v9703_v46, %v9702_v48 }
 0x256   :  { %v9706_v51 = vpop.permute.xlu1 %9705 }
 0x257   :  { %v9708_v52 = vunpack.i.h.bf16 %v9706_v51  ;;  %v9707_v55 = vunpack.i.l.bf16 %v9706_v51  ;;  %9259 = vmatprep.subr.msk.bf16.mxu1 %vm10585_vm2, %v9257_v50 }
 0x258   :  { %9262 = vmatpush3.bf16.xpose.msk.msra.mxu1 %vm10585_vm2, %v9257_v50 }
 0x259   :  { %v9263_v49 = vpack.c.bf16 %v9708_v52, %v9707_v55 }
 0x25a   :  { %v9711_v56 = vpop.permute.xlu0 %9710 }
 0x25b   :  { %v9713_v57 = vunpack.i.h.bf16 %v9711_v56  ;;  %v9712_v58 = vunpack.i.l.bf16 %v9711_v56  ;;  %9265 = vmatprep.subr.msk.bf16.mxu0 %vm10585_vm2, %v9263_v49 }
 0x25c   :  { %9268 = vmatpush3.bf16.xpose.msk.msra.mxu0 %vm10585_vm2, %v9263_v49 }
 0x25d   :  { %v9269_v60 = vpack.c.bf16 %v9713_v57, %v9712_v58 }
 0x25e   :  { %v9716_v61 = vpop.permute.xlu1 %9715 }
 0x25f   :  { %v9718_v0 = vunpack.i.h.bf16 %v9716_v61  ;;  %v9717_v3 = vunpack.i.l.bf16 %v9716_v61  ;;  %8677 = vmatmul.mubr.msk.f32.vlgmr.msra.gmra.mrb[2].mxu1 %vm343_vm1, %v10538_v59  ;;  %9271 = vmatprep.subr.msk.bf16.mxu1 %vm10585_vm2, %v9269_v60 }
 0x260   :  { %9274 = vmatpush3.bf16.xpose.msk.msra.mxu1 %vm10585_vm2, %v9269_v60  ;;  %8690 = vmatprep.mubr.msk.f32.mxu1 %vm343_vm1, %v10544_v63 }
 0x261   :  { %v9275_v6 = vpack.c.bf16 %v9718_v0, %v9717_v3 }
 0x262   :  { %v9721_v8 = vpop.permute.xlu0 %9720 }
 0x263   :  { %v9723_v11 = vunpack.i.h.bf16 %v9721_v8  ;;  %v9722_v14 = vunpack.i.l.bf16 %v9721_v8  ;;  %8684 = vmatmul.mubr.msk.f32.vlgmr.msra.gmra.mrb[8].mxu0 %vm343_vm1, %v10542_v62  ;;  %9277 = vmatprep.subr.msk.bf16.mxu0 %vm10585_vm2, %v9275_v6 }
 0x264   :  { %9280 = vmatpush3.bf16.xpose.msk.msra.mxu0 %vm10585_vm2, %v9275_v6  ;;  %8697 = vmatprep.mubr.msk.f32.mxu0 %vm343_vm1, %v10550_v2 }
 0x265   :  { %v9281_v59 = vpack.c.bf16 %v9723_v11, %v9722_v14 }
 0x266   :  { %v9726_v15 = vpop.permute.xlu1 %9725 }
 0x267   :  { %v9728_v17 = vunpack.i.h.bf16 %v9726_v15  ;;  %v9727_v63 = vunpack.i.l.bf16 %v9726_v15  ;;  %8691 = vmatmul.mubr.msk.f32.vlgmr.msra.gmra.mrb[4].mxu1 %vm343_vm1, %v10548_v1  ;;  %9283 = vmatprep.subr.msk.bf16.mxu1 %vm10585_vm2, %v9281_v59 }
 0x268   :  { %9286 = vmatpush3.bf16.xpose.msk.msra.mxu1 %vm10585_vm2, %v9281_v59  ;;  %8704 = vmatprep.mubr.msk.f32.mxu1 %vm343_vm1, %v10557_v5 }
 0x269   :  { %v9287_v62 = vpack.c.bf16 %v9728_v17, %v9727_v63 }
 0x26a   :  { %v9731_v18 = vpop.permute.xlu0 %9730 }
 0x26b   :  { %v9733_v21 = vunpack.i.h.bf16 %v9731_v18  ;;  %v9732_v2 = vunpack.i.l.bf16 %v9731_v18  ;;  %8698 = vmatmul.mubr.msk.f32.vlgmr.msra.gmra.mrb[10].mxu0 %vm343_vm1, %v10555_v4  ;;  %9289 = vmatprep.subr.msk.bf16.mxu0 %vm10585_vm2, %v9287_v62 }
 0x26c   :  { %9292 = vmatpush3.bf16.xpose.msk.msra.mxu0 %vm10585_vm2, %v9287_v62  ;;  %8711 = vmatprep.mubr.msk.f32.mxu0 %vm343_vm1, %v10566_v9 }
 0x26d   :  { %v9293_v1 = vpack.c.bf16 %v9733_v21, %v9732_v2  ;;  %9300 = vmatprep.subr.bf16.mxu0 %v10507_v53 }
 0x26f   :  { %8705 = vmatmul.mubr.msk.f32.vlgmr.msra.gmra.mrb[6].mxu1 %vm343_vm1, %v10562_v7  ;;  %9295 = vmatprep.subr.msk.bf16.mxu1 %vm10585_vm2, %v9293_v1 }
 0x270   :  { %9298 = vmatpush3.bf16.xpose.msk.msra.mxu1 %vm10585_vm2, %v9293_v1  ;;  %8718 = vmatprep.mubr.msk.f32.mxu1 %vm343_vm1, %v10574_v12 }
 0x273   :  { %8712 = vmatmul.mubr.msk.f32.vlgmr.msra.gmra.mrb[12].mxu0 %vm343_vm1, %v10569_v10 }
 0x274   :  { %9302 = vmatpush3.bf16.msra.mxu0 %v10507_v53 }
 0x277   :  { %8719 = vmatmul.mubr.msk.f32.vlgmr.msra.gmra.mrb[8].mxu1 %vm343_vm1, %v10576_v13 }
 0x2e4   :  { %v254_v4 = vpop.f32.mrb[4].mxu0 }
 0x2e5   :  { %v10671_v5 = vadd.f32 %v254_v4, %v10489_v42  ;;  %v256_v7 = vpop.f32.mrb[5].mxu0 }
 0x2e6   :  { %v10673_v9 = vpop.f32.mrb[0].mxu1  ;;  %v257_v23 = vadd.f32 %v256_v7, %v10495_v47 }
 0x2e7   :  { %1937 = vrot.lane.b32.xlu0 %v10671_v5, %s10309_s17  ;;  %v10677_v22 = vpop.f32.mrb[1].mxu1 }
 0x2e9   :  { %v260_v12 = vpop.f32.mrb[6].mxu0 }
 0x2ea   :  { %v10680_v10 = vadd.f32 %v260_v12, %v10489_v42  ;;  %v262_v53 = vpop.f32.mrb[7].mxu0  ;;  %v1040_v42 = vsel %vm1036_vm3, %v10673_v9, -inf }
 0x2eb   :  { %v263_v13 = vadd.f32 %v262_v53, %v10495_v47  ;;  %v1037_v47 = vsel %vm1036_vm3, %v10677_v22, -inf }
 0x2ec   :  { %1943 = vrot.lane.b32.xlu0 %v10680_v10, %s10310_s18  ;;  %1939 = vrot.lane.b32.xlu1 %v10680_v10, %s10309_s17 }
 0x2ed   :  { %v10688_v24 = vpack.i.bf16 %v263_v13, %v257_v23  ;;  %v10690_v26 = vpack.c.bf16 %v263_v13, %v257_v23 }
 0x2f0   :  { %1947 = vrot.lane.b32.xlu0 %v10680_v10, %s10311_s19  ;;  %1941 = vrot.lane.b32.xlu1 %v10671_v5, %s10310_s18 }
 0x2f4   :  { %1949 = vrot.lane.b32.xlu0 %v10671_v5, %s10312_s20  ;;  %1945 = vrot.lane.b32.xlu1 %v10671_v5, %s10311_s19 }
 0x2f8   :  { %1951 = vrot.lane.b32.xlu0 %v10680_v10, %s10312_s20  ;;  %1953 = vrot.lane.b32.xlu1 %v10671_v5, %s10313_s21 }
 0x2fc   :  { %1955 = vrot.lane.b32.xlu0 %v10680_v10, %s10313_s21  ;;  %1957 = vrot.lane.b32.xlu1 %v10671_v5, %s10314_s22 }
 0x300   :  { %1959 = vrot.lane.b32.xlu0 %v10680_v10, %s10314_s22  ;;  %1961 = vrot.lane.b32.xlu1 %v10671_v5, %s10315_s23 }
 0x304   :  { %1963 = vrot.lane.b32.xlu0 %v10680_v10, %s10315_s23 }
 0x323   :  { %1041 = vmax.xlane.f32.xlu0 %v1040_v42 }
 0x324   :  { %1038 = vmax.xlane.f32.xlu1 %v1037_v47 }
 0x332   :  { %v10718_v28 = vpop.f32.mrb[2].mxu1 }
 0x333   :  { %v10720_v29 = vpop.f32.mrb[3].mxu1  ;;  %v1046_v30 = vsel %vm1036_vm3, %v10718_v28, -inf }
 0x334   :  { %1047 = vmax.xlane.f32.xlu1 %v1046_v30  ;;  %v1043_v31 = vsel %vm1036_vm3, %v10720_v29, -inf }
 0x335   :  { %1044 = vmax.xlane.f32.xlu0 %v1043_v31 }
 0x336   :  { %v10726_v32 = vpop.f32.mrb[8].mxu0 }
 0x337   :  { %v10728_v33 = vpop.f32.mrb[9].mxu0  ;;  %v1052_v34 = vsel %vm1036_vm3, %v10726_v32, -inf }
 0x338   :  { %1053 = vmax.xlane.f32.xlu1 %v1052_v34  ;;  %v1049_v36 = vsel %vm1036_vm3, %v10728_v33, -inf }
 0x339   :  { %1050 = vmax.xlane.f32.xlu0 %v1049_v36 }
 0x33a   :  { %v10734_v38 = vpop.f32.mrb[4].mxu1 }
 0x33b   :  { %v10736_v44 = vpop.f32.mrb[5].mxu1  ;;  %v1058_v19 = vsel %vm1036_vm3, %v10734_v38, -inf }
 0x33c   :  { %1059 = vmax.xlane.f32.xlu1 %v1058_v19  ;;  %v1055_v20 = vsel %vm1036_vm3, %v10736_v44, -inf }
 0x33d   :  { %1056 = vmax.xlane.f32.xlu0 %v1055_v20 }
 0x33e   :  { %v10742_v27 = vpop.f32.mrb[10].mxu0 }
 0x33f   :  { %v10744_v46 = vpop.f32.mrb[11].mxu0  ;;  %v1064_v48 = vsel %vm1036_vm3, %v10742_v27, -inf }
 0x340   :  { %1065 = vmax.xlane.f32.xlu1 %v1064_v48  ;;  %v1061_v50 = vsel %vm1036_vm3, %v10744_v46, -inf }
 0x341   :  { %1062 = vmax.xlane.f32.xlu0 %v1061_v50 }
 0x342   :  { %v10750_v51 = vpop.f32.mrb[6].mxu1 }
 0x343   :  { %v10752_v52 = vpop.f32.mrb[7].mxu1  ;;  %v1070_v55 = vsel %vm1036_vm3, %v10750_v51, -inf }
 0x344   :  { %1071 = vmax.xlane.f32.xlu1 %v1070_v55  ;;  %v1067_v49 = vsel %vm1036_vm3, %v10752_v52, -inf }
 0x345   :  { %1068 = vmax.xlane.f32.xlu0 %v1067_v49 }
 0x346   :  { %v10758_v56 = vpop.f32.mrb[12].mxu0 }
 0x347   :  { %v10760_v57 = vpop.f32.mrb[13].mxu0  ;;  %v1076_v58 = vsel %vm1036_vm3, %v10758_v56, -inf }
 0x348   :  { %1077 = vmax.xlane.f32.xlu1 %v1076_v58  ;;  %v1073_v0 = vsel %vm1036_vm3, %v10760_v57, -inf }
 0x34a   :  { %v10764_v60 = vpop.f32.mrb[8].mxu1 }
 0x34b   :  { %v10766_v61 = vpop.f32.mrb[9].mxu1  ;;  %v1082_v6 = vsel %vm1036_vm3, %v10764_v60, -inf }
 0x34c   :  { %v1079_v3 = vsel %vm1036_vm3, %v10766_v61, -inf }
 0x359   :  { %9740 = vrot.lane.b32.xlu1 %v10509_v54, %s10310_s18  ;;  %v10780_v8 = vpop.permute.xlu0 %1937 }
 0x35b   :  { %9735 = vrot.lane.b32.xlu0 %v10509_v54, %s10309_s17 }
 0x35d   :  { %9745 = vrot.lane.b32.xlu1 %v10509_v54, %s10311_s19 }
 0x35e   :  { %v10782_v11 = vpop.permute.xlu0 %1943  ;;  %v10786_v59 = vpop.permute.xlu1 %1939 }
 0x362   :  { %v10784_v14 = vpop.permute.xlu0 %1947  ;;  %v10794_v17 = vpop.permute.xlu1 %1941 }
 0x366   :  { %v10790_v15 = vpop.permute.xlu0 %1949  ;;  %v10802_v62 = vpop.permute.xlu1 %1945 }
 0x36a   :  { %v10800_v63 = vpop.permute.xlu0 %1951  ;;  %v10806_v21 = vpop.permute.xlu1 %1953 }
 0x36e   :  { %v10804_v18 = vpop.permute.xlu0 %1955  ;;  %v10810_v1 = vpop.permute.xlu1 %1957 }
 0x372   :  { %v10808_v2 = vpop.permute.xlu0 %1959  ;;  %v10814_v7 = vpop.permute.xlu1 %1961 }
 0x376   :  { %v10812_v4 = vpop.permute.xlu0 %1963 }
 0x37a   :  { %1074 = vmax.xlane.f32.xlu0 %v1073_v0 }
 0x37e   :  { %1080 = vmax.xlane.f32.xlu0 %v1079_v3 }
 0x381   :  { %1083 = vmax.xlane.f32.xlu1 %v1082_v6 }
 0x392   :  { %9755 = vrot.lane.b32.xlu1 %v10509_v54, %s10313_s21 }
 0x394   :  { %9750 = vrot.lane.b32.xlu0 %v10509_v54, %s10312_s20 }
 0x396   :  { %9765 = vrot.lane.b32.xlu1 %v10509_v54, %s10315_s23 }
 0x398   :  { %9760 = vrot.lane.b32.xlu0 %v10509_v54, %s10314_s22 }
 0x3b0   :  { %v1042_v12 = vpop.xlane.xlu0 %1041 }
 0x3b1   :  { %v1086_v53 = vsub.f32 %v10673_v9, %v1042_v12  ;;  %v1039_v54 = vpop.xlane.xlu1 %1038 }
 0x3b2   :  { %v1085_v23 = vsub.f32 %v10677_v22, %v1039_v54 }
 0x3b3   :  { %v1103_v13 = vmul.f32 1.442695, %v1086_v53 }
 0x3b4   :  { %v1101_v42 = vmul.f32 1.442695, %v1085_v23 }
 0x3b5   :  { %9994 = vpow2.f32 %v1103_v13 }
 0x3b6   :  { %9996 = vpow2.f32 %v1101_v42 }
 0x3bf   :  { %v10818_v47 = vpop.eup %9994 }
 0x3c0   :  { %v10820_v30 = vpop.eup %9996  ;;  %v1136_v31 = vsel %vm1036_vm3, %v10818_v47, 0.0 }
 0x3c1   :  { %v1048_v34 = vpop.xlane.xlu1 %1047  ;;  %1137 = vadd.xlane.f32.xlu0 %v1136_v31  ;;  %v1133_v36 = vsel %vm1036_vm3, %v10820_v30, 0.0 }
 0x3c2   :  { %v1088_v9 = vsub.f32 %v10718_v28, %v1048_v34  ;;  %v1045_v19 = vpop.xlane.xlu0 %1044  ;;  %1134 = vadd.xlane.f32.xlu1 %v1133_v36 }
 0x3c3   :  { %v1087_v20 = vsub.f32 %v10720_v29, %v1045_v19 }
 0x3c4   :  { %v1107_v22 = vmul.f32 1.442695, %v1088_v9 }
 0x3c5   :  { %v1054_v48 = vpop.xlane.xlu1 %1053  ;;  %v1105_v58 = vmul.f32 1.442695, %v1087_v20 }
 0x3c6   :  { %9998 = vpow2.f32 %v1107_v22  ;;  %v1090_v50 = vsub.f32 %v10726_v32, %v1054_v48  ;;  %v1051_v55 = vpop.xlane.xlu0 %1050 }
 0x3c7   :  { %v1089_v49 = vsub.f32 %v10728_v33, %v1051_v55 }
 0x3c8   :  { %v1111_v0 = vmul.f32 1.442695, %v1090_v50 }
 0x3c9   :  { %v1109_v3 = vmul.f32 1.442695, %v1089_v49  ;;  %v1060_v6 = vpop.xlane.xlu1 %1059 }
 0x3ca   :  { %10000 = vpow2.f32 %v1111_v0  ;;  %v1092_v12 = vsub.f32 %v10734_v38, %v1060_v6  ;;  %v1057_v28 = vpop.xlane.xlu0 %1056 }
 0x3cb   :  { %10002 = vpow2.f32 %v1109_v3  ;;  %v1091_v53 = vsub.f32 %v10736_v44, %v1057_v28 }
 0x3cc   :  { %10004 = vpow2.f32 %v1105_v58  ;;  %v1115_v29 = vmul.f32 1.442695, %v1092_v12 }
 0x3cd   :  { %v1113_v54 = vmul.f32 1.442695, %v1091_v53  ;;  %v1066_v23 = vpop.xlane.xlu1 %1065 }
 0x3ce   :  { %v1094_v32 = vsub.f32 %v10742_v27, %v1066_v23  ;;  %v1063_v13 = vpop.xlane.xlu0 %1062 }
 0x3cf   :  { %10006 = vpow2.f32 %v1113_v54  ;;  %v1093_v33 = vsub.f32 %v10744_v46, %v1063_v13 }
 0x3d0   :  { %v10834_v42 = vpop.eup %9998  ;;  %10008 = vpow2.f32 %v1115_v29  ;;  %v1119_v31 = vmul.f32 1.442695, %v1094_v32 }
 0x3d1   :  { %v1117_v34 = vmul.f32 1.442695, %v1093_v33  ;;  %v1072_v38 = vpop.xlane.xlu1 %1071  ;;  %v1142_v36 = vsel %vm1036_vm3, %v10834_v42, 0.0 }
 0x3d2   :  { %v1096_v44 = vsub.f32 %v10750_v51, %v1072_v38  ;;  %v1069_v9 = vpop.xlane.xlu0 %1068  ;;  %1143 = vadd.xlane.f32.xlu1 %v1142_v36 }
 0x3d3   :  { %10010 = vpow2.f32 %v1117_v34  ;;  %v1095_v27 = vsub.f32 %v10752_v52, %v1069_v9 }
 0x3d4   :  { %v10840_v19 = vpop.eup %10000  ;;  %10012 = vpow2.f32 %v1119_v31  ;;  %v1123_v46 = vmul.f32 1.442695, %v1096_v44 }
 0x3d5   :  { %v10842_v22 = vpop.eup %10002  ;;  %v1121_v20 = vmul.f32 1.442695, %v1095_v27  ;;  %v1078_v48 = vpop.xlane.xlu1 %1077  ;;  %v1148_v50 = vsel %vm1036_vm3, %v10840_v19, 0.0 }
 0x3d6   :  { %v10846_v55 = vpop.eup %10004  ;;  %v1098_v51 = vsub.f32 %v10758_v56, %v1078_v48  ;;  %v9736_v49 = vpop.permute.xlu0 %9735  ;;  %1149 = vadd.xlane.f32.xlu1 %v1148_v50  ;;  %v1145_v52 = vsel %vm1036_vm3, %v10842_v22, 0.0 }
 0x3d7   :  { %10014 = vpow2.f32 %v1121_v20  ;;  %v9738_v58 = vunpack.i.h.bf16 %v9736_v49  ;;  %v9737_v0 = vunpack.i.l.bf16 %v9736_v49  ;;  %1146 = vadd.xlane.f32.xlu0 %v1145_v52  ;;  %v1139_v28 = vsel %vm1036_vm3, %v10846_v55, 0.0 }
 0x3d8   :  { %10016 = vpow2.f32 %v1123_v46  ;;  %v1127_v3 = vmul.f32 1.442695, %v1098_v51 }
 0x3d9   :  { %v10851_v6 = vpop.eup %10006  ;;  %v9741_v12 = vpop.permute.xlu1 %9740  ;;  %v9303_v53 = vpack.c.bf16 %v9738_v58, %v9737_v0 }
 0x3da   :  { %v10855_v29 = vpop.eup %10008  ;;  %v9743_v56 = vunpack.i.h.bf16 %v9741_v12  ;;  %v9742_v54 = vunpack.i.l.bf16 %v9741_v12  ;;  %1140 = vadd.xlane.f32.xlu1 %v1139_v28  ;;  %v1151_v23 = vsel %vm1036_vm3, %v10851_v6, 0.0  ;;  %10018 = vpow2.f32 %v1127_v3 }
 0x3db   :  { %9304 = vmatprep.subr.bf16.mxu1 %v9303_v53  ;;  %1152 = vadd.xlane.f32.xlu0 %v1151_v23  ;;  %v1154_v31 = vsel %vm1036_vm3, %v10855_v29, 0.0 }
 0x3dc   :  { %9306 = vmatpush3.bf16.msra.mxu1 %v9303_v53  ;;  %v10859_v32 = vpack.c.bf16 %v9743_v56, %v9742_v54 }
 0x3dd   :  { %v10861_v13 = vpop.eup %10010  ;;  %v9746_v33 = vpop.permute.xlu1 %9745 }
 0x3de   :  { %v10865_v34 = vpop.eup %10012  ;;  %v9748_v38 = vunpack.i.h.bf16 %v9746_v33  ;;  %v9747_v36 = vunpack.i.l.bf16 %v9746_v33  ;;  %9308 = vmatprep.subr.bf16.mxu0 %v10859_v32  ;;  %1155 = vadd.xlane.f32.xlu1 %v1154_v31  ;;  %v1157_v44 = vsel %vm1036_vm3, %v10861_v13, 0.0 }
 0x3df   :  { %1158 = vadd.xlane.f32.xlu0 %v1157_v44  ;;  %v1160_v46 = vsel %vm1036_vm3, %v10865_v34, 0.0  ;;  %v9784_v44 = vpack.i.bf16 %v10784_v14, %v10802_v62 }
 0x3e0   :  { %v10870_v9 = vpack.c.bf16 %v9748_v38, %v9747_v36  ;;  %v9774_v38 = vpack.i.bf16 %v10786_v59, %v10780_v8  ;;  %v9769_v36 = vpack.i.bf16 %v10680_v10, %v10671_v5 }
 0x3e1   :  { %v10872_v27 = vpop.eup %10014 }
 0x3e2   :  { %v10876_v20 = vpop.eup %10016  ;;  %9312 = vmatprep.subr.bf16.mxu1 %v10870_v9  ;;  %1161 = vadd.xlane.f32.xlu1 %v1160_v46  ;;  %v1163_v48 = vsel %vm1036_vm3, %v10872_v27, 0.0  ;;  %v9779_v46 = vpack.i.bf16 %v10782_v11, %v10794_v17 }
 0x3e3   :  { %1164 = vadd.xlane.f32.xlu0 %v1163_v48  ;;  %v1166_v50 = vsel %vm1036_vm3, %v10876_v20, 0.0  ;;  %v9794_v48 = vpack.i.bf16 %v10804_v18, %v10806_v21 }
 0x3e4   :  { %v10883_v51 = vpop.eup %10018 }
 0x3e5   :  { %v1172_v49 = vsel %vm1036_vm3, %v10883_v51, 0.0 }
 0x3e6   :  { %1167 = vadd.xlane.f32.xlu1 %v1166_v50  ;;  %v9789_v50 = vpack.i.bf16 %v10800_v63, %v10790_v15 }
 0x3ea   :  { %1173 = vadd.xlane.f32.xlu1 %v1172_v49  ;;  %v9804_v49 = vpack.i.bf16 %v10812_v4, %v10814_v7 }
 0x407   :  { %v1075_v52 = vpop.xlane.xlu0 %1074 }
 0x408   :  { %v1097_v58 = vsub.f32 %v10760_v57, %v1075_v52  ;;  %v9799_v52 = vpack.i.bf16 %v10808_v2, %v10810_v1 }
 0x40a   :  { %v1125_v0 = vmul.f32 1.442695, %v1097_v58 }
 0x40b   :  { %v1081_v3 = vpop.xlane.xlu0 %1080 }
 0x40c   :  { %10020 = vpow2.f32 %v1125_v0  ;;  %v1099_v12 = vsub.f32 %v10766_v61, %v1081_v3 }
 0x40e   :  { %v1129_v28 = vmul.f32 1.442695, %v1099_v12  ;;  %v1084_v53 = vpop.xlane.xlu1 %1083 }
 0x40f   :  { %v1100_v56 = vsub.f32 %v10764_v60, %v1084_v53  ;;  %v9751_v58 = vpop.permute.xlu0 %9750 }
 0x410   :  { %10022 = vpow2.f32 %v1129_v28 }
 0x411   :  { %v1131_v54 = vmul.f32 1.442695, %v1100_v56 }
 0x412   :  { %v10932_v0 = vpop.permute.xlu1 %9755 }
 0x413   :  { %10024 = vpow2.f32 %v1131_v54  ;;  %v9761_v3 = vpop.permute.xlu0 %9760 }
 0x416   :  { %v10890_v23 = vpop.eup %10020  ;;  %v10934_v12 = vpop.permute.xlu1 %9765 }
 0x417   :  { %v1169_v33 = vsel %vm1036_vm3, %v10890_v23, 0.0 }
 0x418   :  { %1170 = vadd.xlane.f32.xlu0 %v1169_v33  ;;  %v9753_v33 = vunpack.i.h.bf16 %v9751_v58 }
 0x41a   :  { %v10894_v31 = vpop.eup %10022 }
 0x41b   :  { %v1175_v57 = vsel %vm1036_vm3, %v10894_v31, 0.0 }
 0x41c   :  { %1176 = vadd.xlane.f32.xlu0 %v1175_v57  ;;  %v9752_v57 = vunpack.i.l.bf16 %v9751_v58 }
 0x41d   :  { %v10898_v61 = vpop.eup %10024 }
 0x41e   :  { %v1178_v60 = vsel %vm1036_vm3, %v10898_v61, 0.0 }
 0x41f   :  { %1179 = vadd.xlane.f32.xlu1 %v1178_v60 }
 0x430   :  { %9775 = vrot.lane.b32.xlu1 %v9774_v38, %s10316_s26 }
 0x432   :  { %9770 = vrot.lane.b32.xlu0 %v9769_v36, %s10316_s26  ;;  %v9315_v36 = vpack.c.bf16 %v9753_v33, %v9752_v57 }
 0x434   :  { %9785 = vrot.lane.b32.xlu1 %v9784_v44, %s10316_s26 }
 0x436   :  { %9780 = vrot.lane.b32.xlu0 %v9779_v46, %s10316_s26 }
 0x438   :  { %9795 = vrot.lane.b32.xlu1 %v9794_v48, %s10316_s26 }
 0x43a   :  { %9790 = vrot.lane.b32.xlu0 %v9789_v50, %s10316_s26 }
 0x43c   :  { %9805 = vrot.lane.b32.xlu1 %v9804_v49, %s10316_s26 }
 0x43e   :  { %9800 = vrot.lane.b32.xlu0 %v9799_v52, %s10316_s26 }
 0x440   :  { %9810 = vrot.lane.b32.xlu1 %v10688_v24, %s10309_s17 }
 0x442   :  { %9815 = vrot.lane.b32.xlu0 %v10688_v24, %s10310_s18 }
 0x444   :  { %9820 = vrot.lane.b32.xlu1 %v10688_v24, %s10311_s19 }
 0x44e   :  { %v1138_v28 = vpop.xlane.xlu0 %1137 }
 0x44f   :  { %10026 = vrcp.f32 %v1138_v28  ;;  %v1135_v53 = vpop.xlane.xlu1 %1134  ;;  %v9763_v28 = vunpack.i.h.bf16 %v9761_v3 }
 0x450   :  { %10028 = vrcp.f32 %v1135_v53  ;;  %v9762_v53 = vunpack.i.l.bf16 %v9761_v3 }
 0x452   :  { %v9323_v3 = vpack.c.bf16 %v9763_v28, %v9762_v53 }
 0x459   :  { %v10027_v56 = vpop.eup %10026 }
 0x45a   :  { %v10029_v54 = vpop.eup %10028  ;;  %v1198_v38 = vmul.f32 %v10027_v56, %v10818_v47 }
 0x45b   :  { %v1197_v60 = vmul.f32 %v10029_v54, %v10820_v30 }
 0x45d   :  { %8725 = vmatprep.mubr.msk.f32.mxu0 %vm1036_vm3, %v1197_v60 }
 0x45e   :  { %8726 = vmatmul.mubr.msk.f32.vlgmr.msra.gmra.mrb[14].mxu0 %vm1036_vm3, %v1198_v38  ;;  %v9758_v38 = vunpack.i.h.bf16 %v10932_v0 }
 0x45f   :  { %9310 = vmatpush3.bf16.msra.mxu0 %v10859_v32  ;;  %v1144_v44 = vpop.xlane.xlu1 %1143 }
 0x460   :  { %9316 = vmatprep.subr.bf16.mxu0 %v9315_v36 }
 0x463   :  { %v1150_v46 = vpop.xlane.xlu1 %1149 }
 0x464   :  { %10030 = vrcp.f32 %v1150_v46  ;;  %v1147_v48 = vpop.xlane.xlu0 %1146 }
 0x465   :  { %10032 = vrcp.f32 %v1147_v48 }
 0x466   :  { %10034 = vrcp.f32 %v1144_v44  ;;  %v9757_v44 = vunpack.i.l.bf16 %v10932_v0  ;;  %v9768_v0 = vunpack.i.h.bf16 %v10934_v12 }
 0x467   :  { %v1141_v50 = vpop.xlane.xlu1 %1140 }
 0x468   :  { %10036 = vrcp.f32 %v1141_v50  ;;  %v1153_v49 = vpop.xlane.xlu0 %1152 }
 0x469   :  { %10038 = vrcp.f32 %v1153_v49 }
 0x46b   :  { %v1156_v30 = vpop.xlane.xlu1 %1155 }
 0x46c   :  { %10040 = vrcp.f32 %v1156_v30  ;;  %v1159_v47 = vpop.xlane.xlu0 %1158  ;;  %v9767_v30 = vunpack.i.l.bf16 %v10934_v12 }
 0x46d   :  { %10042 = vrcp.f32 %v1159_v47  ;;  %v9319_v47 = vpack.c.bf16 %v9758_v38, %v9757_v44 }
 0x46e   :  { %v10031_v52 = vpop.eup %10030 }
 0x46f   :  { %v10033_v58 = vpop.eup %10032  ;;  %v1162_v32 = vpop.xlane.xlu1 %1161  ;;  %v1202_v57 = vmul.f32 %v10031_v52, %v10840_v19 }
 0x470   :  { %10044 = vrcp.f32 %v1162_v32  ;;  %v1165_v56 = vpop.xlane.xlu0 %1164  ;;  %v1201_v54 = vmul.f32 %v10033_v58, %v10842_v22  ;;  %v10035_v33 = vpop.eup %10034 }
 0x471   :  { %10046 = vrcp.f32 %v1165_v56  ;;  %v1200_v22 = vmul.f32 %v10035_v33, %v10834_v42 }
 0x472   :  { %v10037_v60 = vpop.eup %10036  ;;  %8739 = vmatprep.mubr.msk.f32.mxu0 %vm1036_vm3, %v1201_v54 }
 0x473   :  { %v10039_v46 = vpop.eup %10038  ;;  %v1168_v48 = vpop.xlane.xlu1 %1167  ;;  %8740 = vmatmul.mubr.msk.f32.vlgmr.msra.gmra.mrb[16].mxu0 %vm1036_vm3, %v1202_v57  ;;  %v1199_v50 = vmul.f32 %v10037_v60, %v10846_v55 }
 0x474   :  { %10048 = vrcp.f32 %v1168_v48  ;;  %9318 = vmatpush3.bf16.msra.mxu0 %v9315_v36  ;;  %v1203_v19 = vmul.f32 %v10039_v46, %v10851_v6  ;;  %v9327_v36 = vpack.c.bf16 %v9768_v0, %v9767_v30 }
 0x475   :  { %9324 = vmatprep.subr.bf16.mxu0 %v9323_v3  ;;  %8732 = vmatprep.mubr.msk.f32.mxu1 %vm1036_vm3, %v1199_v50 }
 0x476   :  { %v10041_v49 = vpop.eup %10040  ;;  %8733 = vmatmul.mubr.msk.f32.vlgmr.msra.gmra.mrb[10].mxu1 %vm1036_vm3, %v1200_v22 }
 0x477   :  { %v10043_v52 = vpop.eup %10042  ;;  %9314 = vmatpush3.bf16.msra.mxu1 %v10870_v9  ;;  %8746 = vmatprep.mubr.msk.f32.mxu1 %vm1036_vm3, %v1203_v19  ;;  %v1204_v42 = vmul.f32 %v10041_v49, %v10855_v29 }
 0x478   :  { %9320 = vmatprep.subr.bf16.mxu1 %v9319_v47  ;;  %v1205_v55 = vmul.f32 %v10043_v52, %v10861_v13  ;;  %v1174_v13 = vpop.xlane.xlu1 %1173 }
 0x479   :  { %10050 = vrcp.f32 %v1174_v13 }
 0x47a   :  { %v10045_v6 = vpop.eup %10044  ;;  %8747 = vmatmul.mubr.msk.f32.vlgmr.msra.gmra.mrb[12].mxu1 %vm1036_vm3, %v1204_v42  ;;  %8753 = vmatprep.mubr.msk.f32.mxu0 %vm1036_vm3, %v1205_v55 }
 0x47b   :  { %v10047_v12 = vpop.eup %10046  ;;  %9322 = vmatpush3.bf16.msra.mxu1 %v9319_v47  ;;  %v1206_v58 = vmul.f32 %v10045_v6, %v10865_v34 }
 0x47c   :  { %9328 = vmatprep.subr.bf16.mxu1 %v9327_v36  ;;  %v1207_v9 = vmul.f32 %v10047_v12, %v10872_v27 }
 0x47d   :  { %8754 = vmatmul.mubr.msk.f32.vlgmr.msra.gmra.mrb[18].mxu0 %vm1036_vm3, %v1206_v58 }
 0x47e   :  { %v10049_v28 = vpop.eup %10048  ;;  %9326 = vmatpush3.bf16.msra.mxu0 %v9323_v3  ;;  %8760 = vmatprep.mubr.msk.f32.mxu1 %vm1036_vm3, %v1207_v9 }
 0x47f   :  { %v1208_v29 = vmul.f32 %v10049_v28, %v10876_v20 }
 0x481   :  { %8761 = vmatmul.mubr.msk.f32.vlgmr.msra.gmra.mrb[14].mxu1 %vm1036_vm3, %v1208_v29 }
 0x482   :  { %9330 = vmatpush3.bf16.msra.mxu1 %v9327_v36 }
 0x483   :  { %v10051_v33 = vpop.eup %10050 }
 0x484   :  { %v1210_v22 = vmul.f32 %v10051_v33, %v10883_v51 }
 0x4a5   :  { %v1171_v53 = vpop.xlane.xlu0 %1170 }
 0x4a6   :  { %10052 = vrcp.f32 %v1171_v53 }
 0x4a9   :  { %v1177_v32 = vpop.xlane.xlu0 %1176 }
 0x4aa   :  { %10054 = vrcp.f32 %v1177_v32 }
 0x4ac   :  { %v1180_v34 = vpop.xlane.xlu1 %1179 }
 0x4ad   :  { %10056 = vrcp.f32 %v1180_v34  ;;  %v9771_v27 = vpop.permute.xlu0 %9770 }
 0x4ae   :  { %v9773_v56 = vunpack.i.h.bf16 %v9771_v27  ;;  %v9772_v54 = vunpack.i.l.bf16 %v9771_v27 }
 0x4b0   :  { %v10053_v57 = vpop.eup %10052  ;;  %v9331_v60 = vpack.c.bf16 %v9773_v56, %v9772_v54  ;;  %v9776_v38 = vpop.permute.xlu1 %9775 }
 0x4b1   :  { %v9778_v44 = vunpack.i.h.bf16 %v9776_v38  ;;  %v9777_v20 = vunpack.i.l.bf16 %v9776_v38  ;;  %v9781_v46 = vpop.permute.xlu0 %9780  ;;  %v1209_v48 = vmul.f32 %v10053_v57, %v10890_v23 }
 0x4b2   :  { %v9783_v3 = vunpack.i.h.bf16 %v9781_v46  ;;  %v9782_v50 = vunpack.i.l.bf16 %v9781_v46  ;;  %9333 = vmatprep.subr.msk.bf16.mxu0 %vm10585_vm2, %v9331_v60 }
 0x4b3   :  { %v9337_v19 = vpack.c.bf16 %v9778_v44, %v9777_v20  ;;  %8767 = vmatprep.mubr.msk.f32.mxu0 %vm1036_vm3, %v1209_v48 }
 0x4b4   :  { %v10055_v49 = vpop.eup %10054  ;;  %v9343_v0 = vpack.c.bf16 %v9783_v3, %v9782_v50  ;;  %v9786_v30 = vpop.permute.xlu1 %9785  ;;  %8768 = vmatmul.mubr.msk.f32.vlgmr.msra.gmra.mrb[20].mxu0 %vm1036_vm3, %v1210_v22 }
 0x4b5   :  { %9336 = vmatpush3.bf16.xpose.msk.msra.mxu0 %vm10585_vm2, %v9331_v60  ;;  %9339 = vmatprep.subr.msk.bf16.mxu1 %vm10585_vm2, %v9337_v19  ;;  %v9791_v23 = vpop.permute.xlu0 %9790  ;;  %v1211_v47 = vmul.f32 %v10055_v49, %v10894_v31  ;;  %v9788_v52 = vunpack.i.h.bf16 %v9786_v30  ;;  %v9787_v42 = vunpack.i.l.bf16 %v9786_v30 }
 0x4b6   :  { %8781 = vmatprep.mubr.msk.f32.mxu0 %vm343_vm1, %v10671_v5  ;;  %9345 = vmatprep.subr.msk.bf16.mxu0 %vm10585_vm2, %v9343_v0  ;;  %v9793_v55 = vunpack.i.h.bf16 %v9791_v23  ;;  %v9792_v6 = vunpack.i.l.bf16 %v9791_v23 }
 0x4b7   :  { %v10057_v51 = vpop.eup %10056  ;;  %8774 = vmatprep.mubr.msk.f32.mxu1 %vm1036_vm3, %v1211_v47  ;;  %v9349_v12 = vpack.c.bf16 %v9788_v52, %v9787_v42 }
 0x4b8   :  { %v1212_v36 = vmul.f32 %v10057_v51, %v10898_v61  ;;  %v9796_v58 = vpop.permute.xlu1 %9795  ;;  %v9355_v5 = vpack.c.bf16 %v9793_v55, %v9792_v6 }
 0x4b9   :  { %v9801_v31 = vpop.permute.xlu0 %9800  ;;  %v9798_v61 = vunpack.i.h.bf16 %v9796_v58  ;;  %v9797_v9 = vunpack.i.l.bf16 %v9796_v58 }
 0x4ba   :  { %8775 = vmatmul.mubr.msk.f32.vlgmr.msra.gmra.mrb[16].mxu1 %vm1036_vm3, %v1212_v36  ;;  %v9802_v28 = vunpack.i.l.bf16 %v9801_v31 }
 0x4bb   :  { %9342 = vmatpush3.bf16.xpose.msk.msra.mxu1 %vm10585_vm2, %v9337_v19  ;;  %8788 = vmatprep.mubr.msk.f32.mxu1 %vm343_vm1, %v10780_v8  ;;  %v9803_v8 = vunpack.i.h.bf16 %v9801_v31  ;;  %v9361_v29 = vpack.c.bf16 %v9798_v61, %v9797_v9 }
 0x4bc   :  { %8782 = vmatmul.mubr.msk.f32.vlgmr.msra.gmra.mrb[22].mxu0 %vm343_vm1, %v10680_v10  ;;  %9351 = vmatprep.subr.msk.bf16.mxu1 %vm10585_vm2, %v9349_v12  ;;  %v9806_v10 = vpop.permute.xlu1 %9805 }
 0x4bd   :  { %9348 = vmatpush3.bf16.xpose.msk.msra.mxu0 %vm10585_vm2, %v9343_v0  ;;  %8795 = vmatprep.mubr.msk.f32.mxu0 %vm343_vm1, %v10794_v17  ;;  %v9367_v13 = vpack.c.bf16 %v9803_v8, %v9802_v28  ;;  %v9807_v17 = vunpack.i.l.bf16 %v9806_v10 }
 0x4be   :  { %9357 = vmatprep.subr.msk.bf16.mxu0 %vm10585_vm2, %v9355_v5 }
 0x4c2   :  { %8789 = vmatmul.mubr.msk.f32.vlgmr.msra.gmra.mrb[18].mxu1 %vm343_vm1, %v10786_v59  ;;  %v9808_v59 = vunpack.i.h.bf16 %v9806_v10 }
 0x4c3   :  { %9354 = vmatpush3.bf16.xpose.msk.msra.mxu1 %vm10585_vm2, %v9349_v12  ;;  %8802 = vmatprep.mubr.msk.f32.mxu1 %vm343_vm1, %v10802_v62  ;;  %v9811_v62 = vpop.permute.xlu1 %9810 }
 0x4c4   :  { %8796 = vmatmul.mubr.msk.f32.vlgmr.msra.gmra.mrb[24].mxu0 %vm343_vm1, %v10782_v11  ;;  %9363 = vmatprep.subr.msk.bf16.mxu1 %vm10585_vm2, %v9361_v29  ;;  %v9373_v53 = vpack.c.bf16 %v9808_v59, %v9807_v17  ;;  %v9816_v11 = vpop.permute.xlu0 %9815 }
 0x4c5   :  { %9360 = vmatpush3.bf16.xpose.msk.msra.mxu0 %vm10585_vm2, %v9355_v5  ;;  %8809 = vmatprep.mubr.msk.f32.mxu0 %vm343_vm1, %v10790_v15  ;;  %v9812_v15 = vunpack.i.l.bf16 %v9811_v62  ;;  %v9818_v32 = vunpack.i.h.bf16 %v9816_v11  ;;  %v9817_v34 = vunpack.i.l.bf16 %v9816_v11 }
 0x4c6   :  { %9369 = vmatprep.subr.msk.bf16.mxu0 %vm10585_vm2, %v9367_v13 }
 0x4ca   :  { %8803 = vmatmul.mubr.msk.f32.vlgmr.msra.gmra.mrb[20].mxu1 %vm343_vm1, %v10784_v14  ;;  %v9813_v14 = vunpack.i.h.bf16 %v9811_v62 }
 0x4cb   :  { %9366 = vmatpush3.bf16.xpose.msk.msra.mxu1 %vm10585_vm2, %v9361_v29  ;;  %8816 = vmatprep.mubr.msk.f32.mxu1 %vm343_vm1, %v10806_v21  ;;  %v9821_v21 = vpop.permute.xlu1 %9820 }
 0x4cc   :  { %8810 = vmatmul.mubr.msk.f32.vlgmr.msra.gmra.mrb[26].mxu0 %vm343_vm1, %v10800_v63  ;;  %9375 = vmatprep.subr.msk.bf16.mxu1 %vm10585_vm2, %v9373_v53  ;;  %v9383_v63 = vpack.c.bf16 %v9813_v14, %v9812_v15  ;;  %v9823_v27 = vunpack.i.h.bf16 %v9821_v21  ;;  %v9822_v56 = vunpack.i.l.bf16 %v9821_v21 }
 0x4cd   :  { %9372 = vmatpush3.bf16.xpose.msk.msra.mxu0 %vm10585_vm2, %v9367_v13  ;;  %8823 = vmatprep.mubr.msk.f32.mxu0 %vm343_vm1, %v10810_v1  ;;  %v11037_v1 = vpack.c.bf16 %v9818_v32, %v9817_v34 }
 0x4ce   :  { %9380 = vmatprep.subr.bf16.mxu0 %v10690_v26 }
 0x4d2   :  { %8817 = vmatmul.mubr.msk.f32.vlgmr.msra.gmra.mrb[22].mxu1 %vm343_vm1, %v10804_v18  ;;  %v11043_v18 = vpack.c.bf16 %v9823_v27, %v9822_v56 }
 0x4d3   :  { %9378 = vmatpush3.bf16.xpose.msk.msra.mxu1 %vm10585_vm2, %v9373_v53  ;;  %8830 = vmatprep.mubr.msk.f32.mxu1 %vm343_vm1, %v10814_v7 }
 0x4d4   :  { %8824 = vmatmul.mubr.msk.f32.vlgmr.msra.gmra.mrb[28].mxu0 %vm343_vm1, %v10808_v2  ;;  %9384 = vmatprep.subr.bf16.mxu1 %v9383_v63 }
 0x4d5   :  { %9382 = vmatpush3.bf16.msra.mxu0 %v10690_v26 }
 0x4d6   :  { %9388 = vmatprep.subr.bf16.mxu0 %v11037_v1 }
 0x4da   :  { %8831 = vmatmul.mubr.msk.f32.vlgmr.msra.gmra.mrb[24].mxu1 %vm343_vm1, %v10812_v4 }
 0x4db   :  { %9386 = vmatpush3.bf16.msra.mxu1 %v9383_v63 }
 0x4dc   :  { %9392 = vmatprep.subr.bf16.mxu1 %v11043_v18 }
 0x531   :  { %v11046_v7 = vpop.f32.mrb[14].mxu0 }
 0x532   :  { %v11048_v2 = vpop.f32.mrb[15].mxu0 }
 0x546   :  { %v11050_v54 = vpop.f32.mrb[16].mxu0 }
 0x547   :  { %v11052_v33 = vpop.f32.mrb[17].mxu0 }
 0x549   :  { %v11054_v26 = vpop.f32.mrb[10].mxu1 }
 0x54a   :  { %v11056_v57 = vpop.f32.mrb[11].mxu1 }
 0x54d   :  { %v11058_v60 = vpop.f32.mrb[12].mxu1 }
 0x54e   :  { %v11060_v4 = vpop.f32.mrb[13].mxu1 }
 0x550   :  { %v11062_v38 = vpop.f32.mrb[18].mxu0 }
 0x551   :  { %v11064_v44 = vpop.f32.mrb[19].mxu0 }
 0x554   :  { %v11066_v20 = vpop.f32.mrb[14].mxu1 }
 0x555   :  { %v11068_v46 = vpop.f32.mrb[15].mxu1 }
 0x587   :  { %v11070_v48 = vpop.f32.mrb[20].mxu0 }
 0x588   :  { %v11072_v3 = vpop.f32.mrb[21].mxu0 }
 0x58d   :  { %v11074_v50 = vpop.f32.mrb[16].mxu1 }
 0x58e   :  { %v11076_v22 = vpop.f32.mrb[17].mxu1 }
 0x58f   :  { %v8783_v19 = vpop.f32.mrb[22].mxu0 }
 0x590   :  { %v2087_v49 = vpop.f32.mrb[23].mxu0  ;;  %v2708_v0 = vsel %vm1036_vm3, %v8783_v19, -inf }
 0x591   :  { %2709 = vmax.xlane.f32.xlu1 %v2708_v0  ;;  %v2705_v30 = vsel %vm1036_vm3, %v2087_v49, -inf }
 0x592   :  { %2706 = vmax.xlane.f32.xlu0 %v2705_v30 }
 0x595   :  { %v8790_v23 = vpop.f32.mrb[18].mxu1 }
 0x596   :  { %v11080_v47 = vpop.f32.mrb[19].mxu1  ;;  %v2714_v52 = vsel %vm1036_vm3, %v8790_v23, -inf }
 0x597   :  { %2715 = vmax.xlane.f32.xlu0 %v2714_v52  ;;  %v8797_v42 = vpop.f32.mrb[24].mxu0  ;;  %v2711_v58 = vsel %vm1036_vm3, %v11080_v47, -inf }
 0x598   :  { %v11083_v51 = vpop.f32.mrb[25].mxu0  ;;  %v2720_v6 = vsel %vm1036_vm3, %v8797_v42, -inf }
 0x599   :  { %v2717_v55 = vsel %vm1036_vm3, %v11083_v51, -inf }
 0x59a   :  { %2718 = vmax.xlane.f32.xlu1 %v2717_v55 }
 0x59b   :  { %2721 = vmax.xlane.f32.xlu0 %v2720_v6 }
 0x59d   :  { %v11088_v36 = vpop.f32.mrb[20].mxu1 }
 0x59e   :  { %v11090_v12 = vpop.f32.mrb[21].mxu1  ;;  %v2726_v9 = vsel %vm1036_vm3, %v11088_v36, -inf }
 0x59f   :  { %2712 = vmax.xlane.f32.xlu0 %v2711_v58  ;;  %v11094_v5 = vpop.f32.mrb[26].mxu0  ;;  %v2723_v31 = vsel %vm1036_vm3, %v11090_v12, -inf }
 0x5a0   :  { %2724 = vmax.xlane.f32.xlu1 %v2723_v31  ;;  %v11098_v61 = vpop.f32.mrb[27].mxu0  ;;  %v2732_v10 = vsel %vm1036_vm3, %v11094_v5, -inf }
 0x5a1   :  { %v2729_v8 = vsel %vm1036_vm3, %v11098_v61, -inf }
 0x5a3   :  { %2727 = vmax.xlane.f32.xlu0 %v2726_v9 }
 0x5a4   :  { %2730 = vmax.xlane.f32.xlu1 %v2729_v8 }
 0x5a5   :  { %v11104_v28 = vpop.f32.mrb[22].mxu1 }
 0x5a6   :  { %v11106_v29 = vpop.f32.mrb[23].mxu1  ;;  %v2738_v53 = vsel %vm1036_vm3, %v11104_v28, -inf }
 0x5a7   :  { %2733 = vmax.xlane.f32.xlu0 %v2732_v10  ;;  %v11110_v13 = vpop.f32.mrb[28].mxu0  ;;  %v2735_v59 = vsel %vm1036_vm3, %v11106_v29, -inf }
 0x5a8   :  { %2736 = vmax.xlane.f32.xlu1 %v2735_v59  ;;  %v11114_v17 = vpop.f32.mrb[29].mxu0  ;;  %v2744_v15 = vsel %vm1036_vm3, %v11110_v13, -inf }
 0x5a9   :  { %v2741_v62 = vsel %vm1036_vm3, %v11114_v17, -inf }
 0x5ab   :  { %2739 = vmax.xlane.f32.xlu0 %v2738_v53 }
 0x5ac   :  { %2742 = vmax.xlane.f32.xlu1 %v2741_v62 }
 0x5ad   :  { %v11120_v11 = vpop.f32.mrb[24].mxu1 }
 0x5ae   :  { %v11122_v14 = vpop.f32.mrb[25].mxu1  ;;  %v2750_v34 = vsel %vm1036_vm3, %v11120_v11, -inf }
 0x5af   :  { %2745 = vmax.xlane.f32.xlu0 %v2744_v15  ;;  %v2747_v32 = vsel %vm1036_vm3, %v11122_v14, -inf }
 0x5b0   :  { %2748 = vmax.xlane.f32.xlu1 %v2747_v32 }
 0x5b3   :  { %2751 = vmax.xlane.f32.xlu0 %v2750_v34 }
 0x5c1   :  { %9825 = vrot.lane.b32.xlu1 %v10688_v24, %s10312_s20 }
 0x5c9   :  { %9830 = vrot.lane.b32.xlu0 %v10688_v24, %s10313_s21 }
 0x61e   :  { %v2710_v63 = vpop.xlane.xlu1 %2709 }
 0x61f   :  { %v2754_v21 = vsub.f32 %v8783_v19, %v2710_v63  ;;  %v2707_v27 = vpop.xlane.xlu0 %2706 }
 0x620   :  { %v2753_v56 = vsub.f32 %v2087_v49, %v2707_v27 }
 0x621   :  { %v2771_v0 = vmul.f32 1.442695, %v2754_v21 }
 0x622   :  { %v2769_v30 = vmul.f32 1.442695, %v2753_v56 }
 0x623   :  { %10058 = vpow2.f32 %v2771_v0 }
 0x624   :  { %10060 = vpow2.f32 %v2769_v30  ;;  %v2716_v52 = vpop.xlane.xlu0 %2715 }
 0x625   :  { %v2756_v55 = vsub.f32 %v8790_v23, %v2716_v52 }
 0x627   :  { %v2775_v6 = vmul.f32 1.442695, %v2756_v55  ;;  %v2719_v58 = vpop.xlane.xlu1 %2718 }
 0x628   :  { %v2722_v31 = vpop.xlane.xlu0 %2721  ;;  %v2757_v8 = vsub.f32 %v11083_v51, %v2719_v58 }
 0x629   :  { %10062 = vpow2.f32 %v2775_v6  ;;  %v2758_v9 = vsub.f32 %v8797_v42, %v2722_v31 }
 0x62a   :  { %v2777_v15 = vmul.f32 1.442695, %v2757_v8 }
 0x62b   :  { %v2779_v10 = vmul.f32 1.442695, %v2758_v9 }
 0x62c   :  { %v2713_v59 = vpop.xlane.xlu0 %2712 }
 0x62d   :  { %v11135_v53 = vpop.eup %10058  ;;  %10064 = vpow2.f32 %v2779_v10  ;;  %v2755_v19 = vsub.f32 %v11080_v47, %v2713_v59  ;;  %v2725_v49 = vpop.xlane.xlu1 %2724 }
 0x62e   :  { %v11138_v62 = vpop.eup %10060  ;;  %v2804_v23 = vsel %vm1036_vm3, %v11135_v53, 0.0  ;;  %v2759_v34 = vsub.f32 %v11090_v12, %v2725_v49 }
 0x62f   :  { %v2773_v32 = vmul.f32 1.442695, %v2755_v19  ;;  %2805 = vadd.xlane.f32.xlu0 %v2804_v23  ;;  %v2801_v42 = vsel %vm1036_vm3, %v11138_v62, 0.0 }
 0x630   :  { %v2728_v51 = vpop.xlane.xlu0 %2727  ;;  %2802 = vadd.xlane.f32.xlu1 %v2801_v42  ;;  %v2781_v27 = vmul.f32 1.442695, %v2759_v34 }
 0x631   :  { %10066 = vpow2.f32 %v2773_v32  ;;  %v2760_v63 = vsub.f32 %v11088_v36, %v2728_v51  ;;  %v2731_v47 = vpop.xlane.xlu1 %2730 }
 0x632   :  { %10068 = vpow2.f32 %v2777_v15  ;;  %v2761_v0 = vsub.f32 %v11098_v61, %v2731_v47 }
 0x633   :  { %v11146_v21 = vpop.eup %10062  ;;  %v2783_v56 = vmul.f32 1.442695, %v2760_v63 }
 0x634   :  { %v2734_v30 = vpop.xlane.xlu0 %2733  ;;  %v2810_v12 = vsel %vm1036_vm3, %v11146_v21, 0.0  ;;  %v2785_v36 = vmul.f32 1.442695, %v2761_v0 }
 0x635   :  { %10070 = vpow2.f32 %v2783_v56  ;;  %v2762_v52 = vsub.f32 %v11094_v5, %v2734_v30  ;;  %v2737_v55 = vpop.xlane.xlu1 %2736  ;;  %2811 = vadd.xlane.f32.xlu0 %v2810_v12 }
 0x636   :  { %10072 = vpow2.f32 %v2781_v27  ;;  %v2763_v31 = vsub.f32 %v11106_v29, %v2737_v55 }
 0x637   :  { %v11152_v6 = vpop.eup %10064  ;;  %v2787_v58 = vmul.f32 1.442695, %v2762_v52 }
 0x638   :  { %v2740_v9 = vpop.xlane.xlu0 %2739  ;;  %v2816_v61 = vsel %vm1036_vm3, %v11152_v6, 0.0  ;;  %v2789_v5 = vmul.f32 1.442695, %v2763_v31 }
 0x639   :  { %10074 = vpow2.f32 %v2787_v58  ;;  %v2764_v8 = vsub.f32 %v11104_v28, %v2740_v9  ;;  %2817 = vadd.xlane.f32.xlu0 %v2816_v61  ;;  %v2743_v10 = vpop.xlane.xlu1 %2742 }
 0x63a   :  { %10076 = vpow2.f32 %v2785_v36  ;;  %v2765_v49 = vsub.f32 %v11114_v17, %v2743_v10 }
 0x63b   :  { %v11158_v59 = vpop.eup %10066  ;;  %v2791_v19 = vmul.f32 1.442695, %v2764_v8 }
 0x63c   :  { %v2746_v23 = vpop.xlane.xlu0 %2745  ;;  %v2807_v29 = vsel %vm1036_vm3, %v11158_v59, 0.0  ;;  %v11163_v15 = vpop.eup %10068  ;;  %v2793_v42 = vmul.f32 1.442695, %v2765_v49 }
 0x63d   :  { %10078 = vpow2.f32 %v2791_v19  ;;  %v2766_v32 = vsub.f32 %v11110_v13, %v2746_v23  ;;  %2808 = vadd.xlane.f32.xlu1 %v2807_v29  ;;  %v2749_v28 = vpop.xlane.xlu1 %2748  ;;  %v2813_v27 = vsel %vm1036_vm3, %v11163_v15, 0.0 }
 0x63e   :  { %10080 = vpow2.f32 %v2789_v5  ;;  %v2767_v63 = vsub.f32 %v11122_v14, %v2749_v28 }
 0x63f   :  { %v11166_v34 = vpop.eup %10070  ;;  %v2795_v51 = vmul.f32 1.442695, %v2766_v32 }
 0x640   :  { %v2752_v47 = vpop.xlane.xlu0 %2751  ;;  %v2822_v17 = vsel %vm1036_vm3, %v11166_v34, 0.0  ;;  %v11173_v56 = vpop.eup %10072  ;;  %v2797_v30 = vmul.f32 1.442695, %v2767_v63 }
 0x641   :  { %10082 = vpow2.f32 %v2795_v51  ;;  %v2768_v13 = vsub.f32 %v11120_v11, %v2752_v47  ;;  %2823 = vadd.xlane.f32.xlu0 %v2822_v17  ;;  %2814 = vadd.xlane.f32.xlu1 %v2813_v27  ;;  %v2819_v52 = vsel %vm1036_vm3, %v11173_v56, 0.0 }
 0x642   :  { %10084 = vpow2.f32 %v2793_v42 }
 0x643   :  { %v11176_v0 = vpop.eup %10074  ;;  %v2799_v12 = vmul.f32 1.442695, %v2768_v13 }
 0x644   :  { %v2828_v14 = vsel %vm1036_vm3, %v11176_v0, 0.0  ;;  %v11182_v55 = vpop.eup %10076 }
 0x645   :  { %10086 = vpow2.f32 %v2799_v12  ;;  %2829 = vadd.xlane.f32.xlu0 %v2828_v14  ;;  %2820 = vadd.xlane.f32.xlu1 %v2819_v52  ;;  %v2825_v58 = vsel %vm1036_vm3, %v11182_v55, 0.0 }
 0x646   :  { %10088 = vpow2.f32 %v2797_v30 }
 0x647   :  { %v11184_v36 = vpop.eup %10078 }
 0x648   :  { %v2834_v11 = vsel %vm1036_vm3, %v11184_v36, 0.0  ;;  %v11190_v31 = vpop.eup %10080 }
 0x649   :  { %2835 = vadd.xlane.f32.xlu0 %v2834_v11  ;;  %2826 = vadd.xlane.f32.xlu1 %v2825_v58  ;;  %v2831_v8 = vsel %vm1036_vm3, %v11190_v31, 0.0 }
 0x64b   :  { %v11192_v9 = vpop.eup %10082 }
 0x64c   :  { %v2840_v61 = vsel %vm1036_vm3, %v11192_v9, 0.0  ;;  %v11198_v10 = vpop.eup %10084 }
 0x64d   :  { %2841 = vadd.xlane.f32.xlu0 %v2840_v61  ;;  %2832 = vadd.xlane.f32.xlu1 %v2831_v8  ;;  %v2837_v49 = vsel %vm1036_vm3, %v11198_v10, 0.0 }
 0x64f   :  { %v11200_v5 = vpop.eup %10086 }
 0x650   :  { %v2846_v19 = vsel %vm1036_vm3, %v11200_v5, 0.0  ;;  %v11206_v23 = vpop.eup %10088 }
 0x651   :  { %2847 = vadd.xlane.f32.xlu0 %v2846_v19  ;;  %2838 = vadd.xlane.f32.xlu1 %v2837_v49  ;;  %v2843_v29 = vsel %vm1036_vm3, %v11206_v23, 0.0 }
 0x655   :  { %2844 = vadd.xlane.f32.xlu1 %v2843_v29 }
 0x666   :  { %9835 = vrot.lane.b32.xlu1 %v10688_v24, %s10314_s22 }
 0x667   :  { %9840 = vrot.lane.b32.xlu0 %v10688_v24, %s10315_s23  ;;  %v9831_v24 = vpop.permute.xlu0 %9830 }
 0x668   :  { %v9832_v63 = vunpack.i.l.bf16 %v9831_v24 }
 0x66a   :  { %1863 = vrot.lane.b32.xlu1 %v11056_v57, %s10317_s3 }
 0x66b   :  { %1865 = vrot.lane.b32.xlu0 %v11054_v26, %s10317_s3 }
 0x66e   :  { %1871 = vrot.lane.b32.xlu1 %v11052_v33, %s10318_s30 }
 0x66f   :  { %1873 = vrot.lane.b32.xlu0 %v11050_v54, %s10318_s30  ;;  %v9826_v54 = vpop.permute.xlu1 %9825 }
 0x672   :  { %1879 = vrot.lane.b32.xlu1 %v11060_v4, %s10319_s2 }
 0x673   :  { %1881 = vrot.lane.b32.xlu0 %v11058_v60, %s10319_s2 }
 0x676   :  { %1887 = vrot.lane.b32.xlu1 %v11064_v44, %s10320_s16  ;;  %v9827_v44 = vunpack.i.l.bf16 %v9826_v54 }
 0x677   :  { %1889 = vrot.lane.b32.xlu0 %v11062_v38, %s10320_s16  ;;  %v9828_v38 = vunpack.i.h.bf16 %v9826_v54 }
 0x67a   :  { %1895 = vrot.lane.b32.xlu1 %v11068_v46, %s12469_s24 }
 0x67b   :  { %1897 = vrot.lane.b32.xlu0 %v11066_v20, %s12469_s24 }
 0x67e   :  { %1903 = vrot.lane.b32.xlu1 %v11072_v3, %s12467_s25 }
 0x67f   :  { %1905 = vrot.lane.b32.xlu0 %v11070_v48, %s12467_s25 }
 0x682   :  { %1911 = vrot.lane.b32.xlu1 %v11076_v22, %s12465_s5 }
 0x683   :  { %1913 = vrot.lane.b32.xlu0 %v11074_v50, %s12465_s5  ;;  %v9395_v50 = vpack.c.bf16 %v9828_v38, %v9827_v44  ;;  %v3599_v38 = vld [vmem:[%s12455_s6] sm:$0xff]  ;;  %v3600_v44 = vld [vmem:[%s12455_s6 + $0x8] sm:$0xff] }
 0x6bc   :  { %v2806_v33 = vpop.xlane.xlu0 %2805 }
 0x6bd   :  { %10090 = vrcp.f32 %v2806_v33  ;;  %v2803_v26 = vpop.xlane.xlu1 %2802 }
 0x6be   :  { %10092 = vrcp.f32 %v2803_v26 }
 0x6c2   :  { %v2812_v57 = vpop.xlane.xlu0 %2811 }
 0x6c3   :  { %10094 = vrcp.f32 %v2812_v57 }
 0x6c6   :  { %v2818_v46 = vpop.xlane.xlu0 %2817 }
 0x6c7   :  { %v10091_v60 = vpop.eup %10090 }
 0x6c8   :  { %v10093_v4 = vpop.eup %10092  ;;  %v2866_v3 = vmul.f32 %v10091_v60, %v11135_v53  ;;  %v9833_v53 = vunpack.i.h.bf16 %v9831_v24 }
 0x6c9   :  { %v2865_v20 = vmul.f32 %v10093_v4, %v11138_v62 }
 0x6ca   :  { %v2809_v48 = vpop.xlane.xlu1 %2808  ;;  %v9399_v30 = vpack.c.bf16 %v9833_v53, %v9832_v63 }
 0x6cb   :  { %10096 = vrcp.f32 %v2809_v48  ;;  %8837 = vmatprep.mubr.msk.f32.mxu0 %vm1036_vm3, %v2865_v20 }
 0x6cc   :  { %8838 = vmatmul.mubr.msk.f32.vlgmr.msra.gmra.mrb[30].mxu0 %vm1036_vm3, %v2866_v3  ;;  %10098 = vrcp.f32 %v2818_v46 }
 0x6cd   :  { %9390 = vmatpush3.bf16.msra.mxu0 %v11037_v1  ;;  %v10095_v42 = vpop.eup %10094 }
 0x6ce   :  { %9396 = vmatprep.subr.bf16.mxu0 %v9395_v50  ;;  %v2824_v22 = vpop.xlane.xlu0 %2823  ;;  %v2815_v32 = vpop.xlane.xlu1 %2814  ;;  %v2868_v1 = vmul.f32 %v10095_v42, %v11146_v21 }
 0x6cf   :  { %10100 = vrcp.f32 %v2815_v32 }
 0x6d0   :  { %10102 = vrcp.f32 %v2824_v22 }
 0x6d2   :  { %v2830_v28 = vpop.xlane.xlu0 %2829  ;;  %v2821_v62 = vpop.xlane.xlu1 %2820 }
 0x6d3   :  { %10104 = vrcp.f32 %v2821_v62  ;;  %v3601_v62 = vld [vmem:[%s12455_s6 + $0x10] sm:$0xff] }
 0x6d4   :  { %10106 = vrcp.f32 %v2830_v28 }
 0x6d5   :  { %v10097_v51 = vpop.eup %10096 }
 0x6d6   :  { %v2836_v47 = vpop.xlane.xlu0 %2835  ;;  %v2827_v17 = vpop.xlane.xlu1 %2826  ;;  %v2867_v27 = vmul.f32 %v10097_v51, %v11158_v59 }
 0x6d7   :  { %10108 = vrcp.f32 %v2827_v17  ;;  %v10099_v13 = vpop.eup %10098 }
 0x6d8   :  { %8844 = vmatprep.mubr.msk.f32.mxu1 %vm1036_vm3, %v2867_v27  ;;  %10110 = vrcp.f32 %v2836_v47  ;;  %v2870_v59 = vmul.f32 %v10099_v13, %v11152_v6 }
 0x6d9   :  { %8845 = vmatmul.mubr.msk.f32.vlgmr.msra.gmra.mrb[26].mxu1 %vm1036_vm3, %v2868_v1  ;;  %v10101_v12 = vpop.eup %10100  ;;  %v3603_v1 = vld [vmem:[%s12455_s6 + $0x20] sm:$0xff] }
 0x6da   :  { %9394 = vmatpush3.bf16.msra.mxu1 %v11043_v18  ;;  %v2842_v14 = vpop.xlane.xlu0 %2841  ;;  %v2833_v52 = vpop.xlane.xlu1 %2832  ;;  %v2869_v11 = vmul.f32 %v10101_v12, %v11163_v15  ;;  %v3605_v12 = vld [vmem:[%s12455_s6 + $0x30] sm:$0xff] }
 0x6db   :  { %9400 = vmatprep.subr.bf16.mxu1 %v9399_v30  ;;  %10112 = vrcp.f32 %v2833_v52  ;;  %v10103_v21 = vpop.eup %10102 }
 0x6dc   :  { %8851 = vmatprep.mubr.msk.f32.mxu0 %vm1036_vm3, %v2869_v11  ;;  %10114 = vrcp.f32 %v2842_v14  ;;  %v2872_v19 = vmul.f32 %v10103_v21, %v11166_v34  ;;  %v3606_v14 = vld [vmem:[%s12455_s6 + $0x38] sm:$0xff] }
 0x6dd   :  { %v10105_v58 = vpop.eup %10104  ;;  %8852 = vmatmul.mubr.msk.f32.vlgmr.msra.gmra.mrb[32].mxu0 %vm1036_vm3, %v2870_v59 }
 0x6de   :  { %v2848_v61 = vpop.xlane.xlu0 %2847  ;;  %v2839_v8 = vpop.xlane.xlu1 %2838  ;;  %9398 = vmatpush3.bf16.msra.mxu0 %v9395_v50  ;;  %v2871_v18 = vmul.f32 %v10105_v58, %v11173_v56  ;;  %v9411_v50 = vpack.c.bf16 %v3600_v44, %v3599_v38 }
 0x6df   :  { %10116 = vrcp.f32 %v2839_v8  ;;  %v10107_v49 = vpop.eup %10106 }
 0x6e0   :  { %8858 = vmatprep.mubr.msk.f32.mxu1 %vm1036_vm3, %v2871_v18  ;;  %10118 = vrcp.f32 %v2848_v61  ;;  %v2874_v56 = vmul.f32 %v10107_v49, %v11176_v0 }
 0x6e1   :  { %v10109_v15 = vpop.eup %10108  ;;  %8859 = vmatmul.mubr.msk.f32.vlgmr.msra.gmra.mrb[28].mxu1 %vm1036_vm3, %v2872_v19 }
 0x6e2   :  { %v9841_v6 = vpop.permute.xlu0 %9840  ;;  %v2845_v29 = vpop.xlane.xlu1 %2844  ;;  %9402 = vmatpush3.bf16.msra.mxu1 %v9399_v30  ;;  %v2873_v33 = vmul.f32 %v10109_v15, %v11182_v55 }
 0x6e3   :  { %v9843_v24 = vunpack.i.h.bf16 %v9841_v6  ;;  %v9842_v54 = vunpack.i.l.bf16 %v9841_v6  ;;  %10120 = vrcp.f32 %v2845_v29  ;;  %v10111_v26 = vpop.eup %10110 }
 0x6e4   :  { %8865 = vmatprep.mubr.msk.f32.mxu0 %vm1036_vm3, %v2873_v33  ;;  %v2876_v46 = vmul.f32 %v10111_v26, %v11184_v36 }
 0x6e5   :  { %v9407_v34 = vpack.c.bf16 %v9843_v24, %v9842_v54  ;;  %v10113_v57 = vpop.eup %10112  ;;  %8866 = vmatmul.mubr.msk.f32.vlgmr.msra.gmra.mrb[34].mxu0 %vm1036_vm3, %v2874_v56 }
 0x6e6   :  { %v1866_v60 = vpop.permute.xlu0 %1865  ;;  %v9836_v4 = vpop.permute.xlu1 %9835  ;;  %v2875_v0 = vmul.f32 %v10113_v57, %v11190_v31  ;;  %v3602_v31 = vld [vmem:[%s12455_s6 + $0x18] sm:$0xff] }
 0x6e7   :  { %v9838_v55 = vunpack.i.h.bf16 %v9836_v4  ;;  %v9837_v20 = vunpack.i.l.bf16 %v9836_v4  ;;  %9408 = vmatprep.subr.bf16.mxu1 %v9407_v34  ;;  %v10115_v48 = vpop.eup %10114  ;;  %v9415_v63 = vpack.c.bf16 %v3602_v31, %v3601_v62  ;;  %v1918_v61 = vsel %vm343_vm1, %v11046_v7, %v1866_v60 }
 0x6e8   :  { %8872 = vmatprep.mubr.msk.f32.mxu1 %vm1036_vm3, %v2875_v0  ;;  %v2878_v53 = vmul.f32 %v10115_v48, %v11192_v9 }
 0x6e9   :  { %v9403_v3 = vpack.c.bf16 %v9838_v55, %v9837_v20  ;;  %v10117_v22 = vpop.eup %10116  ;;  %8873 = vmatmul.mubr.msk.f32.vlgmr.msra.gmra.mrb[30].mxu1 %vm1036_vm3, %v2876_v46 }
 0x6ea   :  { %v1874_v32 = vpop.permute.xlu0 %1873  ;;  %v1864_v28 = vpop.permute.xlu1 %1863  ;;  %9410 = vmatpush3.bf16.msra.mxu1 %v9407_v34  ;;  %v2877_v36 = vmul.f32 %v10117_v22, %v11198_v10  ;;  %v3604_v10 = vld [vmem:[%s12455_s6 + $0x28] sm:$0xff] }
 0x6eb   :  { %9404 = vmatprep.subr.bf16.mxu0 %v9403_v3  ;;  %v10119_v42 = vpop.eup %10118  ;;  %v9419_v9 = vpack.c.bf16 %v3604_v10, %v3603_v1  ;;  %v1917_v58 = vsel %vm343_vm1, %v11048_v2, %v1864_v28  ;;  %v1920_v19 = vsel %vm1036_vm3, %v1918_v61, %v1874_v32 }
 0x6ec   :  { %9406 = vmatpush3.bf16.msra.mxu0 %v9403_v3  ;;  %8879 = vmatprep.mubr.msk.f32.mxu0 %vm1036_vm3, %v2877_v36  ;;  %v2880_v13 = vmul.f32 %v10119_v42, %v11200_v5  ;;  %v9423_v5 = vpack.c.bf16 %v3606_v14, %v3605_v12  ;;  %v11335_v42 = vld [vmem:[%s12458_s9 + $0x1] ss:$0 sm:$0xff] }
 0x6ed   :  { %v10121_v51 = vpop.eup %10120  ;;  %9412 = vmatprep.subr.bf16.mxu0 %v9411_v50 }
 0x6ee   :  { %v1882_v47 = vpop.permute.xlu0 %1881  ;;  %v1872_v17 = vpop.permute.xlu1 %1871  ;;  %v2879_v27 = vmul.f32 %v10121_v51, %v11206_v23 }
 0x6ef   :  { %8880 = vmatmul.mubr.msk.f32.vlgmr.msra.gmra.mrb[36].mxu0 %vm1036_vm3, %v2878_v53  ;;  %v1919_v8 = vsel %vm1036_vm3, %v1917_v58, %v1872_v17  ;;  %v1923_v15 = vsel %vm1921_vm4, %v1920_v19, %v1882_v47 }
 0x6f0   :  { %8886 = vmatprep.mubr.msk.f32.mxu1 %vm1036_vm3, %v2879_v27  ;;  %9414 = vmatpush3.bf16.msra.mxu0 %v9411_v50 }
 0x6f1   :  { %8887 = vmatmul.mubr.msk.f32.vlgmr.msra.gmra.mrb[32].mxu1 %vm1036_vm3, %v2880_v13  ;;  %9416 = vmatprep.subr.bf16.mxu0 %v9415_v63 }
 0x6f2   :  { %v1890_v23 = vpop.permute.xlu0 %1889  ;;  %v1880_v30 = vpop.permute.xlu1 %1879 }
 0x6f3   :  { %v1922_v49 = vsel %vm1921_vm4, %v1919_v8, %v1880_v30  ;;  %v1925_v29 = vsel %vm163_vm0, %v1923_v15, %v1890_v23 }
 0x6f4   :  { %9418 = vmatpush3.bf16.msra.mxu0 %v9415_v63 }
 0x6f5   :  { %9420 = vmatprep.subr.bf16.mxu0 %v9419_v9 }
 0x6f6   :  { %v1898_v52 = vpop.permute.xlu0 %1897  ;;  %v1888_v11 = vpop.permute.xlu1 %1887 }
 0x6f7   :  { %v1924_v6 = vsel %vm163_vm0, %v1922_v49, %v1888_v11  ;;  %v1928_v7 = vsel %vm1926_vm5, %v1925_v29, %v1898_v52 }
 0x6f8   :  { %9422 = vmatpush3.bf16.msra.mxu0 %v9419_v9 }
 0x6f9   :  { %9424 = vmatprep.subr.bf16.mxu0 %v9423_v5 }
 0x6fa   :  { %v1896_v59 = vpop.permute.xlu1 %1895  ;;  %v1906_v21 = vpop.permute.xlu0 %1905 }
 0x6fb   :  { %v1927_v2 = vsel %vm1926_vm5, %v1924_v6, %v1896_v59  ;;  %v1931_v56 = vsel %vm1929_vm6, %v1928_v7, %v1906_v21 }
 0x6fc   :  { %9426 = vmatpush3.bf16.msra.mxu0 %v9423_v5 }
 0x6fe   :  { %v1904_v18 = vpop.permute.xlu1 %1903  ;;  %v1914_v24 = vpop.permute.xlu0 %1913 }
 0x6ff   :  { %v1930_v54 = vsel %vm1929_vm6, %v1927_v2, %v1904_v18  ;;  %v1934_v34 = vsel %vm1932_vm7, %v1931_v56, %v1914_v24 }
 0x702   :  { %v1912_v33 = vpop.permute.xlu1 %1911 }
 0x703   :  { %v1933_v26 = vsel %vm1932_vm7, %v1930_v54, %v1912_v33 }
 0x704   :  { %8905 = vmatprep.mubr.msk.f32.mxu0 %vm3607_vm8, %v1933_v26 }
 0x705   :  { %8906 = vmatmul.mubr.msk.f32.vlgmr.msra.gmra.mrb[38].mxu0 %vm3607_vm8, %v1934_v34 }
 0x79f   :  { %v8839_v57 = vpop.f32.mrb[30].mxu0 }
 0x7a0   :  { %v2953_v60 = vpop.f32.mrb[31].mxu0 }
 0x7ac   :  { %v8846_v4 = vpop.f32.mrb[26].mxu1 }
 0x7ad   :  { %3533 = vrot.lane.b32.xlu0 %v8846_v4, %s10317_s3  ;;  %v3034_v38 = vpop.f32.mrb[27].mxu1 }
 0x7ae   :  { %3531 = vrot.lane.b32.xlu1 %v3034_v38, %s10317_s3 }
 0x7b0   :  { %v8853_v44 = vpop.f32.mrb[32].mxu0 }
 0x7b1   :  { %3541 = vrot.lane.b32.xlu0 %v8853_v44, %s10318_s30  ;;  %v3115_v55 = vpop.f32.mrb[33].mxu0 }
 0x7b2   :  { %3539 = vrot.lane.b32.xlu1 %v3115_v55, %s10318_s30 }
 0x7b4   :  { %v8860_v20 = vpop.f32.mrb[28].mxu1 }
 0x7b5   :  { %3549 = vrot.lane.b32.xlu0 %v8860_v20, %s10319_s2  ;;  %v3196_v0 = vpop.f32.mrb[29].mxu1  ;;  %v3770_v20 = vld [vmem:[%s12456_s7] sm:$0xff] }
 0x7b6   :  { %3547 = vrot.lane.b32.xlu1 %v3196_v0, %s10319_s2  ;;  %v3771_v0 = vld [vmem:[%s12456_s7 + $0x8] sm:$0xff] }
 0x7b8   :  { %v8867_v46 = vpop.f32.mrb[34].mxu0 }
 0x7b9   :  { %3557 = vrot.lane.b32.xlu0 %v8867_v46, %s10320_s16  ;;  %v3277_v48 = vpop.f32.mrb[35].mxu0  ;;  %v3772_v46 = vld [vmem:[%s12456_s7 + $0x10] sm:$0xff] }
 0x7ba   :  { %3555 = vrot.lane.b32.xlu1 %v3277_v48, %s10320_s16  ;;  %v9427_v48 = vpack.c.bf16 %v3771_v0, %v3770_v20 }
 0x7bc   :  { %v8874_v3 = vpop.f32.mrb[30].mxu1  ;;  %9428 = vmatprep.subr.bf16.mxu1 %v9427_v48 }
 0x7bd   :  { %v3358_v50 = vpop.f32.mrb[31].mxu1  ;;  %3565 = vrot.lane.b32.xlu0 %v8874_v3, %s12469_s24  ;;  %v3773_v3 = vld [vmem:[%s12456_s7 + $0x18] sm:$0xff]  ;;  %9430 = vmatpush3.bf16.msra.mxu1 %v9427_v48  ;;  %v140_v48 = vld [vmem:[%s12458_s9 + $0x4] ss:$0 sm:$0xff] }
 0x7be   :  { %3563 = vrot.lane.b32.xlu1 %v3358_v50, %s12469_s24  ;;  %v9431_v50 = vpack.c.bf16 %v3773_v3, %v3772_v46 }
 0x7c0   :  { %9432 = vmatprep.subr.bf16.mxu1 %v9431_v50 }
 0x7c1   :  { %9434 = vmatpush3.bf16.msra.mxu1 %v9431_v50 }
 0x7c2   :  { %v8881_v22 = vpop.f32.mrb[36].mxu0 }
 0x7c3   :  { %3573 = vrot.lane.b32.xlu0 %v8881_v22, %s12467_s25  ;;  %v3439_v32 = vpop.f32.mrb[37].mxu0 }
 0x7c4   :  { %v8888_v28 = vpop.f32.mrb[32].mxu1  ;;  %3571 = vrot.lane.b32.xlu1 %v3439_v32, %s12467_s25 }
 0x7c5   :  { %v3520_v62 = vpop.f32.mrb[33].mxu1 }
 0x7c7   :  { %3581 = vrot.lane.b32.xlu0 %v8888_v28, %s12465_s5 }
 0x7c8   :  { %3579 = vrot.lane.b32.xlu1 %v3520_v62, %s12465_s5 }
 0x7d8   :  { %v8907_v31 = vpop.f32.mrb[38].mxu0 }
 0x7d9   :  { %v3686_v36 = vpop.f32.mrb[39].mxu0  ;;  %v3692_v51 = vadd.f32 %v8907_v31, %v11335_v42 }
 0x7da   :  { %v3687_v63 = vadd.f32 %v3686_v36, %v11335_v42 }
 0x7db   :  { %v3706_v53 = vadd.f32 %v3692_v51, %v10476_v37 }
 0x7dc   :  { %v3705_v17 = vadd.f32 %v3687_v63, %v10468_v35 }
 0x7dd   :  { %v3712_v47 = vsel %vm163_vm0, %v3706_v53, 0.0 }
 0x7de   :  { %v3709_v27 = vsel %vm163_vm0, %v3705_v17, 0.0 }
 0x7e6   :  { %3713 = vadd.xlane.f32.xlu0 %v3712_v47 }
 0x7ec   :  { %3710 = vadd.xlane.f32.xlu1 %v3709_v27 }
 0x81f   :  { %v3534_v1 = vpop.permute.xlu0 %3533 }
 0x820   :  { %v3532_v10 = vpop.permute.xlu1 %3531  ;;  %v3586_v59 = vsel %vm343_vm1, %v8839_v57, %v3534_v1 }
 0x821   :  { %v3585_v52 = vsel %vm343_vm1, %v2953_v60, %v3532_v10 }
 0x823   :  { %v3542_v13 = vpop.permute.xlu0 %3541 }
 0x824   :  { %v3540_v9 = vpop.permute.xlu1 %3539  ;;  %v3588_v58 = vsel %vm1036_vm3, %v3586_v59, %v3542_v13 }
 0x825   :  { %v3587_v35 = vsel %vm1036_vm3, %v3585_v52, %v3540_v9 }
 0x827   :  { %v3550_v23 = vpop.permute.xlu0 %3549 }
 0x828   :  { %v3548_v30 = vpop.permute.xlu1 %3547  ;;  %v3590_v8 = vsel %vm1921_vm4, %v3588_v58, %v3550_v23  ;;  %v138_v23 = vld [vmem:[%s12458_s9 + $0x2] ss:$0 sm:$0xff] }
 0x829   :  { %v3589_v61 = vsel %vm1921_vm4, %v3587_v35, %v3548_v30 }
 0x82b   :  { %v3558_v12 = vpop.permute.xlu0 %3557 }
 0x82c   :  { %v3556_v14 = vpop.permute.xlu1 %3555  ;;  %v3592_v19 = vsel %vm163_vm0, %v3590_v8, %v3558_v12 }
 0x82d   :  { %v3591_v18 = vsel %vm163_vm0, %v3589_v61, %v3556_v14 }
 0x82f   :  { %v3566_v5 = vpop.permute.xlu0 %3565 }
 0x830   :  { %v3564_v37 = vpop.permute.xlu1 %3563  ;;  %v3594_v6 = vsel %vm1926_vm5, %v3592_v19, %v3566_v5  ;;  %v3875_v19 = vld [vmem:[%s12457_s8] sm:$0xff] }
 0x831   :  { %v3593_v49 = vsel %vm1926_vm5, %v3591_v18, %v3564_v37 }
 0x835   :  { %v3574_v11 = vpop.permute.xlu0 %3573 }
 0x836   :  { %v3572_v21 = vpop.permute.xlu1 %3571  ;;  %v3596_v24 = vsel %vm1929_vm6, %v3594_v6, %v3574_v11 }
 0x837   :  { %v3595_v29 = vsel %vm1929_vm6, %v3593_v49, %v3572_v21  ;;  %v3876_v49 = vld [vmem:[%s12457_s8 + $0x8] sm:$0xff] }
 0x838   :  { %v9435_v6 = vpack.c.bf16 %v3876_v49, %v3875_v19  ;;  %v4055_v19 = vld [vmem:[%s12459_s10 + $0x18] sm:$0xff] }
 0x839   :  { %v3582_v15 = vpop.permute.xlu0 %3581 }
 0x83a   :  { %v3580_v2 = vpop.permute.xlu1 %3579  ;;  %v3598_v54 = vsel %vm1932_vm7, %v3596_v24, %v3582_v15  ;;  %v3877_v15 = vld [vmem:[%s12457_s8 + $0x10] sm:$0xff]  ;;  %v3879_v24 = vld [vmem:[%s12457_s8 + $0x20] sm:$0xff]  ;;  %9436 = vmatprep.subr.bf16.mxu1 %v9435_v6 }
 0x83b   :  { %v3597_v7 = vsel %vm1932_vm7, %v3595_v29, %v3580_v2  ;;  %v3878_v29 = vld [vmem:[%s12457_s8 + $0x18] sm:$0xff] }
 0x83c   :  { %8908 = vmatprep.mubr.msk.f32.mxu0 %vm3607_vm8, %v3597_v7  ;;  %v9439_v2 = vpack.c.bf16 %v3878_v29, %v3877_v15  ;;  %v3880_v7 = vld [vmem:[%s12457_s8 + $0x28] sm:$0xff]  ;;  %v4052_v15 = vld [vmem:[%s12459_s10] sm:$0xff] }
 0x83d   :  { %8909 = vmatmul.mubr.msk.f32.gmra.mrb[40].mxu0 %vm3607_vm8, %v3598_v54  ;;  %v9443_v54 = vpack.c.bf16 %v3880_v7, %v3879_v24  ;;  %v4059_v24 = vld [vmem:[%s12459_s10 + $0x38] sm:$0xff] }
 0x83e   :  { %4147 = vmatprep.mubr.f32.mxu0 %v10308_v16 }
 0x873   :  { %v3714_v33 = vpop.xlane.xlu0 %3713 }
 0x874   :  { %v3723_v56 = vmul.f32 0.03125, %v3714_v33  ;;  %v3881_v33 = vld [vmem:[%s12457_s8 + $0x30] sm:$0xff] }
 0x876   :  { %v3727_v26 = vsub.f32 %v3706_v53, %v3723_v56  ;;  %v3882_v56 = vld [vmem:[%s12457_s8 + $0x38] sm:$0xff] }
 0x878   :  { %v3731_v34 = vmul.f32 %v3727_v26, %v3727_v26 }
 0x879   :  { %v3711_v57 = vpop.xlane.xlu1 %3710 }
 0x87a   :  { %v3722_v60 = vmul.f32 0.03125, %v3711_v57  ;;  %v3737_v4 = vsel %vm163_vm0, %v3731_v34, 0.0 }
 0x87b   :  { %3738 = vadd.xlane.f32.xlu1 %v3737_v4 }
 0x87c   :  { %v3726_v38 = vsub.f32 %v3705_v17, %v3722_v60 }
 0x87e   :  { %v3730_v44 = vmul.f32 %v3726_v38, %v3726_v38 }
 0x880   :  { %v3734_v55 = vsel %vm163_vm0, %v3730_v44, 0.0 }
 0x881   :  { %3735 = vadd.xlane.f32.xlu0 %v3734_v55 }
 0x908   :  { %v3739_v22 = vpop.xlane.xlu1 %3738 }
 0x909   :  { %v3747_v32 = vmul.f32 0.03125, %v3739_v22 }
 0x90b   :  { %v3751_v28 = vadd.f32 1e-05, %v3747_v32 }
 0x90d   :  { %10122 = vrsqrt.f32 %v3751_v28 }
 0x90e   :  { %v3736_v62 = vpop.xlane.xlu0 %3735 }
 0x90f   :  { %v3746_v31 = vmul.f32 0.03125, %v3736_v62 }
 0x910   :  { %v8910_v36 = vpop.f32.mrb[40].mxu0 }
 0x911   :  { %v3750_v51 = vadd.f32 1e-05, %v3746_v31  ;;  %v3702_v53 = vadd.f32 %v8910_v36, %v11335_v42  ;;  %v3696_v63 = vpop.f32.mrb[41].mxu0 }
 0x912   :  { %v3697_v47 = vadd.f32 %v3696_v63, %v11335_v42 }
 0x913   :  { %10124 = vrsqrt.f32 %v3750_v51  ;;  %v3708_v17 = vadd.f32 %v3702_v53, %v10611_v45  ;;  %v139_v45 = vld [vmem:[%s12458_s9 + $0x3] ss:$0 sm:$0xff] }
 0x914   :  { %v3707_v27 = vadd.f32 %v3697_v47, %v10599_v41 }
 0x915   :  { %v3718_v1 = vsel %vm163_vm0, %v3708_v17, 0.0 }
 0x916   :  { %3719 = vadd.xlane.f32.xlu1 %v3718_v1  ;;  %v3715_v10 = vsel %vm163_vm0, %v3707_v27, 0.0  ;;  %v141_v1 = vld [vmem:[%s12458_s9 + $0x5] ss:$0 sm:$0xff] }
 0x917   :  { %3716 = vadd.xlane.f32.xlu0 %v3715_v10  ;;  %v10123_v13 = vpop.eup %10122 }
 0x918   :  { %v3759_v9 = vmul.f32 %v10123_v13, %v3727_v26  ;;  %v9447_v26 = vpack.c.bf16 %v3882_v56, %v3881_v33  ;;  %v4058_v33 = vld [vmem:[%s12459_s10 + $0x30] sm:$0xff] }
 0x91a   :  { %v3763_v42 = vmul.f32 %v3759_v9, %v138_v23 }
 0x91c   :  { %v11388_v5 = vadd.f32 %v3763_v42, %v139_v45 }
 0x91d   :  { %v10125_v30 = vpop.eup %10124 }
 0x91e   :  { %v3758_v12 = vmul.f32 %v10125_v30, %v3726_v38 }
 0x920   :  { %v3762_v41 = vmul.f32 %v3758_v12, %v138_v23 }
 0x922   :  { %v11386_v14 = vadd.f32 %v3762_v41, %v139_v45 }
 0x924   :  { %8919 = vmatprep.mubr.msk.f32.mxu1 %vm163_vm0, %v11386_v14 }
 0x925   :  { %8920 = vmatmul.mubr.msk.f32.vlgmr.msra.gmra.mrb[34].mxu1 %vm163_vm0, %v11388_v5 }
 0x926   :  { %9438 = vmatpush3.bf16.msra.mxu1 %v9435_v6  ;;  %v4054_v6 = vld [vmem:[%s12459_s10 + $0x10] sm:$0xff] }
 0x927   :  { %9440 = vmatprep.subr.bf16.mxu1 %v9439_v2  ;;  %v9453_v29 = vpack.c.bf16 %v4054_v6, %v4052_v15 }
 0x92a   :  { %9442 = vmatpush3.bf16.msra.mxu1 %v9439_v2  ;;  %v4057_v2 = vld [vmem:[%s12459_s10 + $0x28] sm:$0xff] }
 0x92b   :  { %9444 = vmatprep.subr.bf16.mxu1 %v9443_v54  ;;  %v9455_v7 = vpack.c.bf16 %v4059_v24, %v4057_v2 }
 0x92e   :  { %9446 = vmatpush3.bf16.msra.mxu1 %v9443_v54  ;;  %v4056_v54 = vld [vmem:[%s12459_s10 + $0x20] sm:$0xff] }
 0x92f   :  { %9448 = vmatprep.subr.bf16.mxu1 %v9447_v26  ;;  %v9457_v56 = vpack.c.bf16 %v4058_v33, %v4056_v54 }
 0x932   :  { %9450 = vmatpush3.bf16.msra.mxu1 %v9447_v26 }
 0x9a3   :  { %v3720_v37 = vpop.xlane.xlu1 %3719 }
 0x9a4   :  { %v3725_v52 = vmul.f32 0.03125, %v3720_v37  ;;  %v3717_v11 = vpop.xlane.xlu0 %3716 }
 0x9a5   :  { %v3724_v59 = vmul.f32 0.03125, %v3717_v11 }
 0x9a6   :  { %v3729_v35 = vsub.f32 %v3708_v17, %v3725_v52 }
 0x9a7   :  { %v3728_v21 = vsub.f32 %v3707_v27, %v3724_v59 }
 0x9a8   :  { %v3733_v58 = vmul.f32 %v3729_v35, %v3729_v35 }
 0x9a9   :  { %v3732_v61 = vmul.f32 %v3728_v21, %v3728_v21 }
 0x9aa   :  { %v3743_v8 = vsel %vm163_vm0, %v3733_v58, 0.0 }
 0x9ab   :  { %3744 = vadd.xlane.f32.xlu1 %v3743_v8  ;;  %v3740_v18 = vsel %vm163_vm0, %v3732_v61, 0.0 }
 0x9ac   :  { %3741 = vadd.xlane.f32.xlu0 %v3740_v18 }
 0x9f8   :  { %v8921_v34 = vpop.f32.mrb[34].mxu1 }
 0x9f9   :  { %v3852_v57 = vpop.f32.mrb[35].mxu1  ;;  %v3858_v31 = vadd.f32 %v8921_v34, %v140_v48 }
 0x9fa   :  { %v3853_v32 = vadd.f32 %v3852_v57, %v140_v48 }
 0x9fb   :  { %v3872_v53 = vmax.f32 %v3858_v31, 0.0 }
 0x9fc   :  { %v3871_v51 = vmax.f32 %v3853_v32, 0.0 }
 0xa38   :  { %v3745_v60 = vpop.xlane.xlu1 %3744 }
 0xa39   :  { %v3749_v4 = vmul.f32 0.03125, %v3745_v60  ;;  %v3742_v38 = vpop.xlane.xlu0 %3741 }
 0xa3a   :  { %v3748_v44 = vmul.f32 0.03125, %v3742_v38 }
 0xa3b   :  { %v3753_v55 = vadd.f32 1e-05, %v3749_v4 }
 0xa3c   :  { %v3752_v20 = vadd.f32 1e-05, %v3748_v44 }
 0xa3d   :  { %10126 = vrsqrt.f32 %v3753_v55 }
 0xa3e   :  { %10128 = vrsqrt.f32 %v3752_v20 }
 0xa47   :  { %v10127_v0 = vpop.eup %10126 }
 0xa48   :  { %v10129_v46 = vpop.eup %10128  ;;  %v3761_v3 = vmul.f32 %v10127_v0, %v3729_v35 }
 0xa49   :  { %v3760_v50 = vmul.f32 %v10129_v46, %v3728_v21 }
 0xa4a   :  { %v3765_v22 = vmul.f32 %v3761_v3, %v138_v23 }
 0xa4b   :  { %v3764_v28 = vmul.f32 %v3760_v50, %v138_v23 }
 0xa4c   :  { %v3769_v36 = vadd.f32 %v3765_v22, %v139_v45 }
 0xa4d   :  { %v3768_v62 = vadd.f32 %v3764_v28, %v139_v45  ;;  %v11467_v28 = vld [vmem:[%s12458_s9 + $0x6] ss:$0 sm:$0xff] }
 0xa4f   :  { %8922 = vmatprep.mubr.msk.f32.mxu1 %vm163_vm0, %v3768_v62 }
 0xa50   :  { %8923 = vmatmul.mubr.msk.f32.gmra.mrb[36].mxu1 %vm163_vm0, %v3769_v36 }
 0xa51   :  { %8941 = vmatprep.mubr.msk.f32.mxu1 %vm3607_vm8, %v3871_v51 }
 0xa54   :  { %8942 = vmatmul.mubr.msk.f32.vlgmr.msra.gmra.mrb[38].mxu1 %vm3607_vm8, %v3872_v53 }
 0xb23   :  { %v8924_v63 = vpop.f32.mrb[36].mxu1 }
 0xb24   :  { %v3868_v47 = vadd.f32 %v8924_v63, %v140_v48  ;;  %v3862_v17 = vpop.f32.mrb[37].mxu1 }
 0xb25   :  { %v3863_v27 = vadd.f32 %v3862_v17, %v140_v48  ;;  %v4044_v17 = vld [vmem:[%s12463_s14] ss:$8 sm:$0x3] }
 0xb26   :  { %v3874_v9 = vmax.f32 %v3868_v47, 0.0 }
 0xb27   :  { %v3873_v10 = vmax.f32 %v3863_v27, 0.0  ;;  %v8943_v13 = vpop.f32.mrb[38].mxu1  ;;  %v11493_v27 = vrot.slane %v4044_v17, %v155_v40 }
 0xb28   :  { %v3967_v23 = vadd.f32 %v8943_v13, %v141_v1  ;;  %v3961_v30 = vpop.f32.mrb[39].mxu1 }
 0xb29   :  { %v3962_v12 = vadd.f32 %v3961_v30, %v141_v1  ;;  %8944 = vmatprep.mubr.msk.f32.mxu1 %vm3607_vm8, %v3873_v10 }
 0xb2a   :  { %v3981_v42 = vadd.f32 %v3967_v23, %v11388_v5  ;;  %8945 = vmatmul.mubr.msk.f32.gmra.mrb[40].mxu1 %vm3607_vm8, %v3874_v9  ;;  %v11498_v9 = vrot.slane %v4044_v17, %v159_v43 }
 0xb2b   :  { %v3980_v45 = vadd.f32 %v3962_v12, %v11386_v14  ;;  %v4053_v14 = vld [vmem:[%s12459_s10 + $0x8] sm:$0xff] }
 0xb2c   :  { %v3987_v41 = vsel %vm163_vm0, %v3981_v42, 0.0  ;;  %v9451_v49 = vpack.c.bf16 %v4055_v19, %v4053_v14 }
 0xb2d   :  { %3988 = vadd.xlane.f32.xlu1 %v3987_v41  ;;  %v3984_v37 = vsel %vm163_vm0, %v3980_v45, 0.0 }
 0xb2e   :  { %3985 = vadd.xlane.f32.xlu0 %v3984_v37  ;;  %9452 = vmatprep.subr.bf16.mxu0 %v9451_v49 }
 0xb2f   :  { %9454 = vmatpush1.bf16.msra.mxu0 %v9453_v29 }
 0xb30   :  { %9456 = vmatprep.subr.bf16.mxu0 %v9455_v7 }
 0xb33   :  { %9458 = vmatpush1.bf16.msra.mxu0 %v9457_v56 }
 0xbba   :  { %v3989_v52 = vpop.xlane.xlu1 %3988 }
 0xbbb   :  { %v3997_v11 = vmul.f32 0.03125, %v3989_v52  ;;  %v3986_v59 = vpop.xlane.xlu0 %3985 }
 0xbbc   :  { %v3996_v35 = vmul.f32 0.03125, %v3986_v59 }
 0xbbd   :  { %v4001_v21 = vsub.f32 %v3981_v42, %v3997_v11 }
 0xbbe   :  { %v4000_v58 = vsub.f32 %v3980_v45, %v3996_v35 }
 0xbbf   :  { %v4005_v61 = vmul.f32 %v4001_v21, %v4001_v21 }
 0xbc0   :  { %v4004_v8 = vmul.f32 %v4000_v58, %v4000_v58 }
 0xbc1   :  { %v4011_v5 = vsel %vm163_vm0, %v4005_v61, 0.0 }
 0xbc2   :  { %4012 = vadd.xlane.f32.xlu1 %v4011_v5  ;;  %v4008_v18 = vsel %vm163_vm0, %v4004_v8, 0.0 }
 0xbc3   :  { %4009 = vadd.xlane.f32.xlu0 %v4008_v18 }
 0xbfd   :  { %v8946_v26 = vpop.f32.mrb[40].mxu1 }
 0xbfe   :  { %v3977_v34 = vadd.f32 %v8946_v26, %v141_v1  ;;  %v3971_v57 = vpop.f32.mrb[41].mxu1 }
 0xbff   :  { %v3972_v60 = vadd.f32 %v3971_v57, %v141_v1 }
 0xc00   :  { %v3983_v4 = vadd.f32 %v3977_v34, %v3769_v36  ;;  %v11472_v36 = vld [vmem:[%s12458_s9 + $0x7] ss:$0 sm:$0xff] }
 0xc01   :  { %v3982_v38 = vadd.f32 %v3972_v60, %v3768_v62 }
 0xc02   :  { %v3993_v44 = vsel %vm163_vm0, %v3983_v4, 0.0 }
 0xc03   :  { %3994 = vadd.xlane.f32.xlu1 %v3993_v44  ;;  %v3990_v55 = vsel %vm163_vm0, %v3982_v38, 0.0 }
 0xc04   :  { %3991 = vadd.xlane.f32.xlu0 %v3990_v55 }
 0xc4f   :  { %v4013_v20 = vpop.xlane.xlu1 %4012 }
 0xc50   :  { %v4021_v0 = vmul.f32 0.03125, %v4013_v20  ;;  %v4010_v46 = vpop.xlane.xlu0 %4009 }
 0xc51   :  { %v4020_v48 = vmul.f32 0.03125, %v4010_v46 }
 0xc52   :  { %v4025_v3 = vadd.f32 1e-05, %v4021_v0 }
 0xc53   :  { %v4024_v50 = vadd.f32 1e-05, %v4020_v48 }
 0xc54   :  { %10130 = vrsqrt.f32 %v4025_v3 }
 0xc55   :  { %10132 = vrsqrt.f32 %v4024_v50 }
 0xc5e   :  { %v10131_v22 = vpop.eup %10130 }
 0xc5f   :  { %v10133_v32 = vpop.eup %10132  ;;  %v4033_v31 = vmul.f32 %v10131_v22, %v4001_v21 }
 0xc60   :  { %v4032_v62 = vmul.f32 %v10133_v32, %v4000_v58 }
 0xc61   :  { %v4037_v63 = vmul.f32 %v4033_v31, %v11467_v28 }
 0xc62   :  { %v4036_v51 = vmul.f32 %v4032_v62, %v11467_v28 }
 0xc63   :  { %v11483_v47 = vadd.f32 %v4037_v63, %v11472_v36 }
 0xc64   :  { %v11476_v53 = vadd.f32 %v4036_v51, %v11472_v36 }
 0xc66   :  { %8225 = vmatmul.mubr.msk.f32.vlgmr.msra.gmra.mrb[42].mxu0 %vm163_vm0, %v11476_v53 }
 0xc67   :  { %4153 = vmatprep.mubr.f32.mxu0 %v10308_v16 }
 0xc6a   :  { %8226 = vmatmul.mubr.msk.f32.gmra.mrb[44].mxu0 %vm163_vm0, %v11483_v47 }
 0xc6b   :  { %4159 = vmatprep.mubr.f32.mxu0 %v10308_v16 }
 0xc90   :  { %v3995_v45 = vpop.xlane.xlu1 %3994 }
 0xc91   :  { %v3999_v41 = vmul.f32 0.03125, %v3995_v45  ;;  %v3992_v37 = vpop.xlane.xlu0 %3991 }
 0xc92   :  { %v3998_v11 = vmul.f32 0.03125, %v3992_v37 }
 0xc93   :  { %v4003_v52 = vsub.f32 %v3983_v4, %v3999_v41 }
 0xc94   :  { %v4002_v59 = vsub.f32 %v3982_v38, %v3998_v11 }
 0xc95   :  { %v4007_v35 = vmul.f32 %v4003_v52, %v4003_v52 }
 0xc96   :  { %v4006_v58 = vmul.f32 %v4002_v59, %v4002_v59 }
 0xc97   :  { %v4017_v21 = vsel %vm163_vm0, %v4007_v35, 0.0 }
 0xc98   :  { %v4014_v61 = vsel %vm163_vm0, %v4006_v58, 0.0 }
 0xd39   :  { %v4149_v1 = vpop.f32.mrb[42].mxu0 }
 0xd3a   :  { %v4150_v10 = vadd.f32 %v4149_v1, %v11493_v27  ;;  %v4151_v13 = vpop.f32.mrb[43].mxu0 }
 0xd3b   :  { %v4152_v12 = vadd.f32 %v4151_v13, %v11498_v9 }
 0xd3c   :  { %8951 = vmatprep.mubr.msk.f32.mxu1 %vm343_vm1, %v4150_v10  ;;  %4178 = vrot.lane.b32.xlu1 %v4150_v10, %s10310_s18 }
 0xd3d   :  { %4174 = vrot.lane.b32.xlu0 %v4150_v10, %s10309_s17  ;;  %v4155_v23 = vpop.f32.mrb[44].mxu0 }
 0xd3e   :  { %v11504_v30 = vadd.f32 %v4155_v23, %v11493_v27  ;;  %v4157_v40 = vpop.f32.mrb[45].mxu0 }
 0xd3f   :  { %v4158_v42 = vadd.f32 %v4157_v40, %v11498_v9 }
 0xd40   :  { %4182 = vrot.lane.b32.xlu1 %v4150_v10, %s10311_s19  ;;  %v9844_v8 = vpack.i.bf16 %v11504_v30, %v4150_v10 }
 0xd41   :  { %4180 = vrot.lane.b32.xlu0 %v11504_v30, %s10310_s18  ;;  %v11511_v39 = vpack.c.bf16 %v4158_v42, %v4152_v12  ;;  %v11513_v43 = vpack.i.bf16 %v4158_v42, %v4152_v12 }
 0xd44   :  { %4186 = vrot.lane.b32.xlu1 %v4150_v10, %s10312_s20 }
 0xd45   :  { %4184 = vrot.lane.b32.xlu0 %v11504_v30, %s10311_s19 }
 0xd48   :  { %4190 = vrot.lane.b32.xlu1 %v4150_v10, %s10313_s21 }
 0xd49   :  { %4188 = vrot.lane.b32.xlu0 %v11504_v30, %s10312_s20 }
 0xd4c   :  { %4176 = vrot.lane.b32.xlu1 %v11504_v30, %s10309_s17 }
 0xd4d   :  { %4192 = vrot.lane.b32.xlu0 %v11504_v30, %s10313_s21 }
 0xd50   :  { %4194 = vrot.lane.b32.xlu1 %v4150_v10, %s10314_s22 }
 0xd51   :  { %4196 = vrot.lane.b32.xlu0 %v11504_v30, %s10314_s22 }
 0xd54   :  { %4198 = vrot.lane.b32.xlu1 %v4150_v10, %s10315_s23 }
 0xd55   :  { %4200 = vrot.lane.b32.xlu0 %v11504_v30, %s10315_s23 }
 0xd74   :  { %4018 = vadd.xlane.f32.xlu0 %v4017_v21 }
 0xd78   :  { %4015 = vadd.xlane.f32.xlu1 %v4014_v61 }
 0xd8a   :  { %9845 = vrot.lane.b32.xlu0 %v9844_v8, %s10316_s26 }
 0xdae   :  { %v4179_v5 = vpop.permute.xlu1 %4178 }
 0xdaf   :  { %v4175_v18 = vpop.permute.xlu0 %4174 }
 0xdb2   :  { %v11535_v14 = vpop.permute.xlu1 %4182 }
 0xdb3   :  { %v11537_v19 = vpop.permute.xlu0 %4180 }
 0xdb4   :  { %v9854_v26 = vpack.i.bf16 %v11537_v19, %v4179_v5 }
 0xdb6   :  { %v11539_v49 = vpop.permute.xlu1 %4186 }
 0xdb7   :  { %v11541_v15 = vpop.permute.xlu0 %4184 }
 0xdb8   :  { %v9859_v6 = vpack.i.bf16 %v11541_v15, %v11535_v14 }
 0xdba   :  { %9860 = vrot.lane.b32.xlu0 %v9859_v6, %s10316_s26  ;;  %v11546_v29 = vpop.permute.xlu1 %4190 }
 0xdbb   :  { %v11548_v2 = vpop.permute.xlu0 %4188 }
 0xdbc   :  { %v9864_v60 = vpack.i.bf16 %v11548_v2, %v11539_v49 }
 0xdbe   :  { %v11550_v24 = vpop.permute.xlu1 %4176 }
 0xdbf   :  { %v9849_v7 = vpack.i.bf16 %v11550_v24, %v4175_v18  ;;  %v11553_v54 = vpop.permute.xlu0 %4192 }
 0xdc0   :  { %v9869_v33 = vpack.i.bf16 %v11553_v54, %v11546_v29 }
 0xdc1   :  { %9850 = vrot.lane.b32.xlu1 %v9849_v7, %s10316_s26 }
 0xdc2   :  { %9870 = vrot.lane.b32.xlu0 %v9869_v33, %s10316_s26  ;;  %v11559_v56 = vpop.permute.xlu1 %4194 }
 0xdc3   :  { %v11562_v34 = vpop.permute.xlu0 %4196 }
 0xdc4   :  { %v9874_v44 = vpack.i.bf16 %v11562_v34, %v11559_v56 }
 0xdc5   :  { %9855 = vrot.lane.b32.xlu1 %v9854_v26, %s10316_s26 }
 0xdc6   :  { %v11565_v57 = vpop.permute.xlu1 %4198 }
 0xdc7   :  { %v11569_v4 = vpop.permute.xlu0 %4200 }
 0xdc8   :  { %v9879_v38 = vpack.i.bf16 %v11569_v4, %v11565_v57 }
 0xdc9   :  { %9865 = vrot.lane.b32.xlu1 %v9864_v60, %s10316_s26 }
 0xdca   :  { %9880 = vrot.lane.b32.xlu0 %v9879_v38, %s10316_s26 }
 0xdcd   :  { %9875 = vrot.lane.b32.xlu1 %v9874_v44, %s10316_s26 }
 0xe01   :  { %v4019_v55 = vpop.xlane.xlu0 %4018 }
 0xe02   :  { %v4023_v20 = vmul.f32 0.03125, %v4019_v55 }
 0xe04   :  { %v4027_v0 = vadd.f32 1e-05, %v4023_v20 }
 0xe05   :  { %v9846_v46 = vpop.permute.xlu0 %9845  ;;  %v4016_v48 = vpop.xlane.xlu1 %4015 }
 0xe06   :  { %v9848_v3 = vunpack.i.h.bf16 %v9846_v46  ;;  %v9847_v50 = vunpack.i.l.bf16 %v9846_v46  ;;  %v4022_v22 = vmul.f32 0.03125, %v4016_v48  ;;  %10134 = vrsqrt.f32 %v4027_v0 }
 0xe08   :  { %v9459_v32 = vpack.c.bf16 %v9848_v3, %v9847_v50  ;;  %v4026_v62 = vadd.f32 1e-05, %v4022_v22 }
 0xe0a   :  { %10136 = vrsqrt.f32 %v4026_v62  ;;  %9461 = vmatprep.subr.msk.bf16.mxu1 %vm10585_vm2, %v9459_v32 }
 0xe0b   :  { %9464 = vmatpush3.bf16.xpose.msk.msra.mxu1 %vm10585_vm2, %v9459_v32 }
 0xe10   :  { %v10135_v31 = vpop.eup %10134 }
 0xe11   :  { %v4035_v17 = vmul.f32 %v10135_v31, %v4003_v52 }
 0xe12   :  { %8952 = vmatmul.mubr.msk.f32.vlgmr.msra.gmra.mrb[42].mxu1 %vm343_vm1, %v11504_v30 }
 0xe13   :  { %8965 = vmatprep.mubr.msk.f32.mxu1 %vm343_vm1, %v4179_v5  ;;  %v4039_v13 = vmul.f32 %v4035_v17, %v11467_v28 }
 0xe14   :  { %v10137_v51 = vpop.eup %10136 }
 0xe15   :  { %v4034_v63 = vmul.f32 %v10137_v51, %v4002_v59  ;;  %v11594_v23 = vadd.f32 %v4039_v13, %v11472_v36 }
 0xe17   :  { %v4038_v1 = vmul.f32 %v4034_v63, %v11467_v28 }
 0xe19   :  { %v11587_v10 = vadd.f32 %v4038_v1, %v11472_v36 }
 0xe1b   :  { %8227 = vmatmul.mubr.msk.f32.gmra.mrb[46].mxu0 %vm163_vm0, %v11587_v10 }
 0xe1c   :  { %4165 = vmatprep.mubr.f32.mxu0 %v10308_v16 }
 0xe1f   :  { %8228 = vmatmul.mubr.msk.f32.gmra.mrb[48].mxu0 %vm163_vm0, %v11594_v23 }
 0xe20   :  { %8958 = vmatprep.mubr.msk.f32.mxu0 %vm343_vm1, %v4175_v18 }
 0xe2c   :  { %v9861_v30 = vpop.permute.xlu0 %9860 }
 0xe2d   :  { %v9863_v12 = vunpack.i.h.bf16 %v9861_v30  ;;  %v9862_v42 = vunpack.i.l.bf16 %v9861_v30 }
 0xe2f   :  { %v9477_v52 = vpack.c.bf16 %v9863_v12, %v9862_v42 }
 0xe33   :  { %v9851_v40 = vpop.permute.xlu1 %9850 }
 0xe34   :  { %v9853_v45 = vunpack.i.h.bf16 %v9851_v40  ;;  %v9852_v41 = vunpack.i.l.bf16 %v9851_v40  ;;  %v9871_v36 = vpop.permute.xlu0 %9870 }
 0xe35   :  { %v9873_v58 = vunpack.i.h.bf16 %v9871_v36  ;;  %v9872_v61 = vunpack.i.l.bf16 %v9871_v36 }
 0xe36   :  { %v9465_v28 = vpack.c.bf16 %v9853_v45, %v9852_v41 }
 0xe37   :  { %v9856_v37 = vpop.permute.xlu1 %9855  ;;  %v9489_v7 = vpack.c.bf16 %v9873_v58, %v9872_v61 }
 0xe38   :  { %v9858_v11 = vunpack.i.h.bf16 %v9856_v37  ;;  %v9857_v59 = vunpack.i.l.bf16 %v9856_v37  ;;  %9467 = vmatprep.subr.msk.bf16.mxu0 %vm10585_vm2, %v9465_v28 }
 0xe39   :  { %9470 = vmatpush3.bf16.xpose.msk.msra.mxu0 %vm10585_vm2, %v9465_v28 }
 0xe3a   :  { %v9471_v35 = vpack.c.bf16 %v9858_v11, %v9857_v59  ;;  %9479 = vmatprep.subr.msk.bf16.mxu0 %vm10585_vm2, %v9477_v52 }
 0xe3b   :  { %v9866_v21 = vpop.permute.xlu1 %9865 }
 0xe3c   :  { %v9868_v8 = vunpack.i.h.bf16 %v9866_v21  ;;  %v9867_v5 = vunpack.i.l.bf16 %v9866_v21  ;;  %9473 = vmatprep.subr.msk.bf16.mxu1 %vm10585_vm2, %v9471_v35  ;;  %v9881_v60 = vpop.permute.xlu0 %9880 }
 0xe3d   :  { %9476 = vmatpush3.bf16.xpose.msk.msra.mxu1 %vm10585_vm2, %v9471_v35  ;;  %v9883_v38 = vunpack.i.h.bf16 %v9881_v60  ;;  %v9882_v44 = vunpack.i.l.bf16 %v9881_v60 }
 0xe3e   :  { %v9483_v18 = vpack.c.bf16 %v9868_v8, %v9867_v5 }
 0xe3f   :  { %v9876_v6 = vpop.permute.xlu1 %9875 }
 0xe40   :  { %v9878_v33 = vunpack.i.h.bf16 %v9876_v6  ;;  %v9877_v26 = vunpack.i.l.bf16 %v9876_v6  ;;  %8959 = vmatmul.mubr.msk.f32.vlgmr.msra.gmra.mrb[50].mxu0 %vm343_vm1, %v11550_v24  ;;  %9485 = vmatprep.subr.msk.bf16.mxu1 %vm10585_vm2, %v9483_v18  ;;  %v9501_v24 = vpack.c.bf16 %v9883_v38, %v9882_v44 }
 0xe41   :  { %9482 = vmatpush3.bf16.xpose.msk.msra.mxu0 %vm10585_vm2, %v9477_v52  ;;  %8972 = vmatprep.mubr.msk.f32.mxu0 %vm343_vm1, %v11535_v14 }
 0xe42   :  { %9491 = vmatprep.subr.msk.bf16.mxu0 %vm10585_vm2, %v9489_v7  ;;  %v9495_v55 = vpack.c.bf16 %v9878_v33, %v9877_v26 }
 0xe44   :  { %8966 = vmatmul.mubr.msk.f32.vlgmr.msra.gmra.mrb[44].mxu1 %vm343_vm1, %v11537_v19 }
 0xe45   :  { %9488 = vmatpush3.bf16.xpose.msk.msra.mxu1 %vm10585_vm2, %v9483_v18  ;;  %8979 = vmatprep.mubr.msk.f32.mxu1 %vm343_vm1, %v11539_v49 }
 0xe46   :  { %9497 = vmatprep.subr.msk.bf16.mxu1 %vm10585_vm2, %v9495_v55 }
 0xe48   :  { %8973 = vmatmul.mubr.msk.f32.vlgmr.msra.gmra.mrb[52].mxu0 %vm343_vm1, %v11541_v15 }
 0xe49   :  { %9494 = vmatpush3.bf16.xpose.msk.msra.mxu0 %vm10585_vm2, %v9489_v7  ;;  %8986 = vmatprep.mubr.msk.f32.mxu0 %vm343_vm1, %v11546_v29 }
 0xe4a   :  { %9503 = vmatprep.subr.msk.bf16.mxu0 %vm10585_vm2, %v9501_v24 }
 0xe4c   :  { %8980 = vmatmul.mubr.msk.f32.vlgmr.msra.gmra.mrb[46].mxu1 %vm343_vm1, %v11548_v2 }
 0xe4d   :  { %9500 = vmatpush3.bf16.xpose.msk.msra.mxu1 %vm10585_vm2, %v9495_v55  ;;  %8993 = vmatprep.mubr.msk.f32.mxu1 %vm343_vm1, %v11559_v56 }
 0xe4e   :  { %9508 = vmatprep.subr.bf16.mxu1 %v11511_v39 }
 0xe50   :  { %8987 = vmatmul.mubr.msk.f32.vlgmr.msra.gmra.mrb[54].mxu0 %vm343_vm1, %v11553_v54 }
 0xe51   :  { %9506 = vmatpush3.bf16.xpose.msk.msra.mxu0 %vm10585_vm2, %v9501_v24  ;;  %9000 = vmatprep.mubr.msk.f32.mxu0 %vm343_vm1, %v11565_v57 }
 0xe54   :  { %8994 = vmatmul.mubr.msk.f32.vlgmr.msra.gmra.mrb[48].mxu1 %vm343_vm1, %v11562_v34 }
 0xe55   :  { %9510 = vmatpush3.bf16.msra.mxu1 %v11511_v39 }
 0xe58   :  { %9001 = vmatmul.mubr.msk.f32.vlgmr.msra.gmra.mrb[56].mxu0 %vm343_vm1, %v11569_v4 }
 0xee5   :  { %v11653_v14 = vpop.f32.mrb[42].mxu1 }
 0xee6   :  { %v11655_v19 = vpop.f32.mrb[43].mxu1  ;;  %v4945_v17 = vsel %vm1036_vm3, %v11653_v14, -inf }
 0xee7   :  { %v4942_v51 = vsel %vm1036_vm3, %v11655_v19, -inf }
 0xeee   :  { %v4161_v49 = vpop.f32.mrb[46].mxu0 }
 0xeef   :  { %v11658_v15 = vadd.f32 %v4161_v49, %v11493_v27  ;;  %v4163_v29 = vpop.f32.mrb[47].mxu0 }
 0xef0   :  { %v4164_v54 = vadd.f32 %v4163_v29, %v11498_v9 }
 0xef1   :  { %5842 = vrot.lane.b32.xlu1 %v11658_v15, %s10310_s18  ;;  %5838 = vrot.lane.b32.xlu0 %v11658_v15, %s10309_s17 }
 0xef2   :  { %v4167_v2 = vpop.f32.mrb[48].mxu0 }
 0xef3   :  { %v4169_v39 = vpop.f32.mrb[49].mxu0  ;;  %v11679_v4 = vadd.f32 %v4167_v2, %v11493_v27 }
 0xef4   :  { %v4170_v56 = vadd.f32 %v4169_v39, %v11498_v9 }
 0xef5   :  { %5846 = vrot.lane.b32.xlu1 %v11658_v15, %s10311_s19  ;;  %5850 = vrot.lane.b32.xlu0 %v11658_v15, %s10312_s20 }
 0xef6   :  { %v11670_v34 = vpack.i.bf16 %v4170_v56, %v4164_v54  ;;  %v11672_v57 = vpack.c.bf16 %v4170_v56, %v4164_v54 }
 0xef9   :  { %5858 = vrot.lane.b32.xlu1 %v11658_v15, %s10314_s22  ;;  %5854 = vrot.lane.b32.xlu0 %v11658_v15, %s10313_s21 }
 0xefd   :  { %5862 = vrot.lane.b32.xlu1 %v11658_v15, %s10315_s23  ;;  %5844 = vrot.lane.b32.xlu0 %v11679_v4, %s10310_s18 }
 0xf01   :  { %5848 = vrot.lane.b32.xlu0 %v11679_v4, %s10311_s19  ;;  %5840 = vrot.lane.b32.xlu1 %v11679_v4, %s10309_s17 }
 0xf05   :  { %5856 = vrot.lane.b32.xlu0 %v11679_v4, %s10313_s21  ;;  %5852 = vrot.lane.b32.xlu1 %v11679_v4, %s10312_s20 }
 0xf09   :  { %5860 = vrot.lane.b32.xlu0 %v11679_v4, %s10314_s22 }
 0xf0d   :  { %5864 = vrot.lane.b32.xlu0 %v11679_v4, %s10315_s23 }
 0xf13   :  { %v11697_v27 = vpop.f32.mrb[50].mxu0 }
 0xf14   :  { %v11699_v9 = vpop.f32.mrb[51].mxu0  ;;  %v4951_v13 = vsel %vm1036_vm3, %v11697_v27, -inf }
 0xf15   :  { %v4948_v30 = vsel %vm1036_vm3, %v11699_v9, -inf }
 0xf17   :  { %v11701_v20 = vpop.f32.mrb[44].mxu1 }
 0xf18   :  { %v11703_v0 = vpop.f32.mrb[45].mxu1  ;;  %v4957_v40 = vsel %vm1036_vm3, %v11701_v20, -inf }
 0xf19   :  { %v4954_v12 = vsel %vm1036_vm3, %v11703_v0, -inf }
 0xf1b   :  { %v11705_v46 = vpop.f32.mrb[52].mxu0 }
 0xf1c   :  { %v11707_v48 = vpop.f32.mrb[53].mxu0  ;;  %v4963_v42 = vsel %vm1036_vm3, %v11705_v46, -inf }
 0xf1d   :  { %v4960_v45 = vsel %vm1036_vm3, %v11707_v48, -inf }
 0xf1f   :  { %v11709_v3 = vpop.f32.mrb[46].mxu1 }
 0xf20   :  { %v11711_v50 = vpop.f32.mrb[47].mxu1  ;;  %v4969_v41 = vsel %vm1036_vm3, %v11709_v3, -inf }
 0xf21   :  { %v4966_v28 = vsel %vm1036_vm3, %v11711_v50, -inf }
 0xf23   :  { %v11713_v22 = vpop.f32.mrb[54].mxu0 }
 0xf24   :  { %v11715_v32 = vpop.f32.mrb[55].mxu0  ;;  %v4975_v37 = vsel %vm1036_vm3, %v11713_v22, -inf }
 0xf25   :  { %v4972_v52 = vsel %vm1036_vm3, %v11715_v32, -inf }
 0xf27   :  { %v11717_v62 = vpop.f32.mrb[48].mxu1 }
 0xf28   :  { %v11719_v31 = vpop.f32.mrb[49].mxu1  ;;  %v4981_v11 = vsel %vm1036_vm3, %v11717_v62, -inf }
 0xf29   :  { %4943 = vmax.xlane.f32.xlu1 %v4942_v51  ;;  %v4978_v59 = vsel %vm1036_vm3, %v11719_v31, -inf }
 0xf2b   :  { %v11723_v63 = vpop.f32.mrb[56].mxu0 }
 0xf2c   :  { %v11727_v1 = vpop.f32.mrb[57].mxu0  ;;  %4946 = vmax.xlane.f32.xlu0 %v4945_v17  ;;  %v4987_v35 = vsel %vm1036_vm3, %v11723_v63, -inf }
 0xf2d   :  { %4952 = vmax.xlane.f32.xlu1 %v4951_v13  ;;  %v4984_v36 = vsel %vm1036_vm3, %v11727_v1, -inf }
 0xf30   :  { %4949 = vmax.xlane.f32.xlu0 %v4948_v30 }
 0xf31   :  { %4958 = vmax.xlane.f32.xlu1 %v4957_v40 }
 0xf34   :  { %4955 = vmax.xlane.f32.xlu0 %v4954_v12 }
 0xf35   :  { %4964 = vmax.xlane.f32.xlu1 %v4963_v42 }
 0xf38   :  { %4961 = vmax.xlane.f32.xlu0 %v4960_v45 }
 0xf39   :  { %4970 = vmax.xlane.f32.xlu1 %v4969_v41 }
 0xf3c   :  { %4967 = vmax.xlane.f32.xlu0 %v4966_v28 }
 0xf3d   :  { %4976 = vmax.xlane.f32.xlu1 %v4975_v37 }
 0xf40   :  { %4973 = vmax.xlane.f32.xlu0 %v4972_v52 }
 0xf41   :  { %4982 = vmax.xlane.f32.xlu1 %v4981_v11 }
 0xf52   :  { %9890 = vrot.lane.b32.xlu1 %v11513_v43, %s10310_s18 }
 0xf56   :  { %9885 = vrot.lane.b32.xlu0 %v11513_v43, %s10309_s17  ;;  %9895 = vrot.lane.b32.xlu1 %v11513_v43, %s10311_s19 }
 0xf63   :  { %v11763_v21 = vpop.permute.xlu0 %5838  ;;  %v11775_v61 = vpop.permute.xlu1 %5842 }
 0xf67   :  { %v11771_v58 = vpop.permute.xlu0 %5850  ;;  %v11779_v5 = vpop.permute.xlu1 %5846 }
 0xf6b   :  { %v11777_v8 = vpop.permute.xlu0 %5854  ;;  %v11783_v6 = vpop.permute.xlu1 %5858 }
 0xf6f   :  { %v11781_v18 = vpop.permute.xlu0 %5844  ;;  %v11787_v33 = vpop.permute.xlu1 %5862 }
 0xf73   :  { %v11785_v7 = vpop.permute.xlu0 %5848  ;;  %v11791_v60 = vpop.permute.xlu1 %5840 }
 0xf75   :  { %4979 = vmax.xlane.f32.xlu0 %v4978_v59 }
 0xf77   :  { %v11789_v26 = vpop.permute.xlu0 %5856 }
 0xf79   :  { %4985 = vmax.xlane.f32.xlu0 %v4984_v36 }
 0xf7a   :  { %4988 = vmax.xlane.f32.xlu1 %v4987_v35 }
 0xf7b   :  { %v11793_v38 = vpop.permute.xlu0 %5860 }
 0xf7f   :  { %v11797_v44 = vpop.permute.xlu0 %5864 }
 0xf8b   :  { %9905 = vrot.lane.b32.xlu1 %v11513_v43, %s10313_s21 }
 0xf8f   :  { %9915 = vrot.lane.b32.xlu1 %v11513_v43, %s10315_s23  ;;  %9900 = vrot.lane.b32.xlu0 %v11513_v43, %s10312_s20 }
 0xf93   :  { %9910 = vrot.lane.b32.xlu0 %v11513_v43, %s10314_s22  ;;  %v11795_v43 = vpop.permute.xlu1 %5852 }
 0xfb6   :  { %v4944_v55 = vpop.xlane.xlu1 %4943 }
 0xfb7   :  { %v4990_v24 = vsub.f32 %v11655_v19, %v4944_v55 }
 0xfb9   :  { %v5006_v49 = vmul.f32 1.442695, %v4990_v24  ;;  %v4947_v29 = vpop.xlane.xlu0 %4946 }
 0xfba   :  { %v4991_v2 = vsub.f32 %v11653_v14, %v4947_v29  ;;  %v4953_v39 = vpop.xlane.xlu1 %4952 }
 0xfbb   :  { %10138 = vpow2.f32 %v5006_v49  ;;  %v4993_v54 = vsub.f32 %v11697_v27, %v4953_v39 }
 0xfbc   :  { %v5008_v56 = vmul.f32 1.442695, %v4991_v2 }
 0xfbd   :  { %v5012_v51 = vmul.f32 1.442695, %v4993_v54  ;;  %v4950_v17 = vpop.xlane.xlu0 %4949 }
 0xfbe   :  { %10140 = vpow2.f32 %v5008_v56  ;;  %v4992_v13 = vsub.f32 %v11699_v9, %v4950_v17  ;;  %v4959_v30 = vpop.xlane.xlu1 %4958 }
 0xfbf   :  { %v4995_v40 = vsub.f32 %v11701_v20, %v4959_v30  ;;  %10142 = vpow2.f32 %v5012_v51 }
 0xfc0   :  { %v5010_v12 = vmul.f32 1.442695, %v4992_v13 }
 0xfc1   :  { %v5016_v19 = vmul.f32 1.442695, %v4995_v40  ;;  %v4956_v42 = vpop.xlane.xlu0 %4955 }
 0xfc2   :  { %v4994_v45 = vsub.f32 %v11703_v0, %v4956_v42  ;;  %v4965_v14 = vpop.xlane.xlu1 %4964 }
 0xfc3   :  { %10144 = vpow2.f32 %v5016_v19  ;;  %v4997_v28 = vsub.f32 %v11705_v46, %v4965_v14 }
 0xfc4   :  { %10146 = vpow2.f32 %v5010_v12  ;;  %v5014_v27 = vmul.f32 1.442695, %v4994_v45 }
 0xfc5   :  { %v11805_v41 = vpop.eup %10138  ;;  %v4962_v37 = vpop.xlane.xlu0 %4961  ;;  %v5020_v0 = vmul.f32 1.442695, %v4997_v28 }
 0xfc6   :  { %v4996_v9 = vsub.f32 %v11707_v48, %v4962_v37  ;;  %v4971_v52 = vpop.xlane.xlu1 %4970  ;;  %v5038_v20 = vsel %vm1036_vm3, %v11805_v41, 0.0  ;;  %10148 = vpow2.f32 %v5014_v27 }
 0xfc7   :  { %5039 = vadd.xlane.f32.xlu1 %v5038_v20  ;;  %v4999_v36 = vsub.f32 %v11709_v3, %v4971_v52 }
 0xfc8   :  { %v11811_v11 = vpop.eup %10140  ;;  %v5018_v59 = vmul.f32 1.442695, %v4996_v9 }
 0xfc9   :  { %v4968_v35 = vpop.xlane.xlu0 %4967  ;;  %v5041_v55 = vsel %vm1036_vm3, %v11811_v11, 0.0  ;;  %v11816_v46 = vpop.eup %10142  ;;  %v5024_v2 = vmul.f32 1.442695, %v4999_v36 }
 0xfca   :  { %10150 = vpow2.f32 %v5018_v59  ;;  %v4998_v48 = vsub.f32 %v11711_v50, %v4968_v35  ;;  %v4977_v24 = vpop.xlane.xlu1 %4976  ;;  %5042 = vadd.xlane.f32.xlu0 %v5041_v55  ;;  %v5047_v3 = vsel %vm1036_vm3, %v11816_v46, 0.0 }
 0xfcb   :  { %10152 = vpow2.f32 %v5020_v0  ;;  %v5001_v39 = vsub.f32 %v11713_v22, %v4977_v24 }
 0xfcc   :  { %v5022_v49 = vmul.f32 1.442695, %v4998_v48 }
 0xfcd   :  { %v11819_v29 = vpop.eup %10144  ;;  %v4974_v54 = vpop.xlane.xlu0 %4973  ;;  %v5028_v30 = vmul.f32 1.442695, %v5001_v39 }
 0xfce   :  { %10154 = vpow2.f32 %v5022_v49  ;;  %v5000_v56 = vsub.f32 %v11715_v32, %v4974_v54  ;;  %v4983_v51 = vpop.xlane.xlu1 %4982  ;;  %5048 = vadd.xlane.f32.xlu0 %v5047_v3  ;;  %v5053_v50 = vsel %vm1036_vm3, %v11819_v29, 0.0  ;;  %v11827_v17 = vpop.eup %10146 }
 0xfcf   :  { %5054 = vadd.xlane.f32.xlu1 %v5053_v50  ;;  %10156 = vpow2.f32 %v5024_v2  ;;  %v5003_v22 = vsub.f32 %v11717_v62, %v4983_v51  ;;  %v5044_v32 = vsel %vm1036_vm3, %v11827_v17, 0.0 }
 0xfd0   :  { %v5026_v13 = vmul.f32 1.442695, %v5000_v56  ;;  %v11832_v45 = vpop.eup %10148 }
 0xfd1   :  { %v9886_v40 = vpop.permute.xlu0 %9885  ;;  %v5032_v9 = vmul.f32 1.442695, %v5003_v22  ;;  %v5050_v20 = vsel %vm1036_vm3, %v11832_v45, 0.0 }
 0xfd2   :  { %10158 = vpow2.f32 %v5026_v13  ;;  %v9888_v12 = vunpack.i.h.bf16 %v9886_v40  ;;  %v9887_v19 = vunpack.i.l.bf16 %v9886_v40  ;;  %v9891_v42 = vpop.permute.xlu1 %9890 }
 0xfd3   :  { %v9893_v14 = vunpack.i.h.bf16 %v9891_v42  ;;  %v9892_v27 = vunpack.i.l.bf16 %v9891_v42  ;;  %5045 = vadd.xlane.f32.xlu1 %v5044_v32  ;;  %10160 = vpow2.f32 %v5028_v30 }
 0xfd4   :  { %v11834_v28 = vpop.eup %10150  ;;  %v11836_v37 = vpack.c.bf16 %v9888_v12, %v9887_v19  ;;  %10162 = vpow2.f32 %v5032_v9 }
 0xfd5   :  { %v5056_v62 = vsel %vm1036_vm3, %v11834_v28, 0.0  ;;  %v9515_v52 = vpack.c.bf16 %v9893_v14, %v9892_v27  ;;  %v11843_v59 = vpop.eup %10152 }
 0xfd6   :  { %9512 = vmatprep.subr.bf16.mxu1 %v11836_v37  ;;  %5057 = vadd.xlane.f32.xlu0 %v5056_v62  ;;  %v5059_v35 = vsel %vm1036_vm3, %v11843_v59, 0.0  ;;  %v11867_v51 = vpop.permute.xlu1 %9895 }
 0xfd7   :  { %5051 = vadd.xlane.f32.xlu1 %v5050_v20  ;;  %9516 = vmatprep.subr.bf16.mxu0 %v9515_v52 }
 0xfd8   :  { %v11845_v0 = vpop.eup %10154  ;;  %9518 = vmatpush3.bf16.msra.mxu0 %v9515_v52 }
 0xfd9   :  { %v5062_v36 = vsel %vm1036_vm3, %v11845_v0, 0.0  ;;  %v11851_v55 = vpop.eup %10156 }
 0xfda   :  { %5063 = vadd.xlane.f32.xlu0 %v5062_v36  ;;  %v5065_v49 = vsel %vm1036_vm3, %v11851_v55, 0.0  ;;  %v9924_v36 = vpack.i.bf16 %v11791_v60, %v11763_v21 }
 0xfdb   :  { %5060 = vadd.xlane.f32.xlu1 %v5059_v35  ;;  %v9934_v35 = vpack.i.bf16 %v11785_v7, %v11779_v5 }
 0xfdc   :  { %v11853_v48 = vpop.eup %10158 }
 0xfdd   :  { %v5068_v24 = vsel %vm1036_vm3, %v11853_v48, 0.0  ;;  %v11859_v2 = vpop.eup %10160 }
 0xfde   :  { %5069 = vadd.xlane.f32.xlu0 %v5068_v24  ;;  %v5071_v39 = vsel %vm1036_vm3, %v11859_v2, 0.0  ;;  %v11863_v54 = vpop.eup %10162  ;;  %v9919_v24 = vpack.i.bf16 %v11679_v4, %v11658_v15 }
 0xfdf   :  { %5066 = vadd.xlane.f32.xlu1 %v5065_v49  ;;  %v5077_v3 = vsel %vm1036_vm3, %v11863_v54, 0.0  ;;  %v9929_v49 = vpack.i.bf16 %v11781_v18, %v11775_v61 }
 0xfe3   :  { %5072 = vadd.xlane.f32.xlu1 %v5071_v39  ;;  %v9944_v39 = vpack.i.bf16 %v11789_v26, %v11777_v8 }
 0xfe7   :  { %5078 = vadd.xlane.f32.xlu1 %v5077_v3  ;;  %v9939_v3 = vpack.i.bf16 %v11795_v43, %v11771_v58 }
0x1002   :  { %v4980_v56 = vpop.xlane.xlu0 %4979 }
0x1003   :  { %v5002_v50 = vsub.f32 %v11719_v31, %v4980_v56  ;;  %v9954_v56 = vpack.i.bf16 %v11797_v44, %v11787_v33 }
0x1005   :  { %v5030_v13 = vmul.f32 1.442695, %v5002_v50  ;;  %v9949_v50 = vpack.i.bf16 %v11793_v38, %v11783_v6 }
0x1006   :  { %v4986_v30 = vpop.xlane.xlu0 %4985 }
0x1007   :  { %10164 = vpow2.f32 %v5030_v13  ;;  %v5004_v22 = vsub.f32 %v11727_v1, %v4986_v30  ;;  %v4989_v40 = vpop.xlane.xlu1 %4988 }
0x1008   :  { %v5005_v12 = vsub.f32 %v11723_v63, %v4989_v40 }
0x1009   :  { %v5034_v19 = vmul.f32 1.442695, %v5004_v22 }
0x100a   :  { %v5036_v42 = vmul.f32 1.442695, %v5005_v12  ;;  %v9901_v32 = vpop.permute.xlu0 %9900 }
0x100b   :  { %10166 = vpow2.f32 %v5034_v19  ;;  %v9903_v14 = vunpack.i.h.bf16 %v9901_v32  ;;  %v9902_v27 = vunpack.i.l.bf16 %v9901_v32  ;;  %v9906_v13 = vpop.permute.xlu1 %9905 }
0x100c   :  { %10168 = vpow2.f32 %v5036_v42 }
0x100d   :  { %v11872_v9 = vpack.c.bf16 %v9903_v14, %v9902_v27 }
0x100e   :  { %v11919_v22 = vpop.permute.xlu0 %9910 }
0x100f   :  { %9524 = vmatprep.subr.bf16.mxu0 %v11872_v9  ;;  %v11917_v30 = vpop.permute.xlu1 %9915 }
0x1011   :  { %v11875_v31 = vpop.eup %10164 }
0x1012   :  { %v5074_v62 = vsel %vm1036_vm3, %v11875_v31, 0.0 }
0x1013   :  { %5075 = vadd.xlane.f32.xlu0 %v5074_v62  ;;  %v9898_v62 = vunpack.i.h.bf16 %v11867_v51 }
0x1015   :  { %v11879_v1 = vpop.eup %10166 }
0x1016   :  { %v11881_v63 = vpop.eup %10168  ;;  %v5080_v52 = vsel %vm1036_vm3, %v11879_v1, 0.0 }
0x1017   :  { %5081 = vadd.xlane.f32.xlu0 %v5080_v52  ;;  %v5083_v20 = vsel %vm1036_vm3, %v11881_v63, 0.0  ;;  %v9897_v52 = vunpack.i.l.bf16 %v11867_v51 }
0x1018   :  { %5084 = vadd.xlane.f32.xlu1 %v5083_v20 }
0x1029   :  { %9925 = vrot.lane.b32.xlu1 %v9924_v36, %s10316_s26 }
0x102d   :  { %9935 = vrot.lane.b32.xlu1 %v9934_v35, %s10316_s26  ;;  %9920 = vrot.lane.b32.xlu0 %v9919_v24, %s10316_s26 }
0x1031   :  { %9945 = vrot.lane.b32.xlu1 %v9944_v39, %s10316_s26  ;;  %9930 = vrot.lane.b32.xlu0 %v9929_v49, %s10316_s26  ;;  %v9519_v49 = vpack.c.bf16 %v9898_v62, %v9897_v52 }
0x1035   :  { %9955 = vrot.lane.b32.xlu1 %v9954_v56, %s10316_s26  ;;  %9940 = vrot.lane.b32.xlu0 %v9939_v3, %s10316_s26  ;;  %v9908_v56 = vunpack.i.h.bf16 %v9906_v13 }
0x1039   :  { %9960 = vrot.lane.b32.xlu1 %v11670_v34, %s10309_s17  ;;  %9950 = vrot.lane.b32.xlu0 %v9949_v50, %s10316_s26  ;;  %v9907_v50 = vunpack.i.l.bf16 %v9906_v13  ;;  %s12473_s17 = smov 40  }
0x103b   :  { %v9527_v13 = vpack.c.bf16 %v9908_v56, %v9907_v50 }
0x103d   :  { %9970 = vrot.lane.b32.xlu1 %v11670_v34, %s10311_s19  ;;  %9965 = vrot.lane.b32.xlu0 %v11670_v34, %s10310_s18  ;;  %s12474_s18 = smov 48   ;;  %s12475_s19 = smov 56  }
0x1054   :  { %v5040_v40 = vpop.xlane.xlu1 %5039 }
0x1055   :  { %10170 = vrcp.f32 %v5040_v40 }
0x1057   :  { %v5043_v12 = vpop.xlane.xlu0 %5042 }
0x1058   :  { %10172 = vrcp.f32 %v5043_v12 }
0x105b   :  { %v5049_v42 = vpop.xlane.xlu0 %5048 }
0x105c   :  { %v5055_v19 = vpop.xlane.xlu1 %5054  ;;  %10174 = vrcp.f32 %v5049_v42 }
0x105f   :  { %v10171_v32 = vpop.eup %10170 }
0x1060   :  { %v5046_v14 = vpop.xlane.xlu1 %5045  ;;  %v5102_v27 = vmul.f32 %v10171_v32, %v11805_v41 }
0x1061   :  { %10176 = vrcp.f32 %v5046_v14  ;;  %v9913_v14 = vunpack.i.h.bf16 %v11919_v22 }
0x1062   :  { %v10173_v20 = vpop.eup %10172  ;;  %9007 = vmatprep.mubr.msk.f32.mxu1 %vm1036_vm3, %v5102_v27  ;;  %10178 = vrcp.f32 %v5055_v19  ;;  %v9912_v27 = vunpack.i.l.bf16 %v11919_v22  ;;  %v9917_v22 = vunpack.i.l.bf16 %v11917_v30 }
0x1063   :  { %v5058_v36 = vpop.xlane.xlu0 %5057  ;;  %v5103_v35 = vmul.f32 %v10173_v20, %v11811_v11 }
0x1064   :  { %10180 = vrcp.f32 %v5058_v36  ;;  %v5052_v24 = vpop.xlane.xlu1 %5051  ;;  %v9918_v36 = vunpack.i.h.bf16 %v11917_v30 }
0x1065   :  { %10182 = vrcp.f32 %v5052_v24  ;;  %9008 = vmatmul.mubr.msk.f32.vlgmr.msra.gmra.mrb[50].mxu1 %vm1036_vm3, %v5103_v35 }
0x1066   :  { %9514 = vmatpush3.bf16.msra.mxu1 %v11836_v37  ;;  %v10175_v39 = vpop.eup %10174 }
0x1067   :  { %9520 = vmatprep.subr.bf16.mxu1 %v9519_v49  ;;  %v5064_v41 = vpop.xlane.xlu0 %5063  ;;  %v5105_v42 = vmul.f32 %v10175_v39, %v11816_v46 }
0x1068   :  { %10184 = vrcp.f32 %v5064_v41  ;;  %v5061_v51 = vpop.xlane.xlu1 %5060 }
0x1069   :  { %10186 = vrcp.f32 %v5061_v51 }
0x106b   :  { %v10177_v3 = vpop.eup %10176  ;;  %v5070_v40 = vpop.xlane.xlu0 %5069 }
0x106c   :  { %10188 = vrcp.f32 %v5070_v40  ;;  %v5067_v11 = vpop.xlane.xlu1 %5066  ;;  %v5104_v12 = vmul.f32 %v10177_v3, %v11827_v17  ;;  %v10179_v19 = vpop.eup %10178 }
0x106d   :  { %10190 = vrcp.f32 %v5067_v11  ;;  %v5107_v46 = vmul.f32 %v10179_v19, %v11819_v29 }
0x106e   :  { %v10181_v32 = vpop.eup %10180  ;;  %9014 = vmatprep.mubr.msk.f32.mxu1 %vm1036_vm3, %v5104_v12 }
0x106f   :  { %v10183_v37 = vpop.eup %10182  ;;  %9015 = vmatmul.mubr.msk.f32.vlgmr.msra.gmra.mrb[52].mxu1 %vm1036_vm3, %v5105_v42  ;;  %v5108_v62 = vmul.f32 %v10181_v32, %v11834_v28  ;;  %v9531_v28 = vpack.c.bf16 %v9913_v14, %v9912_v27 }
0x1070   :  { %9522 = vmatpush3.bf16.msra.mxu1 %v9519_v49  ;;  %v5073_v52 = vpop.xlane.xlu1 %5072  ;;  %v5106_v17 = vmul.f32 %v10183_v37, %v11832_v45  ;;  %v9535_v49 = vpack.c.bf16 %v9918_v36, %v9917_v22 }
0x1071   :  { %10192 = vrcp.f32 %v5073_v52  ;;  %9528 = vmatprep.subr.bf16.mxu1 %v9527_v13  ;;  %9028 = vmatprep.mubr.msk.f32.mxu1 %vm1036_vm3, %v5108_v62 }
0x1072   :  { %v10185_v20 = vpop.eup %10184  ;;  %9021 = vmatprep.mubr.msk.f32.mxu0 %vm1036_vm3, %v5106_v17 }
0x1073   :  { %v10187_v35 = vpop.eup %10186  ;;  %9022 = vmatmul.mubr.msk.f32.vlgmr.msra.gmra.mrb[58].mxu0 %vm1036_vm3, %v5107_v46  ;;  %v5110_v24 = vmul.f32 %v10185_v20, %v11845_v0 }
0x1074   :  { %9526 = vmatpush3.bf16.msra.mxu0 %v11872_v9  ;;  %v5109_v45 = vmul.f32 %v10187_v35, %v11843_v59  ;;  %v5079_v9 = vpop.xlane.xlu1 %5078 }
0x1075   :  { %9532 = vmatprep.subr.bf16.mxu0 %v9531_v28  ;;  %9035 = vmatprep.mubr.msk.f32.mxu0 %vm1036_vm3, %v5110_v24  ;;  %10194 = vrcp.f32 %v5079_v9 }
0x1076   :  { %v10189_v29 = vpop.eup %10188  ;;  %9029 = vmatmul.mubr.msk.f32.vlgmr.msra.gmra.mrb[54].mxu1 %vm1036_vm3, %v5109_v45 }
0x1077   :  { %v10191_v30 = vpop.eup %10190  ;;  %9530 = vmatpush3.bf16.msra.mxu1 %v9527_v13  ;;  %v5112_v41 = vmul.f32 %v10189_v29, %v11853_v48 }
0x1078   :  { %v5111_v51 = vmul.f32 %v10191_v30, %v11851_v55  ;;  %9536 = vmatprep.subr.bf16.mxu1 %v9535_v49 }
0x1079   :  { %9042 = vmatprep.mubr.msk.f32.mxu1 %vm1036_vm3, %v5112_v41 }
0x107a   :  { %9036 = vmatmul.mubr.msk.f32.vlgmr.msra.gmra.mrb[60].mxu0 %vm1036_vm3, %v5111_v51 }
0x107b   :  { %v10193_v0 = vpop.eup %10192  ;;  %9534 = vmatpush3.bf16.msra.mxu0 %v9531_v28 }
0x107c   :  { %v5113_v59 = vmul.f32 %v10193_v0, %v11859_v2 }
0x107e   :  { %9043 = vmatmul.mubr.msk.f32.vlgmr.msra.gmra.mrb[56].mxu1 %vm1036_vm3, %v5113_v59 }
0x107f   :  { %9538 = vmatpush3.bf16.msra.mxu1 %v9535_v49  ;;  %v10195_v11 = vpop.eup %10194 }
0x1080   :  { %v5115_v27 = vmul.f32 %v10195_v11, %v11863_v54 }
0x10a0   :  { %v5076_v39 = vpop.xlane.xlu0 %5075 }
0x10a1   :  { %10196 = vrcp.f32 %v5076_v39 }
0x10a4   :  { %v5082_v3 = vpop.xlane.xlu0 %5081 }
0x10a5   :  { %10198 = vrcp.f32 %v5082_v3  ;;  %v5085_v48 = vpop.xlane.xlu1 %5084 }
0x10a6   :  { %10200 = vrcp.f32 %v5085_v48 }
0x10a8   :  { %v9921_v55 = vpop.permute.xlu0 %9920 }
0x10a9   :  { %v9923_v56 = vunpack.i.h.bf16 %v9921_v55  ;;  %v9922_v50 = vunpack.i.l.bf16 %v9921_v55  ;;  %v9926_v40 = vpop.permute.xlu1 %9925 }
0x10aa   :  { %v9928_v12 = vunpack.i.h.bf16 %v9926_v40  ;;  %v9927_v19 = vunpack.i.l.bf16 %v9926_v40 }
0x10ab   :  { %v10197_v42 = vpop.eup %10196  ;;  %v9539_v2 = vpack.c.bf16 %v9923_v56, %v9922_v50 }
0x10ac   :  { %v9545_v32 = vpack.c.bf16 %v9928_v12, %v9927_v19  ;;  %v9931_v37 = vpop.permute.xlu0 %9930  ;;  %v5114_v14 = vmul.f32 %v10197_v42, %v11875_v31 }
0x10ad   :  { %v9933_v13 = vunpack.i.h.bf16 %v9931_v37  ;;  %v9932_v62 = vunpack.i.l.bf16 %v9931_v37  ;;  %v9936_v52 = vpop.permute.xlu1 %9935  ;;  %9541 = vmatprep.subr.msk.bf16.mxu0 %vm10585_vm2, %v9539_v2 }
0x10ae   :  { %9049 = vmatprep.mubr.msk.f32.mxu0 %vm1036_vm3, %v5114_v14  ;;  %9547 = vmatprep.subr.msk.bf16.mxu1 %vm10585_vm2, %v9545_v32  ;;  %v9938_v20 = vunpack.i.h.bf16 %v9936_v52  ;;  %v9937_v36 = vunpack.i.l.bf16 %v9936_v52 }
0x10af   :  { %v10199_v17 = vpop.eup %10198  ;;  %v9551_v46 = vpack.c.bf16 %v9933_v13, %v9932_v62  ;;  %9050 = vmatmul.mubr.msk.f32.vlgmr.msra.gmra.mrb[62].mxu0 %vm1036_vm3, %v5115_v27 }
0x10b0   :  { %v10201_v31 = vpop.eup %10200  ;;  %9544 = vmatpush3.bf16.xpose.msk.msra.mxu0 %vm10585_vm2, %v9539_v2  ;;  %v9941_v54 = vpop.permute.xlu0 %9940  ;;  %9063 = vmatprep.mubr.msk.f32.mxu0 %vm343_vm1, %v11658_v15  ;;  %v5116_v22 = vmul.f32 %v10199_v17, %v11879_v1  ;;  %v9557_v28 = vpack.c.bf16 %v9938_v20, %v9937_v36 }
0x10b1   :  { %v5117_v35 = vmul.f32 %v10201_v31, %v11881_v63  ;;  %9553 = vmatprep.subr.msk.bf16.mxu0 %vm10585_vm2, %v9551_v46  ;;  %v9943_v24 = vunpack.i.h.bf16 %v9941_v54  ;;  %v9942_v45 = vunpack.i.l.bf16 %v9941_v54  ;;  %v9946_v29 = vpop.permute.xlu1 %9945 }
0x10b2   :  { %9056 = vmatprep.mubr.msk.f32.mxu1 %vm1036_vm3, %v5116_v22  ;;  %v9948_v1 = vunpack.i.h.bf16 %v9946_v29  ;;  %v9947_v63 = vunpack.i.l.bf16 %v9946_v29 }
0x10b3   :  { %9057 = vmatmul.mubr.msk.f32.vlgmr.msra.gmra.mrb[58].mxu1 %vm1036_vm3, %v5117_v35  ;;  %v9563_v15 = vpack.c.bf16 %v9943_v24, %v9942_v45 }
0x10b4   :  { %9550 = vmatpush3.bf16.xpose.msk.msra.mxu1 %vm10585_vm2, %v9545_v32  ;;  %9070 = vmatprep.mubr.msk.f32.mxu1 %vm343_vm1, %v11763_v21  ;;  %v9951_v49 = vpop.permute.xlu0 %9950  ;;  %v9569_v21 = vpack.c.bf16 %v9948_v1, %v9947_v63 }
0x10b5   :  { %9559 = vmatprep.subr.msk.bf16.mxu1 %vm10585_vm2, %v9557_v28  ;;  %v9953_v30 = vunpack.i.h.bf16 %v9951_v49  ;;  %v9952_v41 = vunpack.i.l.bf16 %v9951_v49  ;;  %v9956_v51 = vpop.permute.xlu1 %9955 }
0x10b6   :  { %v9957_v0 = vunpack.i.l.bf16 %v9956_v51 }
0x10b7   :  { %9064 = vmatmul.mubr.msk.f32.vlgmr.msra.gmra.mrb[64].mxu0 %vm343_vm1, %v11679_v4  ;;  %v9575_v4 = vpack.c.bf16 %v9953_v30, %v9952_v41 }
0x10b8   :  { %9556 = vmatpush3.bf16.xpose.msk.msra.mxu0 %vm10585_vm2, %v9551_v46  ;;  %9077 = vmatprep.mubr.msk.f32.mxu0 %vm343_vm1, %v11775_v61  ;;  %v9958_v61 = vunpack.i.h.bf16 %v9956_v51 }
0x10b9   :  { %9565 = vmatprep.subr.msk.bf16.mxu0 %vm10585_vm2, %v9563_v15 }
0x10bb   :  { %9071 = vmatmul.mubr.msk.f32.vlgmr.msra.gmra.mrb[60].mxu1 %vm343_vm1, %v11791_v60  ;;  %v9581_v60 = vpack.c.bf16 %v9958_v61, %v9957_v0 }
0x10bc   :  { %9562 = vmatpush3.bf16.xpose.msk.msra.mxu1 %vm10585_vm2, %v9557_v28  ;;  %9084 = vmatprep.mubr.msk.f32.mxu1 %vm343_vm1, %v11779_v5  ;;  %v9961_v5 = vpop.permute.xlu1 %9960 }
0x10bd   :  { %9571 = vmatprep.subr.msk.bf16.mxu1 %vm10585_vm2, %v9569_v21  ;;  %v9962_v59 = vunpack.i.l.bf16 %v9961_v5 }
0x10bf   :  { %9078 = vmatmul.mubr.msk.f32.vlgmr.msra.gmra.mrb[66].mxu0 %vm343_vm1, %v11781_v18  ;;  %v9963_v18 = vunpack.i.h.bf16 %v9961_v5 }
0x10c0   :  { %9568 = vmatpush3.bf16.xpose.msk.msra.mxu0 %vm10585_vm2, %v9563_v15  ;;  %9091 = vmatprep.mubr.msk.f32.mxu0 %vm343_vm1, %v11771_v58  ;;  %v9966_v58 = vpop.permute.xlu0 %9965  ;;  %v9971_v39 = vpop.permute.xlu1 %9970 }
0x10c1   :  { %9577 = vmatprep.subr.msk.bf16.mxu0 %vm10585_vm2, %v9575_v4  ;;  %v9967_v9 = vunpack.i.l.bf16 %v9966_v58  ;;  %v9973_v3 = vunpack.i.h.bf16 %v9971_v39 }
0x10c3   :  { %9085 = vmatmul.mubr.msk.f32.vlgmr.msra.gmra.mrb[62].mxu1 %vm343_vm1, %v11785_v7  ;;  %v9968_v7 = vunpack.i.h.bf16 %v9966_v58 }
0x10c4   :  { %9574 = vmatpush3.bf16.xpose.msk.msra.mxu1 %vm10585_vm2, %v9569_v21  ;;  %9098 = vmatprep.mubr.msk.f32.mxu1 %vm343_vm1, %v11777_v8  ;;  %v9591_v8 = vpack.c.bf16 %v9963_v18, %v9962_v59 }
0x10c5   :  { %9583 = vmatprep.subr.msk.bf16.mxu1 %vm10585_vm2, %v9581_v60 }
0x10c7   :  { %9092 = vmatmul.mubr.msk.f32.vlgmr.msra.gmra.mrb[68].mxu0 %vm343_vm1, %v11795_v43  ;;  %v12022_v43 = vpack.c.bf16 %v9968_v7, %v9967_v9 }
0x10c8   :  { %9580 = vmatpush3.bf16.xpose.msk.msra.mxu0 %vm10585_vm2, %v9575_v4  ;;  %9105 = vmatprep.mubr.msk.f32.mxu0 %vm343_vm1, %v11783_v6  ;;  %v9972_v6 = vunpack.i.l.bf16 %v9971_v39 }
0x10c9   :  { %9588 = vmatprep.subr.bf16.mxu0 %v11672_v57 }
0x10cb   :  { %9099 = vmatmul.mubr.msk.f32.vlgmr.msra.gmra.mrb[64].mxu1 %vm343_vm1, %v11789_v26  ;;  %v12028_v26 = vpack.c.bf16 %v9973_v3, %v9972_v6 }
0x10cc   :  { %9586 = vmatpush3.bf16.xpose.msk.msra.mxu1 %vm10585_vm2, %v9581_v60  ;;  %9112 = vmatprep.mubr.msk.f32.mxu1 %vm343_vm1, %v11787_v33 }
0x10cd   :  { %9592 = vmatprep.subr.bf16.mxu1 %v9591_v8 }
0x10cf   :  { %9106 = vmatmul.mubr.msk.f32.vlgmr.msra.gmra.mrb[70].mxu0 %vm343_vm1, %v11793_v38 }
0x10d0   :  { %9590 = vmatpush3.bf16.msra.mxu0 %v11672_v57 }
0x10d1   :  { %9596 = vmatprep.subr.bf16.mxu0 %v12022_v43 }
0x10d3   :  { %9113 = vmatmul.mubr.msk.f32.vlgmr.msra.gmra.mrb[66].mxu1 %vm343_vm1, %v11797_v44 }
0x10d4   :  { %9594 = vmatpush3.bf16.msra.mxu1 %v9591_v8 }
0x10d5   :  { %9600 = vmatprep.subr.bf16.mxu1 %v12028_v26 }
0x1138   :  { %v12033_v25 = vpop.f32.mrb[50].mxu1 }
0x1139   :  { %v12035_v33 = vpop.f32.mrb[51].mxu1 }
0x1142   :  { %v12037_v48 = vpop.f32.mrb[52].mxu1 }
0x1143   :  { %v12039_v55 = vpop.f32.mrb[53].mxu1 }
0x1146   :  { %v12041_v38 = vpop.f32.mrb[58].mxu0 }
0x1147   :  { %v12043_v57 = vpop.f32.mrb[59].mxu0 }
0x1149   :  { %v12045_v56 = vpop.f32.mrb[54].mxu1 }
0x114a   :  { %v12047_v50 = vpop.f32.mrb[55].mxu1 }
0x114d   :  { %v12049_v44 = vpop.f32.mrb[60].mxu0 }
0x114e   :  { %v12051_v40 = vpop.f32.mrb[61].mxu0 }
0x1151   :  { %v12053_v11 = vpop.f32.mrb[56].mxu1 }
0x1152   :  { %v12055_v12 = vpop.f32.mrb[57].mxu1 }
0x1182   :  { %v12057_v19 = vpop.f32.mrb[62].mxu0 }
0x1183   :  { %v12059_v42 = vpop.f32.mrb[63].mxu0 }
0x1186   :  { %v12061_v2 = vpop.f32.mrb[58].mxu1 }
0x1187   :  { %v12063_v32 = vpop.f32.mrb[59].mxu1 }
0x118a   :  { %v9065_v37 = vpop.f32.mrb[64].mxu0 }
0x118b   :  { %v5988_v14 = vpop.f32.mrb[65].mxu0  ;;  %v6609_v27 = vsel %vm1036_vm3, %v9065_v37, -inf }
0x118c   :  { %6610 = vmax.xlane.f32.xlu1 %v6609_v27  ;;  %v6606_v13 = vsel %vm1036_vm3, %v5988_v14, -inf }
0x118d   :  { %6607 = vmax.xlane.f32.xlu0 %v6606_v13 }
0x118e   :  { %v9072_v62 = vpop.f32.mrb[60].mxu1 }
0x118f   :  { %v12067_v52 = vpop.f32.mrb[61].mxu1  ;;  %v6615_v17 = vsel %vm1036_vm3, %v9072_v62, -inf }
0x1190   :  { %v6612_v35 = vsel %vm1036_vm3, %v12067_v52, -inf }
0x1191   :  { %6616 = vmax.xlane.f32.xlu0 %v6615_v17 }
0x1192   :  { %v9079_v46 = vpop.f32.mrb[66].mxu0 }
0x1193   :  { %v6162_v20 = vpop.f32.mrb[67].mxu0  ;;  %v6621_v36 = vsel %vm1036_vm3, %v9079_v46, -inf }
0x1194   :  { %v6618_v31 = vsel %vm1036_vm3, %v6162_v20, -inf }
0x1195   :  { %6622 = vmax.xlane.f32.xlu0 %v6621_v36  ;;  %6619 = vmax.xlane.f32.xlu1 %v6618_v31 }
0x1196   :  { %v12072_v54 = vpop.f32.mrb[62].mxu1 }
0x1197   :  { %v12074_v22 = vpop.f32.mrb[63].mxu1  ;;  %v6627_v29 = vsel %vm1036_vm3, %v12072_v54, -inf }
0x1198   :  { %v6624_v28 = vsel %vm1036_vm3, %v12074_v22, -inf }
0x1199   :  { %6613 = vmax.xlane.f32.xlu0 %v6612_v35  ;;  %6625 = vmax.xlane.f32.xlu1 %v6624_v28 }
0x119a   :  { %v12080_v24 = vpop.f32.mrb[68].mxu0 }
0x119b   :  { %v12082_v45 = vpop.f32.mrb[69].mxu0  ;;  %v6633_v49 = vsel %vm1036_vm3, %v12080_v24, -inf }
0x119c   :  { %v6630_v15 = vsel %vm1036_vm3, %v12082_v45, -inf }
0x119d   :  { %6628 = vmax.xlane.f32.xlu0 %v6627_v29  ;;  %6631 = vmax.xlane.f32.xlu1 %v6630_v15 }
0x119e   :  { %v12088_v1 = vpop.f32.mrb[64].mxu1 }
0x119f   :  { %v12090_v63 = vpop.f32.mrb[65].mxu1  ;;  %v6639_v51 = vsel %vm1036_vm3, %v12088_v1, -inf }
0x11a0   :  { %v6636_v21 = vsel %vm1036_vm3, %v12090_v63, -inf }
0x11a1   :  { %6634 = vmax.xlane.f32.xlu0 %v6633_v49  ;;  %6637 = vmax.xlane.f32.xlu1 %v6636_v21 }
0x11a2   :  { %v12096_v30 = vpop.f32.mrb[70].mxu0 }
0x11a3   :  { %v12098_v41 = vpop.f32.mrb[71].mxu0  ;;  %v6645_v60 = vsel %vm1036_vm3, %v12096_v30, -inf }
0x11a4   :  { %v6642_v4 = vsel %vm1036_vm3, %v12098_v41, -inf }
0x11a5   :  { %6640 = vmax.xlane.f32.xlu0 %v6639_v51  ;;  %6643 = vmax.xlane.f32.xlu1 %v6642_v4 }
0x11a6   :  { %v12104_v61 = vpop.f32.mrb[66].mxu1 }
0x11a7   :  { %v12106_v0 = vpop.f32.mrb[67].mxu1  ;;  %v6651_v18 = vsel %vm1036_vm3, %v12104_v61, -inf }
0x11a8   :  { %v6648_v5 = vsel %vm1036_vm3, %v12106_v0, -inf }
0x11a9   :  { %6646 = vmax.xlane.f32.xlu0 %v6645_v60  ;;  %6649 = vmax.xlane.f32.xlu1 %v6648_v5 }
0x11ad   :  { %6652 = vmax.xlane.f32.xlu0 %v6651_v18 }
0x11ba   :  { %9975 = vrot.lane.b32.xlu1 %v11670_v34, %s10312_s20 }
0x11c3   :  { %9980 = vrot.lane.b32.xlu0 %v11670_v34, %s10313_s21 }
0x1219   :  { %v6611_v59 = vpop.xlane.xlu1 %6610 }
0x121a   :  { %v6655_v58 = vsub.f32 %v9065_v37, %v6611_v59  ;;  %v6608_v7 = vpop.xlane.xlu0 %6607 }
0x121b   :  { %v6654_v9 = vsub.f32 %v5988_v14, %v6608_v7 }
0x121c   :  { %v6672_v8 = vmul.f32 1.442695, %v6655_v58 }
0x121d   :  { %v6670_v39 = vmul.f32 1.442695, %v6654_v9 }
0x121e   :  { %10202 = vpow2.f32 %v6672_v8  ;;  %v6617_v3 = vpop.xlane.xlu0 %6616 }
0x121f   :  { %10204 = vpow2.f32 %v6670_v39  ;;  %v6657_v6 = vsub.f32 %v9072_v62, %v6617_v3 }
0x1221   :  { %v6676_v27 = vmul.f32 1.442695, %v6657_v6 }
0x1222   :  { %v6623_v13 = vpop.xlane.xlu0 %6622  ;;  %v6620_v17 = vpop.xlane.xlu1 %6619 }
0x1223   :  { %10206 = vpow2.f32 %v6676_v27  ;;  %v6659_v36 = vsub.f32 %v9079_v46, %v6623_v13  ;;  %v6658_v35 = vsub.f32 %v6162_v20, %v6620_v17 }
0x1225   :  { %v6680_v31 = vmul.f32 1.442695, %v6659_v36  ;;  %v6678_v49 = vmul.f32 1.442695, %v6658_v35 }
0x1226   :  { %v6614_v28 = vpop.xlane.xlu0 %6613  ;;  %v6626_v29 = vpop.xlane.xlu1 %6625 }
0x1227   :  { %10208 = vpow2.f32 %v6680_v31  ;;  %v6656_v37 = vsub.f32 %v12067_v52, %v6614_v28  ;;  %v6660_v62 = vsub.f32 %v12074_v22, %v6626_v29 }
0x1228   :  { %v12119_v15 = vpop.eup %10202 }
0x1229   :  { %v12121_v14 = vpop.eup %10204  ;;  %v6674_v21 = vmul.f32 1.442695, %v6656_v37  ;;  %v6705_v51 = vsel %vm1036_vm3, %v12119_v15, 0.0  ;;  %v6682_v5 = vmul.f32 1.442695, %v6660_v62 }
0x122a   :  { %v6629_v4 = vpop.xlane.xlu0 %6628  ;;  %v6632_v46 = vpop.xlane.xlu1 %6631  ;;  %6706 = vadd.xlane.f32.xlu0 %v6705_v51  ;;  %v6702_v20 = vsel %vm1036_vm3, %v12121_v14, 0.0 }
0x122b   :  { %10210 = vpow2.f32 %v6674_v21  ;;  %v6661_v52 = vsub.f32 %v12072_v54, %v6629_v4  ;;  %6703 = vadd.xlane.f32.xlu1 %v6702_v20  ;;  %v6662_v22 = vsub.f32 %v12082_v45, %v6632_v46 }
0x122c   :  { %10212 = vpow2.f32 %v6678_v49 }
0x122d   :  { %v12129_v60 = vpop.eup %10206  ;;  %v6684_v18 = vmul.f32 1.442695, %v6661_v52  ;;  %v6686_v54 = vmul.f32 1.442695, %v6662_v22 }
0x122e   :  { %v6635_v59 = vpop.xlane.xlu0 %6634  ;;  %v6638_v58 = vpop.xlane.xlu1 %6637  ;;  %v6711_v7 = vsel %vm1036_vm3, %v12129_v60, 0.0 }
0x122f   :  { %10214 = vpow2.f32 %v6684_v18  ;;  %v6663_v9 = vsub.f32 %v12080_v24, %v6635_v59  ;;  %6712 = vadd.xlane.f32.xlu0 %v6711_v7  ;;  %v6664_v3 = vsub.f32 %v12090_v63, %v6638_v58 }
0x1230   :  { %10216 = vpow2.f32 %v6682_v5 }
0x1231   :  { %v12135_v8 = vpop.eup %10208  ;;  %v6688_v39 = vmul.f32 1.442695, %v6663_v9  ;;  %v6690_v24 = vmul.f32 1.442695, %v6664_v3 }
0x1232   :  { %v6641_v6 = vpop.xlane.xlu0 %6640  ;;  %v6644_v27 = vpop.xlane.xlu1 %6643  ;;  %v6717_v45 = vsel %vm1036_vm3, %v12135_v8, 0.0 }
0x1233   :  { %10218 = vpow2.f32 %v6688_v39  ;;  %v6665_v13 = vsub.f32 %v12088_v1, %v6641_v6  ;;  %6718 = vadd.xlane.f32.xlu0 %v6717_v45  ;;  %v6666_v31 = vsub.f32 %v12098_v41, %v6644_v27 }
0x1234   :  { %10220 = vpow2.f32 %v6686_v54 }
0x1235   :  { %v12141_v17 = vpop.eup %10210  ;;  %v6692_v36 = vmul.f32 1.442695, %v6665_v13  ;;  %v6694_v49 = vmul.f32 1.442695, %v6666_v31 }
0x1236   :  { %v6647_v35 = vpop.xlane.xlu0 %6646  ;;  %v6650_v28 = vpop.xlane.xlu1 %6649  ;;  %v6708_v63 = vsel %vm1036_vm3, %v12141_v17, 0.0 }
0x1237   :  { %v12146_v29 = vpop.eup %10212  ;;  %10222 = vpow2.f32 %v6692_v36  ;;  %v6667_v37 = vsub.f32 %v12096_v30, %v6647_v35  ;;  %6709 = vadd.xlane.f32.xlu1 %v6708_v63  ;;  %v6668_v62 = vsub.f32 %v12106_v0, %v6650_v28 }
0x1238   :  { %10224 = vpow2.f32 %v6690_v24  ;;  %v6714_v4 = vsel %vm1036_vm3, %v12146_v29, 0.0 }
0x1239   :  { %v12149_v1 = vpop.eup %10214  ;;  %v6696_v21 = vmul.f32 1.442695, %v6667_v37  ;;  %v6698_v52 = vmul.f32 1.442695, %v6668_v62 }
0x123a   :  { %v6653_v51 = vpop.xlane.xlu0 %6652  ;;  %v6723_v41 = vsel %vm1036_vm3, %v12149_v1, 0.0  ;;  %v12156_v46 = vpop.eup %10216 }
0x123b   :  { %10226 = vpow2.f32 %v6696_v21  ;;  %v6669_v30 = vsub.f32 %v12104_v61, %v6653_v51  ;;  %6724 = vadd.xlane.f32.xlu0 %v6723_v41  ;;  %6715 = vadd.xlane.f32.xlu1 %v6714_v4  ;;  %v6720_v18 = vsel %vm1036_vm3, %v12156_v46, 0.0 }
0x123c   :  { %10228 = vpow2.f32 %v6694_v49 }
0x123d   :  { %v12159_v20 = vpop.eup %10218  ;;  %v6700_v5 = vmul.f32 1.442695, %v6669_v30 }
0x123e   :  { %v6729_v0 = vsel %vm1036_vm3, %v12159_v20, 0.0  ;;  %v12165_v22 = vpop.eup %10220 }
0x123f   :  { %10230 = vpow2.f32 %v6700_v5  ;;  %6730 = vadd.xlane.f32.xlu0 %v6729_v0  ;;  %6721 = vadd.xlane.f32.xlu1 %v6720_v18  ;;  %v6726_v58 = vsel %vm1036_vm3, %v12165_v22, 0.0 }
0x1240   :  { %10232 = vpow2.f32 %v6698_v52 }
0x1241   :  { %v12167_v59 = vpop.eup %10222 }
0x1242   :  { %v6735_v61 = vsel %vm1036_vm3, %v12167_v59, 0.0  ;;  %v12173_v7 = vpop.eup %10224 }
0x1243   :  { %6736 = vadd.xlane.f32.xlu0 %v6735_v61  ;;  %6727 = vadd.xlane.f32.xlu1 %v6726_v58  ;;  %v6732_v39 = vsel %vm1036_vm3, %v12173_v7, 0.0 }
0x1245   :  { %v12175_v9 = vpop.eup %10226 }
0x1246   :  { %v6741_v54 = vsel %vm1036_vm3, %v12175_v9, 0.0  ;;  %v12181_v3 = vpop.eup %10228 }
0x1247   :  { %6742 = vadd.xlane.f32.xlu0 %v6741_v54  ;;  %6733 = vadd.xlane.f32.xlu1 %v6732_v39  ;;  %v6738_v45 = vsel %vm1036_vm3, %v12181_v3, 0.0 }
0x1249   :  { %v12183_v6 = vpop.eup %10230 }
0x124a   :  { %v6747_v27 = vsel %vm1036_vm3, %v12183_v6, 0.0  ;;  %v12189_v13 = vpop.eup %10232 }
0x124b   :  { %6748 = vadd.xlane.f32.xlu0 %v6747_v27  ;;  %6739 = vadd.xlane.f32.xlu1 %v6738_v45  ;;  %v6744_v24 = vsel %vm1036_vm3, %v12189_v13, 0.0 }
0x124f   :  { %6745 = vadd.xlane.f32.xlu1 %v6744_v24 }
0x1260   :  { %9985 = vrot.lane.b32.xlu1 %v11670_v34, %s10314_s22 }
0x1261   :  { %9990 = vrot.lane.b32.xlu0 %v11670_v34, %s10315_s23  ;;  %v9981_v34 = vpop.permute.xlu0 %9980 }
0x1262   :  { %v9982_v63 = vunpack.i.l.bf16 %v9981_v34 }
0x1264   :  { %5768 = vrot.lane.b32.xlu1 %v12039_v55, %s10317_s3 }
0x1265   :  { %5770 = vrot.lane.b32.xlu0 %v12037_v48, %s10317_s3  ;;  %v9976_v48 = vpop.permute.xlu1 %9975 }
0x1268   :  { %5776 = vrot.lane.b32.xlu1 %v12043_v57, %s10318_s30 }
0x1269   :  { %5778 = vrot.lane.b32.xlu0 %v12041_v38, %s10318_s30 }
0x126c   :  { %5784 = vrot.lane.b32.xlu1 %v12047_v50, %s10319_s2 }
0x126d   :  { %5786 = vrot.lane.b32.xlu0 %v12045_v56, %s10319_s2 }
0x1270   :  { %5792 = vrot.lane.b32.xlu1 %v12051_v40, %s10320_s16  ;;  %v9977_v40 = vunpack.i.l.bf16 %v9976_v48 }
0x1271   :  { %5794 = vrot.lane.b32.xlu0 %v12049_v44, %s10320_s16  ;;  %v9978_v44 = vunpack.i.h.bf16 %v9976_v48 }
0x1274   :  { %5800 = vrot.lane.b32.xlu1 %v12055_v12, %s12473_s17 }
0x1275   :  { %5808 = vrot.lane.b32.xlu0 %v12059_v42, %s12474_s18 }
0x1278   :  { %5802 = vrot.lane.b32.xlu1 %v12053_v11, %s12473_s17 }
0x1279   :  { %5816 = vrot.lane.b32.xlu0 %v12063_v32, %s12475_s19 }
0x127c   :  { %5810 = vrot.lane.b32.xlu1 %v12057_v19, %s12474_s18 }
0x1280   :  { %5818 = vrot.lane.b32.xlu1 %v12061_v2, %s12475_s19  ;;  %v9603_v2 = vpack.c.bf16 %v9978_v44, %v9977_v40 }
0x12b7   :  { %v6707_v55 = vpop.xlane.xlu0 %6706 }
0x12b8   :  { %10234 = vrcp.f32 %v6707_v55  ;;  %v6704_v38 = vpop.xlane.xlu1 %6703 }
0x12b9   :  { %10236 = vrcp.f32 %v6704_v38  ;;  %v7500_v38 = vld [vmem:[%s12460_s11] sm:$0xff] }
0x12bc   :  { %v6713_v57 = vpop.xlane.xlu0 %6712 }
0x12bd   :  { %10238 = vrcp.f32 %v6713_v57 }
0x12c0   :  { %v6719_v11 = vpop.xlane.xlu0 %6718 }
0x12c2   :  { %v10235_v56 = vpop.eup %10234 }
0x12c3   :  { %v10237_v50 = vpop.eup %10236  ;;  %v6767_v19 = vmul.f32 %v10235_v56, %v12119_v15  ;;  %v9983_v15 = vunpack.i.h.bf16 %v9981_v34 }
0x12c4   :  { %v6710_v12 = vpop.xlane.xlu1 %6709  ;;  %v6766_v42 = vmul.f32 %v10237_v50, %v12121_v14 }
0x12c5   :  { %10240 = vrcp.f32 %v6710_v12  ;;  %v9607_v51 = vpack.c.bf16 %v9983_v15, %v9982_v63  ;;  %v7504_v63 = vld [vmem:[%s12460_s11 + $0x20] sm:$0xff] }
0x12c6   :  { %9119 = vmatprep.mubr.msk.f32.mxu0 %vm1036_vm3, %v6766_v42  ;;  %10242 = vrcp.f32 %v6719_v11 }
0x12c7   :  { %9120 = vmatmul.mubr.msk.f32.vlgmr.msra.gmra.mrb[72].mxu0 %vm1036_vm3, %v6767_v19  ;;  %v10239_v28 = vpop.eup %10238 }
0x12c8   :  { %9598 = vmatpush3.bf16.msra.mxu0 %v12022_v43  ;;  %v6725_v32 = vpop.xlane.xlu0 %6724  ;;  %v6716_v36 = vpop.xlane.xlu1 %6715  ;;  %v6769_v62 = vmul.f32 %v10239_v28, %v12129_v60 }
0x12c9   :  { %9604 = vmatprep.subr.bf16.mxu0 %v9603_v2  ;;  %10244 = vrcp.f32 %v6716_v36 }
0x12ca   :  { %10246 = vrcp.f32 %v6725_v32 }
0x12cc   :  { %v6731_v31 = vpop.xlane.xlu0 %6730  ;;  %v6722_v35 = vpop.xlane.xlu1 %6721 }
0x12cd   :  { %10248 = vrcp.f32 %v6722_v35 }
0x12ce   :  { %10250 = vrcp.f32 %v6731_v31 }
0x12cf   :  { %v10241_v14 = vpop.eup %10240 }
0x12d0   :  { %v6737_v37 = vpop.xlane.xlu0 %6736  ;;  %v6728_v49 = vpop.xlane.xlu1 %6727  ;;  %v6768_v21 = vmul.f32 %v10241_v14, %v12141_v17 }
0x12d1   :  { %10252 = vrcp.f32 %v6728_v49  ;;  %v10243_v43 = vpop.eup %10242 }
0x12d2   :  { %9126 = vmatprep.mubr.msk.f32.mxu1 %vm1036_vm3, %v6768_v21  ;;  %10254 = vrcp.f32 %v6737_v37  ;;  %v6771_v17 = vmul.f32 %v10243_v43, %v12135_v8  ;;  %v7506_v21 = vld [vmem:[%s12460_s11 + $0x30] sm:$0xff] }
0x12d3   :  { %9127 = vmatmul.mubr.msk.f32.vlgmr.msra.gmra.mrb[68].mxu1 %vm1036_vm3, %v6769_v62  ;;  %v10245_v41 = vpop.eup %10244  ;;  %v7507_v62 = vld [vmem:[%s12460_s11 + $0x38] sm:$0xff] }
0x12d4   :  { %9602 = vmatpush3.bf16.msra.mxu1 %v12028_v26  ;;  %v6743_v4 = vpop.xlane.xlu0 %6742  ;;  %v6734_v30 = vpop.xlane.xlu1 %6733  ;;  %v6770_v52 = vmul.f32 %v10245_v41, %v12146_v29 }
0x12d5   :  { %9608 = vmatprep.subr.bf16.mxu1 %v9607_v51  ;;  %10256 = vrcp.f32 %v6734_v30  ;;  %v10247_v60 = vpop.eup %10246 }
0x12d6   :  { %9133 = vmatprep.mubr.msk.f32.mxu0 %vm1036_vm3, %v6770_v52  ;;  %10258 = vrcp.f32 %v6743_v4  ;;  %v6773_v61 = vmul.f32 %v10247_v60, %v12149_v1 }
0x12d7   :  { %v10249_v5 = vpop.eup %10248  ;;  %9134 = vmatmul.mubr.msk.f32.vlgmr.msra.gmra.mrb[74].mxu0 %vm1036_vm3, %v6771_v17 }
0x12d8   :  { %v6749_v0 = vpop.xlane.xlu0 %6748  ;;  %v6740_v18 = vpop.xlane.xlu1 %6739  ;;  %9606 = vmatpush3.bf16.msra.mxu0 %v9603_v2  ;;  %v6772_v26 = vmul.f32 %v10249_v5, %v12156_v46  ;;  %v7502_v2 = vld [vmem:[%s12460_s11 + $0x10] sm:$0xff] }
0x12d9   :  { %10260 = vrcp.f32 %v6740_v18  ;;  %v10251_v58 = vpop.eup %10250 }
0x12da   :  { %9140 = vmatprep.mubr.msk.f32.mxu1 %vm1036_vm3, %v6772_v26  ;;  %10262 = vrcp.f32 %v6749_v0  ;;  %v6775_v46 = vmul.f32 %v10251_v58, %v12159_v20 }
0x12db   :  { %v10253_v8 = vpop.eup %10252  ;;  %9141 = vmatmul.mubr.msk.f32.vlgmr.msra.gmra.mrb[70].mxu1 %vm1036_vm3, %v6773_v61 }
0x12dc   :  { %v9991_v29 = vpop.permute.xlu0 %9990  ;;  %v6746_v54 = vpop.xlane.xlu1 %6745  ;;  %9610 = vmatpush3.bf16.msra.mxu1 %v9607_v51  ;;  %v6774_v45 = vmul.f32 %v10253_v8, %v12165_v22  ;;  %v7501_v22 = vld [vmem:[%s12460_s11 + $0x8] sm:$0xff] }
0x12dd   :  { %v9993_v39 = vunpack.i.h.bf16 %v9991_v29  ;;  %v9992_v27 = vunpack.i.l.bf16 %v9991_v29  ;;  %10264 = vrcp.f32 %v6746_v54  ;;  %v10255_v24 = vpop.eup %10254  ;;  %v9619_v11 = vpack.c.bf16 %v7501_v22, %v7500_v38 }
0x12de   :  { %9147 = vmatprep.mubr.msk.f32.mxu0 %vm1036_vm3, %v6774_v45  ;;  %v6777_v50 = vmul.f32 %v10255_v24, %v12167_v59 }
0x12df   :  { %v9615_v1 = vpack.c.bf16 %v9993_v39, %v9992_v27  ;;  %v10257_v34 = vpop.eup %10256  ;;  %9148 = vmatmul.mubr.msk.f32.vlgmr.msra.gmra.mrb[76].mxu0 %vm1036_vm3, %v6775_v46 }
0x12e0   :  { %v12247_v48 = vpop.permute.xlu0 %5770  ;;  %v9986_v55 = vpop.permute.xlu1 %9985  ;;  %v6776_v56 = vmul.f32 %v10257_v34, %v12173_v7  ;;  %v7503_v7 = vld [vmem:[%s12460_s11 + $0x18] sm:$0xff] }
0x12e1   :  { %v9988_v57 = vunpack.i.h.bf16 %v9986_v55  ;;  %v9987_v20 = vunpack.i.l.bf16 %v9986_v55  ;;  %9616 = vmatprep.subr.bf16.mxu1 %v9615_v1  ;;  %v10259_v44 = vpop.eup %10258  ;;  %v9623_v35 = vpack.c.bf16 %v7503_v7, %v7502_v2 }
0x12e2   :  { %9154 = vmatprep.mubr.msk.f32.mxu1 %vm1036_vm3, %v6776_v56  ;;  %v6779_v31 = vmul.f32 %v10259_v44, %v12175_v9 }
0x12e3   :  { %v9611_v40 = vpack.c.bf16 %v9988_v57, %v9987_v20  ;;  %v10261_v12 = vpop.eup %10260  ;;  %9155 = vmatmul.mubr.msk.f32.vlgmr.msra.gmra.mrb[72].mxu1 %vm1036_vm3, %v6777_v50 }
0x12e4   :  { %v5779_v42 = vpop.permute.xlu0 %5778  ;;  %v5769_v19 = vpop.permute.xlu1 %5768  ;;  %9618 = vmatpush3.bf16.msra.mxu1 %v9615_v1  ;;  %v6778_v59 = vmul.f32 %v10261_v12, %v12181_v3  ;;  %v7505_v3 = vld [vmem:[%s12460_s11 + $0x28] sm:$0xff] }
0x12e5   :  { %9612 = vmatprep.subr.bf16.mxu0 %v9611_v40  ;;  %v10263_v32 = vpop.eup %10262  ;;  %v9627_v9 = vpack.c.bf16 %v7505_v3, %v7504_v63  ;;  %v5822_v41 = vsel %vm343_vm1, %v12035_v33, %v5769_v19  ;;  %v5823_v33 = vsel %vm343_vm1, %v12033_v25, %v12247_v48  ;;  %v4045_v19 = vld [vmem:[%s12463_s14 + $0x1] ss:$0 sm:$0xff] }
0x12e6   :  { %9614 = vmatpush3.bf16.msra.mxu0 %v9611_v40  ;;  %9161 = vmatprep.mubr.msk.f32.mxu0 %vm1036_vm3, %v6778_v59  ;;  %v6781_v37 = vmul.f32 %v10263_v32, %v12183_v6  ;;  %v9631_v6 = vpack.c.bf16 %v7507_v62, %v7506_v21  ;;  %v5825_v61 = vsel %vm1036_vm3, %v5823_v33, %v5779_v42 }
0x12e7   :  { %v10265_v36 = vpop.eup %10264  ;;  %9620 = vmatprep.subr.bf16.mxu0 %v9619_v11 }
0x12e8   :  { %v5787_v28 = vpop.permute.xlu0 %5786  ;;  %v5777_v14 = vpop.permute.xlu1 %5776  ;;  %v6780_v15 = vmul.f32 %v10265_v36, %v12189_v13 }
0x12e9   :  { %9162 = vmatmul.mubr.msk.f32.vlgmr.msra.gmra.mrb[78].mxu0 %vm1036_vm3, %v6779_v31  ;;  %v5824_v4 = vsel %vm1036_vm3, %v5822_v41, %v5777_v14  ;;  %v5827_v8 = vsel %vm1921_vm4, %v5825_v61, %v5787_v28 }
0x12ea   :  { %9168 = vmatprep.mubr.msk.f32.mxu1 %vm1036_vm3, %v6780_v15  ;;  %9622 = vmatpush3.bf16.msra.mxu0 %v9619_v11 }
0x12eb   :  { %9169 = vmatmul.mubr.msk.f32.vlgmr.msra.gmra.mrb[74].mxu1 %vm1036_vm3, %v6781_v37  ;;  %9624 = vmatprep.subr.bf16.mxu0 %v9623_v35 }
0x12ec   :  { %v5795_v13 = vpop.permute.xlu0 %5794  ;;  %v5785_v49 = vpop.permute.xlu1 %5784 }
0x12ed   :  { %v5826_v30 = vsel %vm1921_vm4, %v5824_v4, %v5785_v49  ;;  %v5829_v29 = vsel %vm163_vm0, %v5827_v8, %v5795_v13 }
0x12ee   :  { %9626 = vmatpush3.bf16.msra.mxu0 %v9623_v35 }
0x12ef   :  { %9628 = vmatprep.subr.bf16.mxu0 %v9627_v9 }
0x12f0   :  { %v5809_v43 = vpop.permute.xlu0 %5808  ;;  %v5793_v51 = vpop.permute.xlu1 %5792 }
0x12f1   :  { %v5828_v52 = vsel %vm163_vm0, %v5826_v30, %v5793_v51 }
0x12f2   :  { %9630 = vmatpush3.bf16.msra.mxu0 %v9627_v9 }
0x12f3   :  { %9632 = vmatprep.subr.bf16.mxu0 %v9631_v6 }
0x12f4   :  { %v5801_v17 = vpop.permute.xlu1 %5800  ;;  %v5817_v5 = vpop.permute.xlu0 %5816 }
0x12f5   :  { %v5830_v60 = vsel %vm1926_vm5, %v5828_v52, %v5801_v17 }
0x12f6   :  { %v5832_v0 = vsel %vm1929_vm6, %v5830_v60, %v5809_v43  ;;  %9634 = vmatpush3.bf16.msra.mxu0 %v9631_v6 }
0x12f7   :  { %v5834_v18 = vsel %vm1932_vm7, %v5832_v0, %v5817_v5 }
0x12f8   :  { %v5803_v26 = vpop.permute.xlu1 %5802  ;;  %9187 = vmatprep.mubr.msk.f32.mxu0 %vm3607_vm8, %v5834_v18 }
0x12f9   :  { %v5831_v54 = vsel %vm1926_vm5, %v5829_v29, %v5803_v26 }
0x12fc   :  { %v5811_v58 = vpop.permute.xlu1 %5810 }
0x12fd   :  { %v5833_v39 = vsel %vm1929_vm6, %v5831_v54, %v5811_v58 }
0x1300   :  { %v5819_v27 = vpop.permute.xlu1 %5818 }
0x1301   :  { %v5835_v45 = vsel %vm1932_vm7, %v5833_v39, %v5819_v27 }
0x1302   :  { %9188 = vmatmul.mubr.msk.f32.vlgmr.msra.gmra.mrb[80].mxu0 %vm3607_vm8, %v5835_v45 }
0x139a   :  { %v9121_v46 = vpop.f32.mrb[72].mxu0 }
0x139b   :  { %v6854_v24 = vpop.f32.mrb[73].mxu0 }
0x13a6   :  { %v9128_v1 = vpop.f32.mrb[68].mxu1 }
0x13a7   :  { %7434 = vrot.lane.b32.xlu1 %v9128_v1, %s10317_s3  ;;  %v6935_v25 = vpop.f32.mrb[69].mxu1 }
0x13a8   :  { %7432 = vrot.lane.b32.xlu0 %v6935_v25, %s10317_s3 }
0x13aa   :  { %v9135_v34 = vpop.f32.mrb[74].mxu0 }
0x13ab   :  { %7442 = vrot.lane.b32.xlu1 %v9135_v34, %s10318_s30  ;;  %v7016_v48 = vpop.f32.mrb[75].mxu0 }
0x13ac   :  { %7440 = vrot.lane.b32.xlu0 %v7016_v48, %s10318_s30 }
0x13ae   :  { %v9142_v55 = vpop.f32.mrb[70].mxu1 }
0x13af   :  { %v7097_v38 = vpop.f32.mrb[71].mxu1 }
0x13b0   :  { %7450 = vrot.lane.b32.xlu0 %v9142_v55, %s10319_s2 }
0x13b2   :  { %v9149_v22 = vpop.f32.mrb[76].mxu0 }
0x13b3   :  { %v7178_v57 = vpop.f32.mrb[77].mxu0 }
0x13b4   :  { %7458 = vrot.lane.b32.xlu0 %v9149_v22, %s10320_s16  ;;  %7456 = vrot.lane.b32.xlu1 %v7178_v57, %s10320_s16 }
0x13b6   :  { %v9156_v20 = vpop.f32.mrb[72].mxu1 }
0x13b7   :  { %v7259_v56 = vpop.f32.mrb[73].mxu1 }
0x13b8   :  { %7448 = vrot.lane.b32.xlu0 %v7097_v38, %s10319_s2  ;;  %7464 = vrot.lane.b32.xlu1 %v7259_v56, %s12473_s17  ;;  %v7671_v56 = vld [vmem:[%s12461_s12 + $0x10] sm:$0xff] }
0x13bc   :  { %v9163_v50 = vpop.f32.mrb[78].mxu0  ;;  %7466 = vrot.lane.b32.xlu0 %v9156_v20, %s12473_s17 }
0x13bd   :  { %v7340_v44 = vpop.f32.mrb[79].mxu0 }
0x13be   :  { %v9170_v40 = vpop.f32.mrb[74].mxu1  ;;  %7472 = vrot.lane.b32.xlu1 %v7340_v44, %s12474_s18 }
0x13bf   :  { %v7421_v11 = vpop.f32.mrb[75].mxu1 }
0x13c0   :  { %7474 = vrot.lane.b32.xlu0 %v9163_v50, %s12474_s18  ;;  %v7672_v50 = vld [vmem:[%s12461_s12 + $0x18] sm:$0xff] }
0x13c1   :  { %v9639_v44 = vpack.c.bf16 %v7672_v50, %v7671_v56 }
0x13c2   :  { %7480 = vrot.lane.b32.xlu1 %v7421_v11, %s12475_s19 }
0x13c4   :  { %7482 = vrot.lane.b32.xlu0 %v9170_v40, %s12475_s19 }
0x13d5   :  { %v9189_v12 = vpop.f32.mrb[80].mxu0 }
0x13d6   :  { %v7586_v42 = vpop.f32.mrb[81].mxu0  ;;  %v7592_v2 = vadd.f32 %v9189_v12, %v4045_v19 }
0x13d7   :  { %v7587_v7 = vadd.f32 %v7586_v42, %v4045_v19 }
0x13d8   :  { %v7606_v59 = vadd.f32 %v7592_v2, %v11483_v47 }
0x13d9   :  { %v7605_v32 = vadd.f32 %v7587_v7, %v11476_v53 }
0x13da   :  { %v7612_v36 = vsel %vm163_vm0, %v7606_v59, 0.0 }
0x13db   :  { %v7609_v31 = vsel %vm163_vm0, %v7605_v32, 0.0 }
0x13e3   :  { %7613 = vadd.xlane.f32.xlu0 %v7612_v36 }
0x13e6   :  { %7610 = vadd.xlane.f32.xlu1 %v7609_v31 }
0x1419   :  { %v7435_v28 = vpop.permute.xlu1 %7434 }
0x141a   :  { %v7433_v35 = vpop.permute.xlu0 %7432  ;;  %v7487_v43 = vsel %vm343_vm1, %v9121_v46, %v7435_v28 }
0x141b   :  { %v7486_v9 = vsel %vm343_vm1, %v6854_v24, %v7433_v35 }
0x141d   :  { %v7443_v15 = vpop.permute.xlu1 %7442 }
0x141e   :  { %v7441_v14 = vpop.permute.xlu0 %7440  ;;  %v7489_v51 = vsel %vm1036_vm3, %v7487_v43, %v7443_v15  ;;  %v7774_v43 = vld [vmem:[%s12462_s13] sm:$0xff] }
0x141f   :  { %v7488_v47 = vsel %vm1036_vm3, %v7486_v9, %v7441_v14 }
0x1422   :  { %v7451_v63 = vpop.permute.xlu0 %7450 }
0x1423   :  { %v7491_v30 = vsel %vm1921_vm4, %v7489_v51, %v7451_v63  ;;  %v7775_v51 = vld [vmem:[%s12462_s13 + $0x8] sm:$0xff] }
0x1426   :  { %v7459_v3 = vpop.permute.xlu0 %7458  ;;  %v7457_v37 = vpop.permute.xlu1 %7456 }
0x1427   :  { %v7493_v60 = vsel %vm163_vm0, %v7491_v30, %v7459_v3  ;;  %v7777_v30 = vld [vmem:[%s12462_s13 + $0x18] sm:$0xff] }
0x142a   :  { %v7449_v13 = vpop.permute.xlu0 %7448  ;;  %v7465_v49 = vpop.permute.xlu1 %7464 }
0x142b   :  { %v7490_v53 = vsel %vm1921_vm4, %v7488_v47, %v7449_v13 }
0x142c   :  { %v7492_v62 = vsel %vm163_vm0, %v7490_v53, %v7457_v37  ;;  %v4046_v37 = vld [vmem:[%s12463_s14 + $0x2] ss:$0 sm:$0xff] }
0x142d   :  { %v7494_v41 = vsel %vm1926_vm5, %v7492_v62, %v7465_v49  ;;  %v4047_v49 = vld [vmem:[%s12463_s14 + $0x3] ss:$0 sm:$0xff] }
0x142e   :  { %v7467_v21 = vpop.permute.xlu0 %7466 }
0x142f   :  { %v7495_v0 = vsel %vm1926_vm5, %v7493_v60, %v7467_v21  ;;  %v7779_v60 = vld [vmem:[%s12462_s13 + $0x28] sm:$0xff] }
0x1430   :  { %v7473_v6 = vpop.permute.xlu1 %7472 }
0x1431   :  { %v7496_v52 = vsel %vm1929_vm6, %v7494_v41, %v7473_v6  ;;  %v7776_v41 = vld [vmem:[%s12462_s13 + $0x10] sm:$0xff] }
0x1432   :  { %v7475_v4 = vpop.permute.xlu0 %7474 }
0x1433   :  { %v7497_v18 = vsel %vm1929_vm6, %v7495_v0, %v7475_v4  ;;  %v9643_v4 = vpack.c.bf16 %v7775_v51, %v7774_v43  ;;  %v7780_v0 = vld [vmem:[%s12462_s13 + $0x30] sm:$0xff] }
0x1434   :  { %v7481_v17 = vpop.permute.xlu1 %7480 }
0x1435   :  { %v7498_v5 = vsel %vm1932_vm7, %v7496_v52, %v7481_v17  ;;  %v9647_v52 = vpack.c.bf16 %v7777_v30, %v7776_v41  ;;  %v7778_v17 = vld [vmem:[%s12462_s13 + $0x20] sm:$0xff] }
0x1436   :  { %9190 = vmatprep.mubr.msk.f32.mxu0 %vm3607_vm8, %v7498_v5  ;;  %v7483_v26 = vpop.permute.xlu0 %7482  ;;  %v9651_v5 = vpack.c.bf16 %v7779_v60, %v7778_v17 }
0x1437   :  { %v7499_v33 = vsel %vm1932_vm7, %v7497_v18, %v7483_v26  ;;  %v7781_v18 = vld [vmem:[%s12462_s13 + $0x38] sm:$0xff] }
0x1438   :  { %9191 = vmatmul.mubr.msk.f32.gmra.mrb[82].mxu0 %vm3607_vm8, %v7499_v33  ;;  %v9655_v26 = vpack.c.bf16 %v7781_v18, %v7780_v0 }
0x1439   :  { %9233 = vmatprep.mubr.msk.f32.mxu0 %vm10325_vm9, %v10308_v16 }
0x1470   :  { %v7614_v61 = vpop.xlane.xlu0 %7613 }
0x1471   :  { %v7622_v8 = vmul.f32 0.03125, %v7614_v61 }
0x1473   :  { %v7611_v58 = vpop.xlane.xlu1 %7610  ;;  %v7626_v39 = vsub.f32 %v7606_v59, %v7622_v8 }
0x1474   :  { %v7621_v29 = vmul.f32 0.03125, %v7611_v58 }
0x1475   :  { %v7630_v48 = vmul.f32 %v7626_v39, %v7626_v39 }
0x1476   :  { %v7625_v46 = vsub.f32 %v7605_v32, %v7621_v29 }
0x1477   :  { %v7636_v22 = vsel %vm163_vm0, %v7630_v48, 0.0  ;;  %v4048_v48 = vld [vmem:[%s12463_s14 + $0x4] ss:$0 sm:$0xff] }
0x1478   :  { %v7629_v38 = vmul.f32 %v7625_v46, %v7625_v46 }
0x147a   :  { %v7633_v57 = vsel %vm163_vm0, %v7629_v38, 0.0 }
0x150b   :  { %v9192_v54 = vpop.f32.mrb[82].mxu0 }
0x150c   :  { %v7602_v27 = vadd.f32 %v9192_v54, %v4045_v19  ;;  %v7596_v45 = vpop.f32.mrb[83].mxu0 }
0x150d   :  { %v7597_v24 = vadd.f32 %v7596_v45, %v4045_v19 }
0x150e   :  { %v7608_v1 = vadd.f32 %v7602_v27, %v11594_v23  ;;  %v7669_v23 = vld [vmem:[%s12461_s12] sm:$0xff] }
0x150f   :  { %v7607_v25 = vadd.f32 %v7597_v24, %v11587_v10  ;;  %v7670_v10 = vld [vmem:[%s12461_s12 + $0x8] sm:$0xff] }
0x1510   :  { %v7618_v34 = vsel %vm163_vm0, %v7608_v1, 0.0  ;;  %v9635_v20 = vpack.c.bf16 %v7670_v10, %v7669_v23 }
0x1511   :  { %7619 = vadd.xlane.f32.xlu1 %v7618_v34  ;;  %v7615_v55 = vsel %vm163_vm0, %v7607_v25, 0.0 }
0x1512   :  { %7616 = vadd.xlane.f32.xlu0 %v7615_v55  ;;  %9636 = vmatprep.subr.bf16.mxu1 %v9635_v20 }
0x1513   :  { %9638 = vmatpush3.bf16.msra.mxu1 %v9635_v20 }
0x1514   :  { %9640 = vmatprep.subr.bf16.mxu1 %v9639_v44 }
0x1515   :  { %7637 = vadd.xlane.f32.xlu1 %v7636_v22 }
0x1516   :  { %7634 = vadd.xlane.f32.xlu0 %v7633_v57 }
0x1517   :  { %9642 = vmatpush3.bf16.msra.mxu1 %v9639_v44 }
0x1518   :  { %9644 = vmatprep.subr.bf16.mxu1 %v9643_v4 }
0x159e   :  { %v7620_v40 = vpop.xlane.xlu1 %7619 }
0x159f   :  { %v7624_v11 = vmul.f32 0.03125, %v7620_v40  ;;  %v7617_v12 = vpop.xlane.xlu0 %7616 }
0x15a0   :  { %v7623_v42 = vmul.f32 0.03125, %v7617_v12  ;;  %v4049_v12 = vld [vmem:[%s12463_s14 + $0x5] ss:$0 sm:$0xff] }
0x15a1   :  { %v7628_v19 = vsub.f32 %v7608_v1, %v7624_v11 }
0x15a2   :  { %v7627_v2 = vsub.f32 %v7607_v25, %v7623_v42  ;;  %v7638_v7 = vpop.xlane.xlu1 %7637 }
0x15a3   :  { %v7646_v59 = vmul.f32 0.03125, %v7638_v7  ;;  %v7635_v32 = vpop.xlane.xlu0 %7634  ;;  %v7632_v36 = vmul.f32 %v7628_v19, %v7628_v19 }
0x15a4   :  { %v7645_v31 = vmul.f32 0.03125, %v7635_v32  ;;  %v7631_v35 = vmul.f32 %v7627_v2, %v7627_v2 }
0x15a5   :  { %v7650_v28 = vadd.f32 1e-05, %v7646_v59  ;;  %v7642_v14 = vsel %vm163_vm0, %v7632_v36, 0.0 }
0x15a6   :  { %v7649_v15 = vadd.f32 1e-05, %v7645_v31  ;;  %7643 = vadd.xlane.f32.xlu1 %v7642_v14  ;;  %v7639_v63 = vsel %vm163_vm0, %v7631_v35, 0.0 }
0x15a7   :  { %10266 = vrsqrt.f32 %v7650_v28  ;;  %7640 = vadd.xlane.f32.xlu0 %v7639_v63 }
0x15a8   :  { %10268 = vrsqrt.f32 %v7649_v15 }
0x15b1   :  { %v10267_v3 = vpop.eup %10266 }
0x15b2   :  { %v10269_v9 = vpop.eup %10268  ;;  %v7658_v13 = vmul.f32 %v10267_v3, %v7626_v39 }
0x15b3   :  { %v7657_v47 = vmul.f32 %v10269_v9, %v7625_v46 }
0x15b4   :  { %v7662_v53 = vmul.f32 %v7658_v13, %v4046_v37 }
0x15b5   :  { %v7661_v21 = vmul.f32 %v7657_v47, %v4046_v37 }
0x15b6   :  { %v12369_v6 = vadd.f32 %v7662_v53, %v4047_v49 }
0x15b7   :  { %v12367_v62 = vadd.f32 %v7661_v21, %v4047_v49 }
0x15b9   :  { %9201 = vmatprep.mubr.msk.f32.mxu1 %vm163_vm0, %v12367_v62 }
0x15ba   :  { %9202 = vmatmul.mubr.msk.f32.vlgmr.msra.gmra.mrb[76].mxu1 %vm163_vm0, %v12369_v6 }
0x15bb   :  { %9646 = vmatpush3.bf16.msra.mxu1 %v9643_v4  ;;  %v10324_v4 = vmov 0.0|0.0  }
0x15bc   :  { %9648 = vmatprep.subr.bf16.mxu1 %v9647_v52  ;;  %9659 = vmatprep.subr.bf16.mxu0 %v10324_v4 }
0x15bf   :  { %9650 = vmatpush3.bf16.msra.mxu1 %v9647_v52 }
0x15c0   :  { %9652 = vmatprep.subr.bf16.mxu1 %v9651_v5 }
0x15c3   :  { %9654 = vmatpush3.bf16.msra.mxu1 %v9651_v5 }
0x15c4   :  { %9656 = vmatprep.subr.bf16.mxu1 %v9655_v26 }
0x15c7   :  { %9658 = vmatpush3.bf16.msra.mxu1 %v9655_v26 }
0x1633   :  { %v7644_v33 = vpop.xlane.xlu1 %7643 }
0x1634   :  { %v7648_v61 = vmul.f32 0.03125, %v7644_v33  ;;  %v7641_v58 = vpop.xlane.xlu0 %7640 }
0x1635   :  { %v7647_v8 = vmul.f32 0.03125, %v7641_v58 }
0x1636   :  { %v7652_v29 = vadd.f32 1e-05, %v7648_v61 }
0x1637   :  { %v7651_v54 = vadd.f32 1e-05, %v7647_v8 }
0x1638   :  { %10270 = vrsqrt.f32 %v7652_v29 }
0x1639   :  { %10272 = vrsqrt.f32 %v7651_v54 }
0x1642   :  { %v10271_v39 = vpop.eup %10270 }
0x1643   :  { %v10273_v27 = vpop.eup %10272  ;;  %v7660_v45 = vmul.f32 %v10271_v39, %v7628_v19 }
0x1644   :  { %v7659_v46 = vmul.f32 %v10273_v27, %v7627_v2 }
0x1645   :  { %v7664_v24 = vmul.f32 %v7660_v45, %v4046_v37 }
0x1646   :  { %v7663_v1 = vmul.f32 %v7659_v46, %v4046_v37  ;;  %v4050_v46 = vld [vmem:[%s12463_s14 + $0x6] ss:$0 sm:$0xff] }
0x1647   :  { %v7668_v34 = vadd.f32 %v7664_v24, %v4047_v49 }
0x1648   :  { %v7667_v25 = vadd.f32 %v7663_v1, %v4047_v49 }
0x164a   :  { %9204 = vmatprep.mubr.msk.f32.mxu1 %vm163_vm0, %v7667_v25 }
0x164b   :  { %9205 = vmatmul.mubr.msk.f32.gmra.mrb[78].mxu1 %vm163_vm0, %v7668_v34 }
0x168d   :  { %v9203_v55 = vpop.f32.mrb[76].mxu1 }
0x168e   :  { %v7757_v38 = vadd.f32 %v9203_v55, %v4048_v48  ;;  %v7751_v22 = vpop.f32.mrb[77].mxu1 }
0x168f   :  { %v7752_v57 = vadd.f32 %v7751_v22, %v4048_v48 }
0x1690   :  { %v7771_v10 = vmax.f32 %v7757_v38, 0.0 }
0x1691   :  { %v7770_v23 = vmax.f32 %v7752_v57, 0.0 }
0x1693   :  { %9223 = vmatprep.mubr.msk.f32.mxu1 %vm3607_vm8, %v7770_v23  ;;  %v7943_v23 = vld [vmem:[%s12453_s4] sm:$0xff]  ;;  %s10326_s4 = smov [#allocation2]  }
0x1694   :  { %9224 = vmatmul.mubr.msk.f32.vlgmr.msra.gmra.mrb[80].mxu1 %vm3607_vm8, %v7771_v10 }
0x171e   :  { %v9206_v20 = vpop.f32.mrb[78].mxu1 }
0x171f   :  { %v7767_v56 = vadd.f32 %v9206_v20, %v4048_v48  ;;  %v7761_v50 = vpop.f32.mrb[79].mxu1 }
0x1720   :  { %v7762_v44 = vadd.f32 %v7761_v50, %v4048_v48 }
0x1721   :  { %v7773_v11 = vmax.f32 %v7767_v56, 0.0 }
0x1722   :  { %v7772_v40 = vmax.f32 %v7762_v44, 0.0 }
0x1724   :  { %9226 = vmatprep.mubr.msk.f32.mxu1 %vm3607_vm8, %v7772_v40 }
0x1725   :  { %9227 = vmatmul.mubr.msk.f32.gmra.mrb[82].mxu1 %vm3607_vm8, %v7773_v11 }
0x1767   :  { %v9225_v42 = vpop.f32.mrb[80].mxu1 }
0x1768   :  { %v7866_v19 = vadd.f32 %v9225_v42, %v4049_v12  ;;  %v7860_v2 = vpop.f32.mrb[81].mxu1 }
0x1769   :  { %v7861_v7 = vadd.f32 %v7860_v2, %v4049_v12 }
0x176a   :  { %v7880_v59 = vadd.f32 %v7866_v19, %v12369_v6 }
0x176b   :  { %v7879_v32 = vadd.f32 %v7861_v7, %v12367_v62 }
0x176c   :  { %v7886_v36 = vsel %vm163_vm0, %v7880_v59, 0.0 }
0x176d   :  { %7887 = vadd.xlane.f32.xlu1 %v7886_v36  ;;  %v7883_v31 = vsel %vm163_vm0, %v7879_v32, 0.0 }
0x176e   :  { %7884 = vadd.xlane.f32.xlu0 %v7883_v31 }
0x17f8   :  { %v9228_v35 = vpop.f32.mrb[82].mxu1 }
0x17f9   :  { %v7876_v28 = vadd.f32 %v9228_v35, %v4049_v12  ;;  %v7870_v14 = vpop.f32.mrb[83].mxu1 }
0x17fa   :  { %v7871_v15 = vadd.f32 %v7870_v14, %v4049_v12  ;;  %v7888_v63 = vpop.xlane.xlu1 %7887 }
0x17fb   :  { %v7882_v3 = vadd.f32 %v7876_v28, %v7668_v34  ;;  %v7896_v37 = vmul.f32 0.03125, %v7888_v63  ;;  %v7885_v9 = vpop.xlane.xlu0 %7884  ;;  %v4051_v34 = vld [vmem:[%s12463_s14 + $0x7] ss:$0 sm:$0xff]  ;;  %s8099_s14 = sshll.u32 %s10326_s4, 4  ;;  %s8100_s14 = int_to_ptr.vmem [resolvable:$true] %s8099_s14 }
0x17fc   :  { %v7881_v13 = vadd.f32 %v7871_v15, %v7667_v25  ;;  %v7895_v47 = vmul.f32 0.03125, %v7885_v9  ;;  %s10282_s23 = scalar_lea.vmem %s8100_s14, 256  ;;  %p10287_p1 = scmp.lt.s32.totalorder %s8100_s14, %s8100_s14 }
0x17fd   :  { %v7900_v49 = vsub.f32 %v7880_v59, %v7896_v37  ;;  %v7892_v53 = vsel %vm163_vm0, %v7882_v3, 0.0  ;;  %p10283_p0 = scmp.ne.s32.totalorder %s8100_s14, %s10282_s23  ;;  %p10288_p2 = scmp.lt.s32.totalorder %s10282_s23, %s10282_s23 }
0x17fe   :  { %v7899_v21 = vsub.f32 %v7879_v32, %v7895_v47  ;;  %7893 = vadd.xlane.f32.xlu1 %v7892_v53  ;;  %v7889_v62 = vsel %vm163_vm0, %v7881_v13, 0.0 }
0x17ff   :  { %7890 = vadd.xlane.f32.xlu0 %v7889_v62  ;;  %v7904_v6 = vmul.f32 %v7900_v49, %v7900_v49  ;;  %p10289_p3 = por %p10288_p2, %p10287_p1 }
0x1800   :  { %v7903_v43 = vmul.f32 %v7899_v21, %v7899_v21 }
0x1801   :  { %v7910_v51 = vsel %vm163_vm0, %v7904_v6, 0.0  ;;  %p10290_p4 = pnand %p10289_p3, %p10283_p0 }
0x1802   :  { %7911 = vadd.xlane.f32.xlu1 %v7910_v51  ;;  %v7907_v41 = vsel %vm163_vm0, %v7903_v43, 0.0 }
0x1803   :  { %7908 = vadd.xlane.f32.xlu0 %v7907_v41 }
0x188b   :  { %v7894_v30 = vpop.xlane.xlu1 %7893 }
0x188c   :  { %v7898_v52 = vmul.f32 0.03125, %v7894_v30  ;;  %v7891_v17 = vpop.xlane.xlu0 %7890 }
0x188d   :  { %v7897_v60 = vmul.f32 0.03125, %v7891_v17 }
0x188e   :  { %v7902_v5 = vsub.f32 %v7882_v3, %v7898_v52 }
0x188f   :  { %v7901_v0 = vsub.f32 %v7881_v13, %v7897_v60  ;;  %v7912_v18 = vpop.xlane.xlu1 %7911 }
0x1890   :  { %v7920_v26 = vmul.f32 0.03125, %v7912_v18  ;;  %v7909_v33 = vpop.xlane.xlu0 %7908  ;;  %v7906_v61 = vmul.f32 %v7902_v5, %v7902_v5 }
0x1891   :  { %v7919_v58 = vmul.f32 0.03125, %v7909_v33  ;;  %v7905_v8 = vmul.f32 %v7901_v0, %v7901_v0 }
0x1892   :  { %v7924_v29 = vadd.f32 1e-05, %v7920_v26  ;;  %v7916_v54 = vsel %vm163_vm0, %v7906_v61, 0.0 }
0x1893   :  { %v7923_v39 = vadd.f32 1e-05, %v7919_v58  ;;  %7917 = vadd.xlane.f32.xlu1 %v7916_v54  ;;  %v7913_v27 = vsel %vm163_vm0, %v7905_v8, 0.0 }
0x1894   :  { %10274 = vrsqrt.f32 %v7924_v29  ;;  %7914 = vadd.xlane.f32.xlu0 %v7913_v27 }
0x1895   :  { %10276 = vrsqrt.f32 %v7923_v39 }
0x189e   :  { %v10275_v45 = vpop.eup %10274 }
0x189f   :  { %v10277_v24 = vpop.eup %10276  ;;  %v7932_v1 = vmul.f32 %v10275_v45, %v7900_v49 }
0x18a0   :  { %v7931_v25 = vmul.f32 %v10277_v24, %v7899_v21 }
0x18a1   :  { %v7936_v48 = vmul.f32 %v7932_v1, %v4050_v46 }
0x18a2   :  { %v7935_v55 = vmul.f32 %v7931_v25, %v4050_v46 }
0x18a3   :  { %v7940_v38 = vadd.f32 %v7936_v48, %v4051_v34 }
0x18a4   :  { %v7939_v22 = vadd.f32 %v7935_v55, %v4051_v34 }
0x18a6   :  { %v9660_v57 = vpack.c.bf16 %v7940_v38, %v7939_v22 }
0x18a8   :  { %9661 = vmatpush3.bf16.msra.mxu0 %v9660_v57 }
0x18a9   :  { %9662 = vmatprep.subr.bf16.mxu0 %v10324_v4 }
0x18ab   :  { %9234 = vmatmul.mubr.msk.f32.vlgmr.msra.gmra.mrb[84].mxu0 %vm1036_vm3, %v7943_v23 }
0x18ac   :  { %9240 = vmatprep.mubr.msk.f32.mxu0 %vm10325_vm9, %v10308_v16 }
0x1920   :  { %v7918_v10 = vpop.xlane.xlu1 %7917 }
0x1921   :  { %v7922_v20 = vmul.f32 0.03125, %v7918_v10  ;;  %v7915_v56 = vpop.xlane.xlu0 %7914 }
0x1922   :  { %v7921_v50 = vmul.f32 0.03125, %v7915_v56 }
0x1923   :  { %v7926_v44 = vadd.f32 1e-05, %v7922_v20 }
0x1924   :  { %v7925_v40 = vadd.f32 1e-05, %v7921_v50 }
0x1925   :  { %10278 = vrsqrt.f32 %v7926_v44 }
0x1926   :  { %10280 = vrsqrt.f32 %v7925_v40 }
0x192f   :  { %v10279_v11 = vpop.eup %10278 }
0x1930   :  { %v10281_v12 = vpop.eup %10280  ;;  %v7934_v42 = vmul.f32 %v10279_v11, %v7902_v5 }
0x1931   :  { %v7933_v19 = vmul.f32 %v10281_v12, %v7901_v0 }
0x1932   :  { %v7938_v2 = vmul.f32 %v7934_v42, %v4050_v46 }
0x1933   :  { %v7937_v7 = vmul.f32 %v7933_v19, %v4050_v46 }
0x1934   :  { %v7942_v59 = vadd.f32 %v7938_v2, %v4051_v34 }
0x1935   :  { %v7941_v32 = vadd.f32 %v7937_v7, %v4051_v34 }
0x1937   :  { %v9663_v36 = vpack.c.bf16 %v7942_v59, %v7941_v32 }
0x1939   :  { %9664 = vmatpush3.bf16.msra.mxu0 %v9663_v36 }
0x193c   :  { %9241 = vmatmul.mubr.msk.f32.vlgmr.msra.gmra.mrb[86].mxu0 %vm1036_vm3, %v7943_v23 }
0x197e   :  { %v8013_v16 = vpop.f32.mrb[84].mxu0 }
0x197f   :  { %8017 = vst.msk [vmem:[#allocation2] sm:$0xff] %vm163_vm0, %v8013_v16  ;;  %v9235_v31 = vpop.f32.mrb[85].mxu0 }
0x1a0f   :  { %v8088_v35 = vpop.f32.mrb[86].mxu0 }
0x1a10   :  { %8093 = vst.msk [vmem:[#allocation2 + $0x8] sm:$0xff] %vm163_vm0, %v8088_v35  ;;  %v9242_v28 = vpop.f32.mrb[87].mxu0 }
0x1a11   :  { %10293 = shalt.err (!%p10290_p4)
}
0x1a12   :  { %s10294_s5 = scalar_lea.hbm %s12464_s15, 256 }
0x1a13   :  { %p10295_p5 = scmp.ne.s32.totalorder %s12464_s15, %s10294_s5  ;;  %p10298_p6 = scmp.lt.u32.totalorder %s10294_s5, %s12464_s15 }
0x1a15   :  { %p10300_p7 = pnand %p10298_p6, %p10295_p5 }
0x1a17   :  { %10303 = shalt.err (!%p10300_p7)
}
0x1a18   :  { %s10327_s6 = smov 128  }
0x1a19   :  { %8105 = dma.vmem_to_hbm [thread:$0]  %s8100_s14, 256, %s12464_s15, [#allocation3], %s10327_s6, %s10327_s6, %s10317_s3  }
0x1a1a   :  { %10304 = dma.done.wait [#allocation3], 256  }
0x1a1b   :  { %10305 = vsyncadd [#allocation3], 4294967040 }
0x1a1c   :  { %8109 = vsyncpa [#allocation3], 1 }

</bundles_post_ra>
